<compile_context>
chip_gen: v5e
topology: v5e:2x2
jax: 0.10.0
libtpu: 0.0.40
codegen_flags: <defaults>
</compile_context>

<pallas_src>
import jax
import jax.numpy as jnp
from jax.experimental import pallas as pl
from jax.experimental.pallas import tpu as pltpu

# ----------------------------- config ---------------------------------------
B = 2          # batch
S = 8          # sequence length (encoder & decoder)
D = 32         # d_model
H = 4          # attention heads
HD = D // H    # head dim
F = 64         # ffn dim
V = 128        # vocab size
PAD_ID = 1     # mbart pad token id
NEG = -1e9
EMB_SCALE = float(D) ** 0.5          # scale_embedding=True
ATTN_SCALE = 1.0 / (HD ** 0.5)

assert S & (S - 1) == 0, "S must be a power of two (shift/mask batch bias)"
LOG2_S = S.bit_length() - 1

# layernorm slots in the packed gamma/beta rows
LN_ENC_EMB, LN_ENC_SELF, LN_ENC_FFN, LN_ENC_FINAL = 0, 1, 2, 3
LN_DEC_EMB, LN_DEC_SELF, LN_DEC_CROSS, LN_DEC_FFN, LN_DEC_FINAL = 4, 5, 6, 7, 8
# attention slots in the packed (3, ...) weight slab
AT_ENC_SELF, AT_DEC_SELF, AT_DEC_CROSS = 0, 1, 2

# const-slab (f32, lane width 128) static row offsets
R_LN_G = 0                       # 9 rows, cols 0:D
R_LN_B = R_LN_G + 9              # 9 rows, cols 0:D
R_ATTN_B = R_LN_B + 9            # 3 rows, [bq|bk|bv|bo] -> cols 0:4D = 0:128
R_FC1_B = R_ATTN_B + 3           # 2 rows, cols 0:F
R_FC2_B = R_FC1_B + 2            # 2 rows, cols 0:D
R_LOGIT_B = R_FC2_B + 2          # 1 row,  cols 0:V
R_POS_ENC = R_LOGIT_B + 1        # B*S rows, cols 0:D
R_POS_DEC = R_POS_ENC + B * S    # B*S rows, cols 0:D
SLAB_ROWS = R_POS_DEC + B * S


# ----------------------------- fused Pallas kernel ---------------------------
def _fused_kernel(ids_ref, mask_ref, shared_ref, shared_t_ref, slab_ref,
                  attn_w_ref, ffn_w_ref, logits_ref, loss_ref):
    slab = slab_ref[...]                                   # (SLAB_ROWS, 128) f32
    shared = shared_ref[...]                               # (V, D) bf16
    shared_t = shared_t_ref[...]                           # (D, V) bf16

    def f32dot(a, b):
        return jnp.dot(a, b, preferred_element_type=jnp.float32)

    def dot_nt(a, b):
        # (M, K) x (N, K) -> (M, N), contraction on K (no materialized transpose)
        return jax.lax.dot_general(a, b, (((1,), (1,)), ((), ())),
                                   preferred_element_type=jnp.float32)

    # Single iota, reused by both embedding lookups and the loss label gather.
    viota = jax.lax.broadcasted_iota(jnp.int32, (B * S, V), 1)

    def embed(ids_col, pos):
        # one-hot @ embedding table == exact gather, stays on the MXU
        onehot = jnp.where(viota == ids_col, 1.0, 0.0).astype(jnp.bfloat16)
        tok = f32dot(onehot, shared)                       # (BS, D) f32
        return tok * EMB_SCALE + pos

    def layernorm(x, idx):
        g = slab[R_LN_G + idx:R_LN_G + idx + 1, :D]
        b = slab[R_LN_B + idx:R_LN_B + idx + 1, :D]
        mu = jnp.mean(x, axis=-1, keepdims=True)
        var = jnp.mean((x - mu) ** 2, axis=-1, keepdims=True)
        return (x - mu) * jax.lax.rsqrt(var + 1e-5) * g + b

    def gelu(y):
        # TODO(synk): mBART uses exact erf-GELU; tanh approximation used here
        # (difference ~1e-3) to stay on guaranteed-lowerable VPU/EUP ops.
        return 0.5 * y * (1.0 + jnp.tanh(0.7978845608028654 *
                                         (y + 0.044715 * y * y * y)))

    # ---- additive attention biases, generated in-kernel (never hit HBM) ----
    row_i = jax.lax.broadcasted_iota(jnp.int32, (B * S, B * S), 0)
    col_i = jax.lax.broadcasted_iota(jnp.int32, (B * S, B * S), 1)
    row_blk = jax.lax.shift_right_logical(row_i, LOG2_S)
    col_blk = jax.lax.shift_right_logical(col_i, LOG2_S)
    batch_bias = jnp.where(row_blk == col_blk, 0.0, NEG)          # block diag
    row_pos = jax.lax.bitwise_and(row_i, S - 1)
    col_pos = jax.lax.bitwise_and(col_i, S - 1)
    causal_bias = jnp.where(col_pos > row_pos, NEG, 0.0)
    pad_row = (1.0 - mask_ref[...]) * NEG                          # (1, BS)
    bias_enc_keys = batch_bias + pad_row       # enc self-attn & cross-attn keys
    bias_dec_self = batch_bias + causal_bias   # decoder self-attn

    def mha(x_q, x_kv, idx, bias, fuse_qkv):
        w = attn_w_ref[idx]                                  # (D, 4D) bf16
        bvec = slab[R_ATTN_B + idx:R_ATTN_B + idx + 1, :]    # (1, 4D)  f32
        xq = x_q.astype(jnp.bfloat16)
        if fuse_qkv:                                          # x_q is x_kv
            qkv = f32dot(xq, w[:, :3 * D]) + bvec[:, :3 * D]  # one (BS,D)x(D,3D)
            q, k, v = qkv[:, :D], qkv[:, D:2 * D], qkv[:, 2 * D:3 * D]
        else:
            q = f32dot(xq, w[:, :D]) + bvec[:, :D]
            kv = f32dot(x_kv.astype(jnp.bfloat16), w[:, D:3 * D]) + bvec[:, D:3 * D]
            k, v = kv[:, :D], kv[:, D:2 * D]
        acc = None
        for h in range(H):                                    # static, H=4
            lo, hi = h * HD, (h + 1) * HD
            s = dot_nt(q[:, lo:hi].astype(jnp.bfloat16),
                       k[:, lo:hi].astype(jnp.bfloat16)) * ATTN_SCALE + bias
            s = s - jnp.max(s, axis=-1, keepdims=True)
            p = jnp.exp(s)
            p = p * pl.reciprocal(jnp.sum(p, axis=-1, keepdims=True), approx=True)
            ctx_h = f32dot(p.astype(jnp.bfloat16),
                           v[:, lo:hi].astype(jnp.bfloat16))  # (BS, HD)
            # output projection folded into the head loop (no concatenates)
            contrib = f32dot(ctx_h.astype(jnp.bfloat16), w[lo:hi, 3 * D:4 * D])
            acc = contrib if acc is None else acc + contrib
        return acc + bvec[:, 3 * D:4 * D]

    def ffn(x, idx):
        w = ffn_w_ref[idx]                                    # (D+F, F) bf16
        b1 = slab[R_FC1_B + idx:R_FC1_B + idx + 1, :F]
        b2 = slab[R_FC2_B + idx:R_FC2_B + idx + 1, :D]
        h1 = gelu(f32dot(x.astype(jnp.bfloat16), w[:D, :]) + b1)
        return f32dot(h1.astype(jnp.bfloat16), w[D:, :D]) + b2

    pos_enc = slab[R_POS_ENC:R_POS_ENC + B * S, :D]
    pos_dec = slab[R_POS_DEC:R_POS_DEC + B * S, :D]
    enc_ids = ids_ref[0]                                      # (BS, 1) int32
    dec_ids = ids_ref[1]
    labels = ids_ref[2]

    # ---------------- encoder (1 pre-LN layer) ----------------
    h = layernorm(embed(enc_ids, pos_enc), LN_ENC_EMB)
    hn = layernorm(h, LN_ENC_SELF)
    h = h + mha(hn, hn, AT_ENC_SELF, bias_enc_keys, fuse_qkv=True)
    h = h + ffn(layernorm(h, LN_ENC_FFN), 0)
    enc_out = layernorm(h, LN_ENC_FINAL)

    # ---------------- decoder (1 pre-LN layer) ----------------
    h = layernorm(embed(dec_ids, pos_dec), LN_DEC_EMB)
    hn = layernorm(h, LN_DEC_SELF)
    h = h + mha(hn, hn, AT_DEC_SELF, bias_dec_self, fuse_qkv=True)
    h = h + mha(layernorm(h, LN_DEC_CROSS), enc_out, AT_DEC_CROSS,
                bias_enc_keys, fuse_qkv=False)
    h = h + ffn(layernorm(h, LN_DEC_FFN), 1)
    dec_out = layernorm(h, LN_DEC_FINAL)

    # ------------- tied LM head (pre-transposed table) + CE loss -------------
    logits = (f32dot(dec_out.astype(jnp.bfloat16), shared_t)
              + slab[R_LOGIT_B:R_LOGIT_B + 1, :V])            # (BS, V) f32
    logits_ref[...] = logits

    m = jnp.max(logits, axis=-1, keepdims=True)
    lse = jnp.log(jnp.sum(jnp.exp(logits - m), axis=-1, keepdims=True)) + m
    gold = jnp.sum(jnp.where(viota == labels, logits, 0.0), axis=-1,
                   keepdims=True)
    # TODO(synk): HF CrossEntropyLoss uses ignore_index=-100; synthetic labels
    # never contain -100/pad so a plain mean matches.
    loss_ref[0, 0] = jnp.mean(lse - gold)


# ----------------------------- parameters ------------------------------------
def _init_linear(key, k_in, k_out):
    kw, kb = jax.random.split(key)
    w = jax.random.normal(kw, (k_in, k_out), jnp.float32) * 0.02
    b = jax.random.normal(kb, (k_out,), jnp.float32) * 0.02
    return w, b


def _init_attn_block(p, key, pre):
    ks = jax.random.split(key, 4)
    for name, kk in zip(("q", "k", "v", "o"), ks):
        w, b = _init_linear(kk, D, D)
        p[pre + "_" + name + "_w"] = w
        p[pre + "_" + name + "_b"] = b


def _init_ln(p, pre):
    p[pre + "_g"] = jnp.ones((D,), jnp.float32)
    p[pre + "_b"] = jnp.zeros((D,), jnp.float32)


def init_params(seed=0):
    key = jax.random.PRNGKey(seed)
    keys = iter(jax.random.split(key, 32))
    p = {}
    p["shared"] = jax.random.normal(next(keys), (V, D), jnp.float32) * 0.02
    p["final_logits_bias"] = jnp.zeros((V,), jnp.float32)
    for side in ("enc", "dec"):
        p[side + "_pos"] = (
            jax.random.normal(next(keys), (S + 2, D), jnp.float32) * 0.02)
        _init_ln(p, side + "_ln_embed")
        _init_attn_block(p, next(keys), side + "_self")
        _init_ln(p, side + "_self_ln")
        if side == "dec":
            _init_attn_block(p, next(keys), "dec_cross")
            _init_ln(p, "dec_cross_ln")
        w1, b1 = _init_linear(next(keys), D, F)
        w2, b2 = _init_linear(next(keys), F, D)
        p[side + "_fc1_w"], p[side + "_fc1_b"] = w1, b1
        p[side + "_fc2_w"], p[side + "_fc2_b"] = w2, b2
        _init_ln(p, side + "_ffn_ln")
        _init_ln(p, side + "_final_ln")
    return p


def pack_params(p):
    """Pack all weights into 5 VMEM-friendly slabs (cuts per-call DMA count)."""
    def pad128(a):
        return jnp.pad(a, ((0, 0), (0, 128 - a.shape[-1])))

    attn_w, attn_b = [], []
    for pre in ("enc_self", "dec_self", "dec_cross"):
        attn_w.append(jnp.concatenate(
            [p[pre + "_q_w"], p[pre + "_k_w"], p[pre + "_v_w"], p[pre + "_o_w"]],
            axis=1))                                              # (D, 4D)
        attn_b.append(jnp.concatenate(
            [p[pre + "_q_b"], p[pre + "_k_b"], p[pre + "_v_b"], p[pre + "_o_b"]],
            axis=0))                                              # (4D,)
    attn_w = jnp.stack(attn_w).astype(jnp.bfloat16)               # (3, D, 4D)
    attn_b = jnp.stack(attn_b)                                    # (3, 128)

    ffn_w = []
    for side in ("enc", "dec"):
        fc1 = p[side + "_fc1_w"]                                  # (D, F)
        fc2 = jnp.pad(p[side + "_fc2_w"], ((0, 0), (0, F - D)))   # (F, F)
        ffn_w.append(jnp.concatenate([fc1, fc2], axis=0))         # (D+F, F)
    ffn_w = jnp.stack(ffn_w).astype(jnp.bfloat16)                 # (2, D+F, F)

    ln_order = ("enc_ln_embed", "enc_self_ln", "enc_ffn_ln", "enc_final_ln",
                "dec_ln_embed", "dec_self_ln", "dec_cross_ln", "dec_ffn_ln",
                "dec_final_ln")
    slab = jnp.concatenate([
        pad128(jnp.stack([p[n + "_g"] for n in ln_order])),            # 9
        pad128(jnp.stack([p[n + "_b"] for n in ln_order])),            # 9
        attn_b,                                                        # 3
        pad128(jnp.stack([p["enc_fc1_b"], p["dec_fc1_b"]])),           # 2
        pad128(jnp.stack([p["enc_fc2_b"], p["dec_fc2_b"]])),           # 2
        p["final_logits_bias"].reshape(1, V),                          # 1
        pad128(jnp.tile(p["enc_pos"][2:2 + S], (B, 1))),               # B*S
        pad128(jnp.tile(p["dec_pos"][2:2 + S], (B, 1))),               # B*S
    ], axis=0)
    assert slab.shape == (SLAB_ROWS, 128)

    return dict(
        shared=p["shared"].astype(jnp.bfloat16),                  # (V, D)
        shared_t=p["shared"].T.astype(jnp.bfloat16),               # (D, V)
        slab=slab,                                                 # f32
        attn_w=attn_w,
        ffn_w=ffn_w,
    )


# ----------------------------- model glue ------------------------------------
def shift_tokens_right(input_ids, pad_id):
    """MBart-style shift: last non-pad token wraps to position 0."""
    labels = jnp.where(input_ids == -100, pad_id, input_ids)
    idx_eos = jnp.sum((labels != pad_id).astype(jnp.int32), axis=1) - 1
    start = jnp.take_along_axis(labels, idx_eos[:, None], axis=1)
    return jnp.concatenate([start, labels[:, :-1]], axis=1)


def forward(pp, x, mask, correct):
    """Mirrors MLP_arg_classification.forward -> (logits, loss)."""
    dec_ids = shift_tokens_right(correct, PAD_ID)
    ids = jnp.stack([x.reshape(B * S), dec_ids.reshape(B * S),
                     correct.reshape(B * S)]).astype(jnp.int32)
    ids = ids.reshape(3, B * S, 1)

    logits_flat, loss = pl.pallas_call(
        _fused_kernel,
        out_shape=(jax.ShapeDtypeStruct((B * S, V), jnp.float32),
                   jax.ShapeDtypeStruct((1, 1), jnp.float32)),
        in_specs=[pl.BlockSpec(memory_space=pltpu.MemorySpace.VMEM)] * 7,
        out_specs=(pl.BlockSpec(memory_space=pltpu.MemorySpace.VMEM),
                   pl.BlockSpec(memory_space=pltpu.MemorySpace.SMEM)),
    )(ids,
      mask.reshape(1, B * S).astype(jnp.float32),
      pp["shared"], pp["shared_t"], pp["slab"], pp["attn_w"], pp["ffn_w"])
    return logits_flat.reshape(B, S, V), loss[0, 0]


# ----------------------------- main ------------------------------------------
if __name__ == "__main__":
    params = pack_params(init_params(0))

    key = jax.random.PRNGKey(0)
    kx, kc = jax.random.split(key)
    x = jax.random.randint(kx, (B, S), 3, V, dtype=jnp.int32)
    correct = jax.random.randint(kc, (B, S), 3, V, dtype=jnp.int32)
    mask = jnp.ones((B, S), jnp.int32).at[1, S - 2:].set(0)  # some padding

    logits, loss = jax.jit(forward)(params, x, mask, correct)
    jax.block_until_ready((logits, loss))

    assert logits.shape == (B, S, V)
    assert loss.shape == ()
    assert bool(jnp.isfinite(loss))
    print("KERNEL_OK")
</pallas_src>

<mosaic_0001>
module attributes {stable_mosaic.version = 11 : i64} {
  func.func @_fused_kernel(%arg0: memref<3x16x1xi32, #tpu.memory_space<vmem>>, %arg1: memref<1x16xf32, #tpu.memory_space<vmem>>, %arg2: memref<128x32xbf16, #tpu.memory_space<vmem>>, %arg3: memref<32x128xbf16, #tpu.memory_space<vmem>>, %arg4: memref<58x128xf32, #tpu.memory_space<vmem>>, %arg5: memref<3x32x128xbf16, #tpu.memory_space<vmem>>, %arg6: memref<2x96x64xbf16, #tpu.memory_space<vmem>>, %arg7: memref<16x128xf32, #tpu.memory_space<vmem>>, %arg8: memref<1x1xf32, #tpu.memory_space<smem>>) attributes {dimension_semantics = [], scalar_prefetch = 0 : i64, scratch_operands = 0 : i64, tpu.core_type = #tpu.core_type<tc>} {
    %c0 = arith.constant 0 : index
    %c0_0 = arith.constant 0 : index
    %0 = vector.load %arg4[%c0, %c0_0] : memref<58x128xf32, #tpu.memory_space<vmem>>, vector<58x128xf32>
    %c0_1 = arith.constant 0 : index
    %c0_2 = arith.constant 0 : index
    %1 = vector.load %arg2[%c0_1, %c0_2] : memref<128x32xbf16, #tpu.memory_space<vmem>>, vector<128x32xbf16>
    %c0_3 = arith.constant 0 : index
    %c0_4 = arith.constant 0 : index
    %2 = vector.load %arg3[%c0_3, %c0_4] : memref<32x128xbf16, #tpu.memory_space<vmem>>, vector<32x128xbf16>
    %3 = tpu.iota {dimensions = array<i32: 1>} : vector<16x128xi32>
    %4 = tpu.iota {dimensions = array<i32: 0>} : vector<16x16xi32>
    %5 = tpu.iota {dimensions = array<i32: 1>} : vector<16x16xi32>
    %c3_i32 = arith.constant 3 : i32
    %6 = vector.broadcast %c3_i32 : i32 to vector<16x16xi32>
    %7 = arith.shrui %4, %6 : vector<16x16xi32>
    %c3_i32_5 = arith.constant 3 : i32
    %8 = vector.broadcast %c3_i32_5 : i32 to vector<16x16xi32>
    %9 = arith.shrui %5, %8 : vector<16x16xi32>
    %10 = arith.cmpi eq, %7, %9 : vector<16x16xi32>
    %cst = arith.constant 0.000000e+00 : f32
    %cst_6 = arith.constant -1.000000e+09 : f32
    %11 = vector.broadcast %cst : f32 to vector<16x16xf32>
    %12 = vector.broadcast %cst_6 : f32 to vector<16x16xf32>
    %13 = arith.select %10, %11, %12 : vector<16x16xi1>, vector<16x16xf32>
    %c7_i32 = arith.constant 7 : i32
    %14 = vector.broadcast %c7_i32 : i32 to vector<16x16xi32>
    %15 = arith.andi %4, %14 : vector<16x16xi32>
    %c7_i32_7 = arith.constant 7 : i32
    %16 = vector.broadcast %c7_i32_7 : i32 to vector<16x16xi32>
    %17 = arith.andi %5, %16 : vector<16x16xi32>
    %18 = arith.cmpi sgt, %17, %15 : vector<16x16xi32>
    %cst_8 = arith.constant -1.000000e+09 : f32
    %cst_9 = arith.constant 0.000000e+00 : f32
    %19 = vector.broadcast %cst_8 : f32 to vector<16x16xf32>
    %20 = vector.broadcast %cst_9 : f32 to vector<16x16xf32>
    %21 = arith.select %18, %19, %20 : vector<16x16xi1>, vector<16x16xf32>
    %c0_10 = arith.constant 0 : index
    %c0_11 = arith.constant 0 : index
    %22 = vector.load %arg1[%c0_10, %c0_11] : memref<1x16xf32, #tpu.memory_space<vmem>>, vector<1x16xf32>
    %cst_12 = arith.constant 1.000000e+00 : f32
    %23 = vector.broadcast %cst_12 : f32 to vector<1x16xf32>
    %24 = arith.subf %23, %22 : vector<1x16xf32>
    %cst_13 = arith.constant -1.000000e+09 : f32
    %25 = vector.broadcast %cst_13 : f32 to vector<1x16xf32>
    %26 = arith.mulf %24, %25 : vector<1x16xf32>
    %27 = vector.broadcast %26 : vector<1x16xf32> to vector<16x16xf32>
    %28 = arith.addf %13, %27 : vector<16x16xf32>
    %29 = arith.addf %13, %21 : vector<16x16xf32>
    %30 = vector.extract_strided_slice %0 {offsets = [26, 0], sizes = [16, 32], strides = [1, 1]} : vector<58x128xf32> to vector<16x32xf32>
    %31 = vector.extract_strided_slice %0 {offsets = [42, 0], sizes = [16, 32], strides = [1, 1]} : vector<58x128xf32> to vector<16x32xf32>
    %c0_14 = arith.constant 0 : index
    %c0_15 = arith.constant 0 : index
    %c0_16 = arith.constant 0 : index
    %32 = vector.load %arg0[%c0_14, %c0_15, %c0_16] : memref<3x16x1xi32, #tpu.memory_space<vmem>>, vector<1x16x1xi32>
    %33 = vector.shape_cast %32 : vector<1x16x1xi32> to vector<16x1xi32>
    %c1 = arith.constant 1 : index
    %c0_17 = arith.constant 0 : index
    %c0_18 = arith.constant 0 : index
    %34 = vector.load %arg0[%c1, %c0_17, %c0_18] : memref<3x16x1xi32, #tpu.memory_space<vmem>>, vector<1x16x1xi32>
    %35 = vector.shape_cast %34 : vector<1x16x1xi32> to vector<16x1xi32>
    %c2 = arith.constant 2 : index
    %c0_19 = arith.constant 0 : index
    %c0_20 = arith.constant 0 : index
    %36 = vector.load %arg0[%c2, %c0_19, %c0_20] : memref<3x16x1xi32, #tpu.memory_space<vmem>>, vector<1x16x1xi32>
    %37 = vector.shape_cast %36 : vector<1x16x1xi32> to vector<16x1xi32>
    %38 = vector.broadcast %33 : vector<16x1xi32> to vector<16x128xi32>
    %39 = arith.cmpi eq, %3, %38 : vector<16x128xi32>
    %cst_21 = arith.constant 1.000000e+00 : f32
    %cst_22 = arith.constant 0.000000e+00 : f32
    %40 = vector.broadcast %cst_21 : f32 to vector<16x128xf32>
    %41 = vector.broadcast %cst_22 : f32 to vector<16x128xf32>
    %42 = arith.select %39, %40, %41 : vector<16x128xi1>, vector<16x128xf32>
    %43 = arith.truncf %42 : vector<16x128xf32> to vector<16x128xbf16>
    %cst_23 = arith.constant dense<0.000000e+00> : vector<16x32xf32>
    %44 = tpu.matmul %43, %1, %cst_23 {dimension_numbers = #tpu.dot_dimension_numbers<[1], [0], [0], [1], [0, 0, 1, 1], [], []>} : vector<16x128xbf16>, vector<128x32xbf16>, vector<16x32xf32> -> vector<16x32xf32>
    %cst_24 = arith.constant 5.65685415 : f32
    %45 = vector.broadcast %cst_24 : f32 to vector<16x32xf32>
    %46 = arith.mulf %44, %45 : vector<16x32xf32>
    %47 = arith.addf %46, %30 : vector<16x32xf32>
    %48 = vector.extract_strided_slice %0 {offsets = [0, 0], sizes = [1, 32], strides = [1, 1]} : vector<58x128xf32> to vector<1x32xf32>
    %49 = vector.extract_strided_slice %0 {offsets = [9, 0], sizes = [1, 32], strides = [1, 1]} : vector<58x128xf32> to vector<1x32xf32>
    %cst_25 = arith.constant dense<0.000000e+00> : vector<16xf32>
    %50 = vector.multi_reduction <add>, %47, %cst_25 [1] : vector<16x32xf32> to vector<16xf32>
    %51 = vector.shape_cast %50 : vector<16xf32> to vector<16x1xf32>
    %cst_26 = arith.constant 3.200000e+01 : f32
    %52 = vector.broadcast %cst_26 : f32 to vector<16x1xf32>
    %53 = arith.divf %51, %52 : vector<16x1xf32>
    %54 = vector.broadcast %53 : vector<16x1xf32> to vector<16x32xf32>
    %55 = arith.subf %47, %54 : vector<16x32xf32>
    %56 = arith.mulf %55, %55 : vector<16x32xf32>
    %cst_27 = arith.constant dense<0.000000e+00> : vector<16xf32>
    %57 = vector.multi_reduction <add>, %56, %cst_27 [1] : vector<16x32xf32> to vector<16xf32>
    %58 = vector.shape_cast %57 : vector<16xf32> to vector<16x1xf32>
    %cst_28 = arith.constant 3.200000e+01 : f32
    %59 = vector.broadcast %cst_28 : f32 to vector<16x1xf32>
    %60 = arith.divf %58, %59 : vector<16x1xf32>
    %61 = vector.broadcast %53 : vector<16x1xf32> to vector<16x32xf32>
    %62 = arith.subf %47, %61 : vector<16x32xf32>
    %cst_29 = arith.constant 9.99999974E-6 : f32
    %63 = vector.broadcast %cst_29 : f32 to vector<16x1xf32>
    %64 = arith.addf %60, %63 : vector<16x1xf32>
    %65 = math.rsqrt %64 : vector<16x1xf32>
    %66 = vector.broadcast %65 : vector<16x1xf32> to vector<16x32xf32>
    %67 = arith.mulf %62, %66 : vector<16x32xf32>
    %68 = vector.broadcast %48 : vector<1x32xf32> to vector<16x32xf32>
    %69 = arith.mulf %67, %68 : vector<16x32xf32>
    %70 = vector.broadcast %49 : vector<1x32xf32> to vector<16x32xf32>
    %71 = arith.addf %69, %70 : vector<16x32xf32>
    %72 = vector.extract_strided_slice %0 {offsets = [1, 0], sizes = [1, 32], strides = [1, 1]} : vector<58x128xf32> to vector<1x32xf32>
    %73 = vector.extract_strided_slice %0 {offsets = [10, 0], sizes = [1, 32], strides = [1, 1]} : vector<58x128xf32> to vector<1x32xf32>
    %cst_30 = arith.constant dense<0.000000e+00> : vector<16xf32>
    %74 = vector.multi_reduction <add>, %71, %cst_30 [1] : vector<16x32xf32> to vector<16xf32>
    %75 = vector.shape_cast %74 : vector<16xf32> to vector<16x1xf32>
    %cst_31 = arith.constant 3.200000e+01 : f32
    %76 = vector.broadcast %cst_31 : f32 to vector<16x1xf32>
    %77 = arith.divf %75, %76 : vector<16x1xf32>
    %78 = vector.broadcast %77 : vector<16x1xf32> to vector<16x32xf32>
    %79 = arith.subf %71, %78 : vector<16x32xf32>
    %80 = arith.mulf %79, %79 : vector<16x32xf32>
    %cst_32 = arith.constant dense<0.000000e+00> : vector<16xf32>
    %81 = vector.multi_reduction <add>, %80, %cst_32 [1] : vector<16x32xf32> to vector<16xf32>
    %82 = vector.shape_cast %81 : vector<16xf32> to vector<16x1xf32>
    %cst_33 = arith.constant 3.200000e+01 : f32
    %83 = vector.broadcast %cst_33 : f32 to vector<16x1xf32>
    %84 = arith.divf %82, %83 : vector<16x1xf32>
    %85 = vector.broadcast %77 : vector<16x1xf32> to vector<16x32xf32>
    %86 = arith.subf %71, %85 : vector<16x32xf32>
    %cst_34 = arith.constant 9.99999974E-6 : f32
    %87 = vector.broadcast %cst_34 : f32 to vector<16x1xf32>
    %88 = arith.addf %84, %87 : vector<16x1xf32>
    %89 = math.rsqrt %88 : vector<16x1xf32>
    %90 = vector.broadcast %89 : vector<16x1xf32> to vector<16x32xf32>
    %91 = arith.mulf %86, %90 : vector<16x32xf32>
    %92 = vector.broadcast %72 : vector<1x32xf32> to vector<16x32xf32>
    %93 = arith.mulf %91, %92 : vector<16x32xf32>
    %94 = vector.broadcast %73 : vector<1x32xf32> to vector<16x32xf32>
    %95 = arith.addf %93, %94 : vector<16x32xf32>
    %c0_35 = arith.constant 0 : index
    %c0_36 = arith.constant 0 : index
    %c0_37 = arith.constant 0 : index
    %96 = vector.load %arg5[%c0_35, %c0_36, %c0_37] : memref<3x32x128xbf16, #tpu.memory_space<vmem>>, vector<1x32x128xbf16>
    %97 = vector.shape_cast %96 : vector<1x32x128xbf16> to vector<32x128xbf16>
    %98 = vector.extract_strided_slice %0 {offsets = [18, 0], sizes = [1, 128], strides = [1, 1]} : vector<58x128xf32> to vector<1x128xf32>
    %99 = arith.truncf %95 : vector<16x32xf32> to vector<16x32xbf16>
    %100 = vector.extract_strided_slice %97 {offsets = [0, 0], sizes = [32, 96], strides = [1, 1]} : vector<32x128xbf16> to vector<32x96xbf16>
    %cst_38 = arith.constant dense<0.000000e+00> : vector<16x96xf32>
    %101 = tpu.matmul %99, %100, %cst_38 {dimension_numbers = #tpu.dot_dimension_numbers<[1], [0], [0], [1], [0, 0, 1, 1], [], []>} : vector<16x32xbf16>, vector<32x96xbf16>, vector<16x96xf32> -> vector<16x96xf32>
    %102 = vector.extract_strided_slice %98 {offsets = [0, 0], sizes = [1, 96], strides = [1, 1]} : vector<1x128xf32> to vector<1x96xf32>
    %103 = vector.broadcast %102 : vector<1x96xf32> to vector<16x96xf32>
    %104 = arith.addf %101, %103 : vector<16x96xf32>
    %105 = vector.extract_strided_slice %104 {offsets = [0, 0], sizes = [16, 32], strides = [1, 1]} : vector<16x96xf32> to vector<16x32xf32>
    %106 = vector.extract_strided_slice %104 {offsets = [0, 32], sizes = [16, 32], strides = [1, 1]} : vector<16x96xf32> to vector<16x32xf32>
    %107 = vector.extract_strided_slice %104 {offsets = [0, 64], sizes = [16, 32], strides = [1, 1]} : vector<16x96xf32> to vector<16x32xf32>
    %108 = vector.extract_strided_slice %105 {offsets = [0, 0], sizes = [16, 8], strides = [1, 1]} : vector<16x32xf32> to vector<16x8xf32>
    %109 = arith.truncf %108 : vector<16x8xf32> to vector<16x8xbf16>
    %110 = vector.extract_strided_slice %106 {offsets = [0, 0], sizes = [16, 8], strides = [1, 1]} : vector<16x32xf32> to vector<16x8xf32>
    %111 = arith.truncf %110 : vector<16x8xf32> to vector<16x8xbf16>
    %cst_39 = arith.constant dense<0.000000e+00> : vector<16x16xf32>
    %112 = tpu.matmul %109, %111, %cst_39 {dimension_numbers = #tpu.dot_dimension_numbers<[1], [1], [0], [0], [0, 0, 1, 0], [], []>} : vector<16x8xbf16>, vector<16x8xbf16>, vector<16x16xf32> -> vector<16x16xf32>
    %cst_40 = arith.constant 0.353553385 : f32
    %113 = vector.broadcast %cst_40 : f32 to vector<16x16xf32>
    %114 = arith.mulf %112, %113 : vector<16x16xf32>
    %115 = arith.addf %114, %28 : vector<16x16xf32>
    %cst_41 = arith.constant dense<0xFF800000> : vector<16xf32>
    %116 = vector.multi_reduction <maximumf>, %115, %cst_41 [1] : vector<16x16xf32> to vector<16xf32>
    %117 = vector.shape_cast %116 : vector<16xf32> to vector<16x1xf32>
    %118 = vector.broadcast %117 : vector<16x1xf32> to vector<16x16xf32>
    %119 = arith.subf %115, %118 : vector<16x16xf32>
    %120 = math.exp %119 : vector<16x16xf32>
    %cst_42 = arith.constant dense<0.000000e+00> : vector<16xf32>
    %121 = vector.multi_reduction <add>, %120, %cst_42 [1] : vector<16x16xf32> to vector<16xf32>
    %122 = vector.shape_cast %121 : vector<16xf32> to vector<16x1xf32>
    %123 = tpu.reciprocal %122 {approx = true} : vector<16x1xf32> -> vector<16x1xf32>
    %124 = vector.broadcast %123 : vector<16x1xf32> to vector<16x16xf32>
    %125 = arith.mulf %120, %124 : vector<16x16xf32>
    %126 = arith.truncf %125 : vector<16x16xf32> to vector<16x16xbf16>
    %127 = vector.extract_strided_slice %107 {offsets = [0, 0], sizes = [16, 8], strides = [1, 1]} : vector<16x32xf32> to vector<16x8xf32>
    %128 = arith.truncf %127 : vector<16x8xf32> to vector<16x8xbf16>
    %cst_43 = arith.constant dense<0.000000e+00> : vector<16x8xf32>
    %129 = tpu.matmul %126, %128, %cst_43 {dimension_numbers = #tpu.dot_dimension_numbers<[1], [0], [0], [1], [0, 0, 1, 1], [], []>} : vector<16x16xbf16>, vector<16x8xbf16>, vector<16x8xf32> -> vector<16x8xf32>
    %130 = arith.truncf %129 : vector<16x8xf32> to vector<16x8xbf16>
    %131 = vector.extract_strided_slice %97 {offsets = [0, 96], sizes = [8, 32], strides = [1, 1]} : vector<32x128xbf16> to vector<8x32xbf16>
    %cst_44 = arith.constant dense<0.000000e+00> : vector<16x32xf32>
    %132 = tpu.matmul %130, %131, %cst_44 {dimension_numbers = #tpu.dot_dimension_numbers<[1], [0], [0], [1], [0, 0, 1, 1], [], []>} : vector<16x8xbf16>, vector<8x32xbf16>, vector<16x32xf32> -> vector<16x32xf32>
    %133 = vector.extract_strided_slice %105 {offsets = [0, 8], sizes = [16, 8], strides = [1, 1]} : vector<16x32xf32> to vector<16x8xf32>
    %134 = arith.truncf %133 : vector<16x8xf32> to vector<16x8xbf16>
    %135 = vector.extract_strided_slice %106 {offsets = [0, 8], sizes = [16, 8], strides = [1, 1]} : vector<16x32xf32> to vector<16x8xf32>
    %136 = arith.truncf %135 : vector<16x8xf32> to vector<16x8xbf16>
    %cst_45 = arith.constant dense<0.000000e+00> : vector<16x16xf32>
    %137 = tpu.matmul %134, %136, %cst_45 {dimension_numbers = #tpu.dot_dimension_numbers<[1], [1], [0], [0], [0, 0, 1, 0], [], []>} : vector<16x8xbf16>, vector<16x8xbf16>, vector<16x16xf32> -> vector<16x16xf32>
    %cst_46 = arith.constant 0.353553385 : f32
    %138 = vector.broadcast %cst_46 : f32 to vector<16x16xf32>
    %139 = arith.mulf %137, %138 : vector<16x16xf32>
    %140 = arith.addf %139, %28 : vector<16x16xf32>
    %cst_47 = arith.constant dense<0xFF800000> : vector<16xf32>
    %141 = vector.multi_reduction <maximumf>, %140, %cst_47 [1] : vector<16x16xf32> to vector<16xf32>
    %142 = vector.shape_cast %141 : vector<16xf32> to vector<16x1xf32>
    %143 = vector.broadcast %142 : vector<16x1xf32> to vector<16x16xf32>
    %144 = arith.subf %140, %143 : vector<16x16xf32>
    %145 = math.exp %144 : vector<16x16xf32>
    %cst_48 = arith.constant dense<0.000000e+00> : vector<16xf32>
    %146 = vector.multi_reduction <add>, %145, %cst_48 [1] : vector<16x16xf32> to vector<16xf32>
    %147 = vector.shape_cast %146 : vector<16xf32> to vector<16x1xf32>
    %148 = tpu.reciprocal %147 {approx = true} : vector<16x1xf32> -> vector<16x1xf32>
    %149 = vector.broadcast %148 : vector<16x1xf32> to vector<16x16xf32>
    %150 = arith.mulf %145, %149 : vector<16x16xf32>
    %151 = arith.truncf %150 : vector<16x16xf32> to vector<16x16xbf16>
    %152 = vector.extract_strided_slice %107 {offsets = [0, 8], sizes = [16, 8], strides = [1, 1]} : vector<16x32xf32> to vector<16x8xf32>
    %153 = arith.truncf %152 : vector<16x8xf32> to vector<16x8xbf16>
    %cst_49 = arith.constant dense<0.000000e+00> : vector<16x8xf32>
    %154 = tpu.matmul %151, %153, %cst_49 {dimension_numbers = #tpu.dot_dimension_numbers<[1], [0], [0], [1], [0, 0, 1, 1], [], []>} : vector<16x16xbf16>, vector<16x8xbf16>, vector<16x8xf32> -> vector<16x8xf32>
    %155 = arith.truncf %154 : vector<16x8xf32> to vector<16x8xbf16>
    %156 = vector.extract_strided_slice %97 {offsets = [8, 96], sizes = [8, 32], strides = [1, 1]} : vector<32x128xbf16> to vector<8x32xbf16>
    %cst_50 = arith.constant dense<0.000000e+00> : vector<16x32xf32>
    %157 = tpu.matmul %155, %156, %cst_50 {dimension_numbers = #tpu.dot_dimension_numbers<[1], [0], [0], [1], [0, 0, 1, 1], [], []>} : vector<16x8xbf16>, vector<8x32xbf16>, vector<16x32xf32> -> vector<16x32xf32>
    %158 = arith.addf %132, %157 : vector<16x32xf32>
    %159 = vector.extract_strided_slice %105 {offsets = [0, 16], sizes = [16, 8], strides = [1, 1]} : vector<16x32xf32> to vector<16x8xf32>
    %160 = arith.truncf %159 : vector<16x8xf32> to vector<16x8xbf16>
    %161 = vector.extract_strided_slice %106 {offsets = [0, 16], sizes = [16, 8], strides = [1, 1]} : vector<16x32xf32> to vector<16x8xf32>
    %162 = arith.truncf %161 : vector<16x8xf32> to vector<16x8xbf16>
    %cst_51 = arith.constant dense<0.000000e+00> : vector<16x16xf32>
    %163 = tpu.matmul %160, %162, %cst_51 {dimension_numbers = #tpu.dot_dimension_numbers<[1], [1], [0], [0], [0, 0, 1, 0], [], []>} : vector<16x8xbf16>, vector<16x8xbf16>, vector<16x16xf32> -> vector<16x16xf32>
    %cst_52 = arith.constant 0.353553385 : f32
    %164 = vector.broadcast %cst_52 : f32 to vector<16x16xf32>
    %165 = arith.mulf %163, %164 : vector<16x16xf32>
    %166 = arith.addf %165, %28 : vector<16x16xf32>
    %cst_53 = arith.constant dense<0xFF800000> : vector<16xf32>
    %167 = vector.multi_reduction <maximumf>, %166, %cst_53 [1] : vector<16x16xf32> to vector<16xf32>
    %168 = vector.shape_cast %167 : vector<16xf32> to vector<16x1xf32>
    %169 = vector.broadcast %168 : vector<16x1xf32> to vector<16x16xf32>
    %170 = arith.subf %166, %169 : vector<16x16xf32>
    %171 = math.exp %170 : vector<16x16xf32>
    %cst_54 = arith.constant dense<0.000000e+00> : vector<16xf32>
    %172 = vector.multi_reduction <add>, %171, %cst_54 [1] : vector<16x16xf32> to vector<16xf32>
    %173 = vector.shape_cast %172 : vector<16xf32> to vector<16x1xf32>
    %174 = tpu.reciprocal %173 {approx = true} : vector<16x1xf32> -> vector<16x1xf32>
    %175 = vector.broadcast %174 : vector<16x1xf32> to vector<16x16xf32>
    %176 = arith.mulf %171, %175 : vector<16x16xf32>
    %177 = arith.truncf %176 : vector<16x16xf32> to vector<16x16xbf16>
    %178 = vector.extract_strided_slice %107 {offsets = [0, 16], sizes = [16, 8], strides = [1, 1]} : vector<16x32xf32> to vector<16x8xf32>
    %179 = arith.truncf %178 : vector<16x8xf32> to vector<16x8xbf16>
    %cst_55 = arith.constant dense<0.000000e+00> : vector<16x8xf32>
    %180 = tpu.matmul %177, %179, %cst_55 {dimension_numbers = #tpu.dot_dimension_numbers<[1], [0], [0], [1], [0, 0, 1, 1], [], []>} : vector<16x16xbf16>, vector<16x8xbf16>, vector<16x8xf32> -> vector<16x8xf32>
    %181 = arith.truncf %180 : vector<16x8xf32> to vector<16x8xbf16>
    %182 = vector.extract_strided_slice %97 {offsets = [16, 96], sizes = [8, 32], strides = [1, 1]} : vector<32x128xbf16> to vector<8x32xbf16>
    %cst_56 = arith.constant dense<0.000000e+00> : vector<16x32xf32>
    %183 = tpu.matmul %181, %182, %cst_56 {dimension_numbers = #tpu.dot_dimension_numbers<[1], [0], [0], [1], [0, 0, 1, 1], [], []>} : vector<16x8xbf16>, vector<8x32xbf16>, vector<16x32xf32> -> vector<16x32xf32>
    %184 = arith.addf %158, %183 : vector<16x32xf32>
    %185 = vector.extract_strided_slice %105 {offsets = [0, 24], sizes = [16, 8], strides = [1, 1]} : vector<16x32xf32> to vector<16x8xf32>
    %186 = arith.truncf %185 : vector<16x8xf32> to vector<16x8xbf16>
    %187 = vector.extract_strided_slice %106 {offsets = [0, 24], sizes = [16, 8], strides = [1, 1]} : vector<16x32xf32> to vector<16x8xf32>
    %188 = arith.truncf %187 : vector<16x8xf32> to vector<16x8xbf16>
    %cst_57 = arith.constant dense<0.000000e+00> : vector<16x16xf32>
    %189 = tpu.matmul %186, %188, %cst_57 {dimension_numbers = #tpu.dot_dimension_numbers<[1], [1], [0], [0], [0, 0, 1, 0], [], []>} : vector<16x8xbf16>, vector<16x8xbf16>, vector<16x16xf32> -> vector<16x16xf32>
    %cst_58 = arith.constant 0.353553385 : f32
    %190 = vector.broadcast %cst_58 : f32 to vector<16x16xf32>
    %191 = arith.mulf %189, %190 : vector<16x16xf32>
    %192 = arith.addf %191, %28 : vector<16x16xf32>
    %cst_59 = arith.constant dense<0xFF800000> : vector<16xf32>
    %193 = vector.multi_reduction <maximumf>, %192, %cst_59 [1] : vector<16x16xf32> to vector<16xf32>
    %194 = vector.shape_cast %193 : vector<16xf32> to vector<16x1xf32>
    %195 = vector.broadcast %194 : vector<16x1xf32> to vector<16x16xf32>
    %196 = arith.subf %192, %195 : vector<16x16xf32>
    %197 = math.exp %196 : vector<16x16xf32>
    %cst_60 = arith.constant dense<0.000000e+00> : vector<16xf32>
    %198 = vector.multi_reduction <add>, %197, %cst_60 [1] : vector<16x16xf32> to vector<16xf32>
    %199 = vector.shape_cast %198 : vector<16xf32> to vector<16x1xf32>
    %200 = tpu.reciprocal %199 {approx = true} : vector<16x1xf32> -> vector<16x1xf32>
    %201 = vector.broadcast %200 : vector<16x1xf32> to vector<16x16xf32>
    %202 = arith.mulf %197, %201 : vector<16x16xf32>
    %203 = arith.truncf %202 : vector<16x16xf32> to vector<16x16xbf16>
    %204 = vector.extract_strided_slice %107 {offsets = [0, 24], sizes = [16, 8], strides = [1, 1]} : vector<16x32xf32> to vector<16x8xf32>
    %205 = arith.truncf %204 : vector<16x8xf32> to vector<16x8xbf16>
    %cst_61 = arith.constant dense<0.000000e+00> : vector<16x8xf32>
    %206 = tpu.matmul %203, %205, %cst_61 {dimension_numbers = #tpu.dot_dimension_numbers<[1], [0], [0], [1], [0, 0, 1, 1], [], []>} : vector<16x16xbf16>, vector<16x8xbf16>, vector<16x8xf32> -> vector<16x8xf32>
    %207 = arith.truncf %206 : vector<16x8xf32> to vector<16x8xbf16>
    %208 = vector.extract_strided_slice %97 {offsets = [24, 96], sizes = [8, 32], strides = [1, 1]} : vector<32x128xbf16> to vector<8x32xbf16>
    %cst_62 = arith.constant dense<0.000000e+00> : vector<16x32xf32>
    %209 = tpu.matmul %207, %208, %cst_62 {dimension_numbers = #tpu.dot_dimension_numbers<[1], [0], [0], [1], [0, 0, 1, 1], [], []>} : vector<16x8xbf16>, vector<8x32xbf16>, vector<16x32xf32> -> vector<16x32xf32>
    %210 = arith.addf %184, %209 : vector<16x32xf32>
    %211 = vector.extract_strided_slice %98 {offsets = [0, 96], sizes = [1, 32], strides = [1, 1]} : vector<1x128xf32> to vector<1x32xf32>
    %212 = vector.broadcast %211 : vector<1x32xf32> to vector<16x32xf32>
    %213 = arith.addf %210, %212 : vector<16x32xf32>
    %214 = arith.addf %71, %213 : vector<16x32xf32>
    %215 = vector.extract_strided_slice %0 {offsets = [2, 0], sizes = [1, 32], strides = [1, 1]} : vector<58x128xf32> to vector<1x32xf32>
    %216 = vector.extract_strided_slice %0 {offsets = [11, 0], sizes = [1, 32], strides = [1, 1]} : vector<58x128xf32> to vector<1x32xf32>
    %cst_63 = arith.constant dense<0.000000e+00> : vector<16xf32>
    %217 = vector.multi_reduction <add>, %214, %cst_63 [1] : vector<16x32xf32> to vector<16xf32>
    %218 = vector.shape_cast %217 : vector<16xf32> to vector<16x1xf32>
    %cst_64 = arith.constant 3.200000e+01 : f32
    %219 = vector.broadcast %cst_64 : f32 to vector<16x1xf32>
    %220 = arith.divf %218, %219 : vector<16x1xf32>
    %221 = vector.broadcast %220 : vector<16x1xf32> to vector<16x32xf32>
    %222 = arith.subf %214, %221 : vector<16x32xf32>
    %223 = arith.mulf %222, %222 : vector<16x32xf32>
    %cst_65 = arith.constant dense<0.000000e+00> : vector<16xf32>
    %224 = vector.multi_reduction <add>, %223, %cst_65 [1] : vector<16x32xf32> to vector<16xf32>
    %225 = vector.shape_cast %224 : vector<16xf32> to vector<16x1xf32>
    %cst_66 = arith.constant 3.200000e+01 : f32
    %226 = vector.broadcast %cst_66 : f32 to vector<16x1xf32>
    %227 = arith.divf %225, %226 : vector<16x1xf32>
    %228 = vector.broadcast %220 : vector<16x1xf32> to vector<16x32xf32>
    %229 = arith.subf %214, %228 : vector<16x32xf32>
    %cst_67 = arith.constant 9.99999974E-6 : f32
    %230 = vector.broadcast %cst_67 : f32 to vector<16x1xf32>
    %231 = arith.addf %227, %230 : vector<16x1xf32>
    %232 = math.rsqrt %231 : vector<16x1xf32>
    %233 = vector.broadcast %232 : vector<16x1xf32> to vector<16x32xf32>
    %234 = arith.mulf %229, %233 : vector<16x32xf32>
    %235 = vector.broadcast %215 : vector<1x32xf32> to vector<16x32xf32>
    %236 = arith.mulf %234, %235 : vector<16x32xf32>
    %237 = vector.broadcast %216 : vector<1x32xf32> to vector<16x32xf32>
    %238 = arith.addf %236, %237 : vector<16x32xf32>
    %c0_68 = arith.constant 0 : index
    %c0_69 = arith.constant 0 : index
    %c0_70 = arith.constant 0 : index
    %239 = vector.load %arg6[%c0_68, %c0_69, %c0_70] : memref<2x96x64xbf16, #tpu.memory_space<vmem>>, vector<1x96x64xbf16>
    %240 = vector.shape_cast %239 : vector<1x96x64xbf16> to vector<96x64xbf16>
    %241 = vector.extract_strided_slice %0 {offsets = [21, 0], sizes = [1, 64], strides = [1, 1]} : vector<58x128xf32> to vector<1x64xf32>
    %242 = vector.extract_strided_slice %0 {offsets = [23, 0], sizes = [1, 32], strides = [1, 1]} : vector<58x128xf32> to vector<1x32xf32>
    %243 = arith.truncf %238 : vector<16x32xf32> to vector<16x32xbf16>
    %244 = vector.extract_strided_slice %240 {offsets = [0, 0], sizes = [32, 64], strides = [1, 1]} : vector<96x64xbf16> to vector<32x64xbf16>
    %cst_71 = arith.constant dense<0.000000e+00> : vector<16x64xf32>
    %245 = tpu.matmul %243, %244, %cst_71 {dimension_numbers = #tpu.dot_dimension_numbers<[1], [0], [0], [1], [0, 0, 1, 1], [], []>} : vector<16x32xbf16>, vector<32x64xbf16>, vector<16x64xf32> -> vector<16x64xf32>
    %246 = vector.broadcast %241 : vector<1x64xf32> to vector<16x64xf32>
    %247 = arith.addf %245, %246 : vector<16x64xf32>
    %cst_72 = arith.constant 5.000000e-01 : f32
    %248 = vector.broadcast %cst_72 : f32 to vector<16x64xf32>
    %249 = arith.mulf %248, %247 : vector<16x64xf32>
    %cst_73 = arith.constant 4.471500e-02 : f32
    %250 = vector.broadcast %cst_73 : f32 to vector<16x64xf32>
    %251 = arith.mulf %250, %247 : vector<16x64xf32>
    %252 = arith.mulf %251, %247 : vector<16x64xf32>
    %253 = arith.mulf %252, %247 : vector<16x64xf32>
    %254 = arith.addf %247, %253 : vector<16x64xf32>
    %cst_74 = arith.constant 0.797884583 : f32
    %255 = vector.broadcast %cst_74 : f32 to vector<16x64xf32>
    %256 = arith.mulf %255, %254 : vector<16x64xf32>
    %257 = math.tanh %256 : vector<16x64xf32>
    %cst_75 = arith.constant 1.000000e+00 : f32
    %258 = vector.broadcast %cst_75 : f32 to vector<16x64xf32>
    %259 = arith.addf %258, %257 : vector<16x64xf32>
    %260 = arith.mulf %249, %259 : vector<16x64xf32>
    %261 = arith.truncf %260 : vector<16x64xf32> to vector<16x64xbf16>
    %262 = vector.extract_strided_slice %240 {offsets = [32, 0], sizes = [64, 32], strides = [1, 1]} : vector<96x64xbf16> to vector<64x32xbf16>
    %cst_76 = arith.constant dense<0.000000e+00> : vector<16x32xf32>
    %263 = tpu.matmul %261, %262, %cst_76 {dimension_numbers = #tpu.dot_dimension_numbers<[1], [0], [0], [1], [0, 0, 1, 1], [], []>} : vector<16x64xbf16>, vector<64x32xbf16>, vector<16x32xf32> -> vector<16x32xf32>
    %264 = vector.broadcast %242 : vector<1x32xf32> to vector<16x32xf32>
    %265 = arith.addf %263, %264 : vector<16x32xf32>
    %266 = arith.addf %214, %265 : vector<16x32xf32>
    %267 = vector.extract_strided_slice %0 {offsets = [3, 0], sizes = [1, 32], strides = [1, 1]} : vector<58x128xf32> to vector<1x32xf32>
    %268 = vector.extract_strided_slice %0 {offsets = [12, 0], sizes = [1, 32], strides = [1, 1]} : vector<58x128xf32> to vector<1x32xf32>
    %cst_77 = arith.constant dense<0.000000e+00> : vector<16xf32>
    %269 = vector.multi_reduction <add>, %266, %cst_77 [1] : vector<16x32xf32> to vector<16xf32>
    %270 = vector.shape_cast %269 : vector<16xf32> to vector<16x1xf32>
    %cst_78 = arith.constant 3.200000e+01 : f32
    %271 = vector.broadcast %cst_78 : f32 to vector<16x1xf32>
    %272 = arith.divf %270, %271 : vector<16x1xf32>
    %273 = vector.broadcast %272 : vector<16x1xf32> to vector<16x32xf32>
    %274 = arith.subf %266, %273 : vector<16x32xf32>
    %275 = arith.mulf %274, %274 : vector<16x32xf32>
    %cst_79 = arith.constant dense<0.000000e+00> : vector<16xf32>
    %276 = vector.multi_reduction <add>, %275, %cst_79 [1] : vector<16x32xf32> to vector<16xf32>
    %277 = vector.shape_cast %276 : vector<16xf32> to vector<16x1xf32>
    %cst_80 = arith.constant 3.200000e+01 : f32
    %278 = vector.broadcast %cst_80 : f32 to vector<16x1xf32>
    %279 = arith.divf %277, %278 : vector<16x1xf32>
    %280 = vector.broadcast %272 : vector<16x1xf32> to vector<16x32xf32>
    %281 = arith.subf %266, %280 : vector<16x32xf32>
    %cst_81 = arith.constant 9.99999974E-6 : f32
    %282 = vector.broadcast %cst_81 : f32 to vector<16x1xf32>
    %283 = arith.addf %279, %282 : vector<16x1xf32>
    %284 = math.rsqrt %283 : vector<16x1xf32>
    %285 = vector.broadcast %284 : vector<16x1xf32> to vector<16x32xf32>
    %286 = arith.mulf %281, %285 : vector<16x32xf32>
    %287 = vector.broadcast %267 : vector<1x32xf32> to vector<16x32xf32>
    %288 = arith.mulf %286, %287 : vector<16x32xf32>
    %289 = vector.broadcast %268 : vector<1x32xf32> to vector<16x32xf32>
    %290 = arith.addf %288, %289 : vector<16x32xf32>
    %291 = vector.broadcast %35 : vector<16x1xi32> to vector<16x128xi32>
    %292 = arith.cmpi eq, %3, %291 : vector<16x128xi32>
    %cst_82 = arith.constant 1.000000e+00 : f32
    %cst_83 = arith.constant 0.000000e+00 : f32
    %293 = vector.broadcast %cst_82 : f32 to vector<16x128xf32>
    %294 = vector.broadcast %cst_83 : f32 to vector<16x128xf32>
    %295 = arith.select %292, %293, %294 : vector<16x128xi1>, vector<16x128xf32>
    %296 = arith.truncf %295 : vector<16x128xf32> to vector<16x128xbf16>
    %cst_84 = arith.constant dense<0.000000e+00> : vector<16x32xf32>
    %297 = tpu.matmul %296, %1, %cst_84 {dimension_numbers = #tpu.dot_dimension_numbers<[1], [0], [0], [1], [0, 0, 1, 1], [], []>} : vector<16x128xbf16>, vector<128x32xbf16>, vector<16x32xf32> -> vector<16x32xf32>
    %cst_85 = arith.constant 5.65685415 : f32
    %298 = vector.broadcast %cst_85 : f32 to vector<16x32xf32>
    %299 = arith.mulf %297, %298 : vector<16x32xf32>
    %300 = arith.addf %299, %31 : vector<16x32xf32>
    %301 = vector.extract_strided_slice %0 {offsets = [4, 0], sizes = [1, 32], strides = [1, 1]} : vector<58x128xf32> to vector<1x32xf32>
    %302 = vector.extract_strided_slice %0 {offsets = [13, 0], sizes = [1, 32], strides = [1, 1]} : vector<58x128xf32> to vector<1x32xf32>
    %cst_86 = arith.constant dense<0.000000e+00> : vector<16xf32>
    %303 = vector.multi_reduction <add>, %300, %cst_86 [1] : vector<16x32xf32> to vector<16xf32>
    %304 = vector.shape_cast %303 : vector<16xf32> to vector<16x1xf32>
    %cst_87 = arith.constant 3.200000e+01 : f32
    %305 = vector.broadcast %cst_87 : f32 to vector<16x1xf32>
    %306 = arith.divf %304, %305 : vector<16x1xf32>
    %307 = vector.broadcast %306 : vector<16x1xf32> to vector<16x32xf32>
    %308 = arith.subf %300, %307 : vector<16x32xf32>
    %309 = arith.mulf %308, %308 : vector<16x32xf32>
    %cst_88 = arith.constant dense<0.000000e+00> : vector<16xf32>
    %310 = vector.multi_reduction <add>, %309, %cst_88 [1] : vector<16x32xf32> to vector<16xf32>
    %311 = vector.shape_cast %310 : vector<16xf32> to vector<16x1xf32>
    %cst_89 = arith.constant 3.200000e+01 : f32
    %312 = vector.broadcast %cst_89 : f32 to vector<16x1xf32>
    %313 = arith.divf %311, %312 : vector<16x1xf32>
    %314 = vector.broadcast %306 : vector<16x1xf32> to vector<16x32xf32>
    %315 = arith.subf %300, %314 : vector<16x32xf32>
    %cst_90 = arith.constant 9.99999974E-6 : f32
    %316 = vector.broadcast %cst_90 : f32 to vector<16x1xf32>
    %317 = arith.addf %313, %316 : vector<16x1xf32>
    %318 = math.rsqrt %317 : vector<16x1xf32>
    %319 = vector.broadcast %318 : vector<16x1xf32> to vector<16x32xf32>
    %320 = arith.mulf %315, %319 : vector<16x32xf32>
    %321 = vector.broadcast %301 : vector<1x32xf32> to vector<16x32xf32>
    %322 = arith.mulf %320, %321 : vector<16x32xf32>
    %323 = vector.broadcast %302 : vector<1x32xf32> to vector<16x32xf32>
    %324 = arith.addf %322, %323 : vector<16x32xf32>
    %325 = vector.extract_strided_slice %0 {offsets = [5, 0], sizes = [1, 32], strides = [1, 1]} : vector<58x128xf32> to vector<1x32xf32>
    %326 = vector.extract_strided_slice %0 {offsets = [14, 0], sizes = [1, 32], strides = [1, 1]} : vector<58x128xf32> to vector<1x32xf32>
    %cst_91 = arith.constant dense<0.000000e+00> : vector<16xf32>
    %327 = vector.multi_reduction <add>, %324, %cst_91 [1] : vector<16x32xf32> to vector<16xf32>
    %328 = vector.shape_cast %327 : vector<16xf32> to vector<16x1xf32>
    %cst_92 = arith.constant 3.200000e+01 : f32
    %329 = vector.broadcast %cst_92 : f32 to vector<16x1xf32>
    %330 = arith.divf %328, %329 : vector<16x1xf32>
    %331 = vector.broadcast %330 : vector<16x1xf32> to vector<16x32xf32>
    %332 = arith.subf %324, %331 : vector<16x32xf32>
    %333 = arith.mulf %332, %332 : vector<16x32xf32>
    %cst_93 = arith.constant dense<0.000000e+00> : vector<16xf32>
    %334 = vector.multi_reduction <add>, %333, %cst_93 [1] : vector<16x32xf32> to vector<16xf32>
    %335 = vector.shape_cast %334 : vector<16xf32> to vector<16x1xf32>
    %cst_94 = arith.constant 3.200000e+01 : f32
    %336 = vector.broadcast %cst_94 : f32 to vector<16x1xf32>
    %337 = arith.divf %335, %336 : vector<16x1xf32>
    %338 = vector.broadcast %330 : vector<16x1xf32> to vector<16x32xf32>
    %339 = arith.subf %324, %338 : vector<16x32xf32>
    %cst_95 = arith.constant 9.99999974E-6 : f32
    %340 = vector.broadcast %cst_95 : f32 to vector<16x1xf32>
    %341 = arith.addf %337, %340 : vector<16x1xf32>
    %342 = math.rsqrt %341 : vector<16x1xf32>
    %343 = vector.broadcast %342 : vector<16x1xf32> to vector<16x32xf32>
    %344 = arith.mulf %339, %343 : vector<16x32xf32>
    %345 = vector.broadcast %325 : vector<1x32xf32> to vector<16x32xf32>
    %346 = arith.mulf %344, %345 : vector<16x32xf32>
    %347 = vector.broadcast %326 : vector<1x32xf32> to vector<16x32xf32>
    %348 = arith.addf %346, %347 : vector<16x32xf32>
    %c1_96 = arith.constant 1 : index
    %c0_97 = arith.constant 0 : index
    %c0_98 = arith.constant 0 : index
    %349 = vector.load %arg5[%c1_96, %c0_97, %c0_98] : memref<3x32x128xbf16, #tpu.memory_space<vmem>>, vector<1x32x128xbf16>
    %350 = vector.shape_cast %349 : vector<1x32x128xbf16> to vector<32x128xbf16>
    %351 = vector.extract_strided_slice %0 {offsets = [19, 0], sizes = [1, 128], strides = [1, 1]} : vector<58x128xf32> to vector<1x128xf32>
    %352 = arith.truncf %348 : vector<16x32xf32> to vector<16x32xbf16>
    %353 = vector.extract_strided_slice %350 {offsets = [0, 0], sizes = [32, 96], strides = [1, 1]} : vector<32x128xbf16> to vector<32x96xbf16>
    %cst_99 = arith.constant dense<0.000000e+00> : vector<16x96xf32>
    %354 = tpu.matmul %352, %353, %cst_99 {dimension_numbers = #tpu.dot_dimension_numbers<[1], [0], [0], [1], [0, 0, 1, 1], [], []>} : vector<16x32xbf16>, vector<32x96xbf16>, vector<16x96xf32> -> vector<16x96xf32>
    %355 = vector.extract_strided_slice %351 {offsets = [0, 0], sizes = [1, 96], strides = [1, 1]} : vector<1x128xf32> to vector<1x96xf32>
    %356 = vector.broadcast %355 : vector<1x96xf32> to vector<16x96xf32>
    %357 = arith.addf %354, %356 : vector<16x96xf32>
    %358 = vector.extract_strided_slice %357 {offsets = [0, 0], sizes = [16, 32], strides = [1, 1]} : vector<16x96xf32> to vector<16x32xf32>
    %359 = vector.extract_strided_slice %357 {offsets = [0, 32], sizes = [16, 32], strides = [1, 1]} : vector<16x96xf32> to vector<16x32xf32>
    %360 = vector.extract_strided_slice %357 {offsets = [0, 64], sizes = [16, 32], strides = [1, 1]} : vector<16x96xf32> to vector<16x32xf32>
    %361 = vector.extract_strided_slice %358 {offsets = [0, 0], sizes = [16, 8], strides = [1, 1]} : vector<16x32xf32> to vector<16x8xf32>
    %362 = arith.truncf %361 : vector<16x8xf32> to vector<16x8xbf16>
    %363 = vector.extract_strided_slice %359 {offsets = [0, 0], sizes = [16, 8], strides = [1, 1]} : vector<16x32xf32> to vector<16x8xf32>
    %364 = arith.truncf %363 : vector<16x8xf32> to vector<16x8xbf16>
    %cst_100 = arith.constant dense<0.000000e+00> : vector<16x16xf32>
    %365 = tpu.matmul %362, %364, %cst_100 {dimension_numbers = #tpu.dot_dimension_numbers<[1], [1], [0], [0], [0, 0, 1, 0], [], []>} : vector<16x8xbf16>, vector<16x8xbf16>, vector<16x16xf32> -> vector<16x16xf32>
    %cst_101 = arith.constant 0.353553385 : f32
    %366 = vector.broadcast %cst_101 : f32 to vector<16x16xf32>
    %367 = arith.mulf %365, %366 : vector<16x16xf32>
    %368 = arith.addf %367, %29 : vector<16x16xf32>
    %cst_102 = arith.constant dense<0xFF800000> : vector<16xf32>
    %369 = vector.multi_reduction <maximumf>, %368, %cst_102 [1] : vector<16x16xf32> to vector<16xf32>
    %370 = vector.shape_cast %369 : vector<16xf32> to vector<16x1xf32>
    %371 = vector.broadcast %370 : vector<16x1xf32> to vector<16x16xf32>
    %372 = arith.subf %368, %371 : vector<16x16xf32>
    %373 = math.exp %372 : vector<16x16xf32>
    %cst_103 = arith.constant dense<0.000000e+00> : vector<16xf32>
    %374 = vector.multi_reduction <add>, %373, %cst_103 [1] : vector<16x16xf32> to vector<16xf32>
    %375 = vector.shape_cast %374 : vector<16xf32> to vector<16x1xf32>
    %376 = tpu.reciprocal %375 {approx = true} : vector<16x1xf32> -> vector<16x1xf32>
    %377 = vector.broadcast %376 : vector<16x1xf32> to vector<16x16xf32>
    %378 = arith.mulf %373, %377 : vector<16x16xf32>
    %379 = arith.truncf %378 : vector<16x16xf32> to vector<16x16xbf16>
    %380 = vector.extract_strided_slice %360 {offsets = [0, 0], sizes = [16, 8], strides = [1, 1]} : vector<16x32xf32> to vector<16x8xf32>
    %381 = arith.truncf %380 : vector<16x8xf32> to vector<16x8xbf16>
    %cst_104 = arith.constant dense<0.000000e+00> : vector<16x8xf32>
    %382 = tpu.matmul %379, %381, %cst_104 {dimension_numbers = #tpu.dot_dimension_numbers<[1], [0], [0], [1], [0, 0, 1, 1], [], []>} : vector<16x16xbf16>, vector<16x8xbf16>, vector<16x8xf32> -> vector<16x8xf32>
    %383 = arith.truncf %382 : vector<16x8xf32> to vector<16x8xbf16>
    %384 = vector.extract_strided_slice %350 {offsets = [0, 96], sizes = [8, 32], strides = [1, 1]} : vector<32x128xbf16> to vector<8x32xbf16>
    %cst_105 = arith.constant dense<0.000000e+00> : vector<16x32xf32>
    %385 = tpu.matmul %383, %384, %cst_105 {dimension_numbers = #tpu.dot_dimension_numbers<[1], [0], [0], [1], [0, 0, 1, 1], [], []>} : vector<16x8xbf16>, vector<8x32xbf16>, vector<16x32xf32> -> vector<16x32xf32>
    %386 = vector.extract_strided_slice %358 {offsets = [0, 8], sizes = [16, 8], strides = [1, 1]} : vector<16x32xf32> to vector<16x8xf32>
    %387 = arith.truncf %386 : vector<16x8xf32> to vector<16x8xbf16>
    %388 = vector.extract_strided_slice %359 {offsets = [0, 8], sizes = [16, 8], strides = [1, 1]} : vector<16x32xf32> to vector<16x8xf32>
    %389 = arith.truncf %388 : vector<16x8xf32> to vector<16x8xbf16>
    %cst_106 = arith.constant dense<0.000000e+00> : vector<16x16xf32>
    %390 = tpu.matmul %387, %389, %cst_106 {dimension_numbers = #tpu.dot_dimension_numbers<[1], [1], [0], [0], [0, 0, 1, 0], [], []>} : vector<16x8xbf16>, vector<16x8xbf16>, vector<16x16xf32> -> vector<16x16xf32>
    %cst_107 = arith.constant 0.353553385 : f32
    %391 = vector.broadcast %cst_107 : f32 to vector<16x16xf32>
    %392 = arith.mulf %390, %391 : vector<16x16xf32>
    %393 = arith.addf %392, %29 : vector<16x16xf32>
    %cst_108 = arith.constant dense<0xFF800000> : vector<16xf32>
    %394 = vector.multi_reduction <maximumf>, %393, %cst_108 [1] : vector<16x16xf32> to vector<16xf32>
    %395 = vector.shape_cast %394 : vector<16xf32> to vector<16x1xf32>
    %396 = vector.broadcast %395 : vector<16x1xf32> to vector<16x16xf32>
    %397 = arith.subf %393, %396 : vector<16x16xf32>
    %398 = math.exp %397 : vector<16x16xf32>
    %cst_109 = arith.constant dense<0.000000e+00> : vector<16xf32>
    %399 = vector.multi_reduction <add>, %398, %cst_109 [1] : vector<16x16xf32> to vector<16xf32>
    %400 = vector.shape_cast %399 : vector<16xf32> to vector<16x1xf32>
    %401 = tpu.reciprocal %400 {approx = true} : vector<16x1xf32> -> vector<16x1xf32>
    %402 = vector.broadcast %401 : vector<16x1xf32> to vector<16x16xf32>
    %403 = arith.mulf %398, %402 : vector<16x16xf32>
    %404 = arith.truncf %403 : vector<16x16xf32> to vector<16x16xbf16>
    %405 = vector.extract_strided_slice %360 {offsets = [0, 8], sizes = [16, 8], strides = [1, 1]} : vector<16x32xf32> to vector<16x8xf32>
    %406 = arith.truncf %405 : vector<16x8xf32> to vector<16x8xbf16>
    %cst_110 = arith.constant dense<0.000000e+00> : vector<16x8xf32>
    %407 = tpu.matmul %404, %406, %cst_110 {dimension_numbers = #tpu.dot_dimension_numbers<[1], [0], [0], [1], [0, 0, 1, 1], [], []>} : vector<16x16xbf16>, vector<16x8xbf16>, vector<16x8xf32> -> vector<16x8xf32>
    %408 = arith.truncf %407 : vector<16x8xf32> to vector<16x8xbf16>
    %409 = vector.extract_strided_slice %350 {offsets = [8, 96], sizes = [8, 32], strides = [1, 1]} : vector<32x128xbf16> to vector<8x32xbf16>
    %cst_111 = arith.constant dense<0.000000e+00> : vector<16x32xf32>
    %410 = tpu.matmul %408, %409, %cst_111 {dimension_numbers = #tpu.dot_dimension_numbers<[1], [0], [0], [1], [0, 0, 1, 1], [], []>} : vector<16x8xbf16>, vector<8x32xbf16>, vector<16x32xf32> -> vector<16x32xf32>
    %411 = arith.addf %385, %410 : vector<16x32xf32>
    %412 = vector.extract_strided_slice %358 {offsets = [0, 16], sizes = [16, 8], strides = [1, 1]} : vector<16x32xf32> to vector<16x8xf32>
    %413 = arith.truncf %412 : vector<16x8xf32> to vector<16x8xbf16>
    %414 = vector.extract_strided_slice %359 {offsets = [0, 16], sizes = [16, 8], strides = [1, 1]} : vector<16x32xf32> to vector<16x8xf32>
    %415 = arith.truncf %414 : vector<16x8xf32> to vector<16x8xbf16>
    %cst_112 = arith.constant dense<0.000000e+00> : vector<16x16xf32>
    %416 = tpu.matmul %413, %415, %cst_112 {dimension_numbers = #tpu.dot_dimension_numbers<[1], [1], [0], [0], [0, 0, 1, 0], [], []>} : vector<16x8xbf16>, vector<16x8xbf16>, vector<16x16xf32> -> vector<16x16xf32>
    %cst_113 = arith.constant 0.353553385 : f32
    %417 = vector.broadcast %cst_113 : f32 to vector<16x16xf32>
    %418 = arith.mulf %416, %417 : vector<16x16xf32>
    %419 = arith.addf %418, %29 : vector<16x16xf32>
    %cst_114 = arith.constant dense<0xFF800000> : vector<16xf32>
    %420 = vector.multi_reduction <maximumf>, %419, %cst_114 [1] : vector<16x16xf32> to vector<16xf32>
    %421 = vector.shape_cast %420 : vector<16xf32> to vector<16x1xf32>
    %422 = vector.broadcast %421 : vector<16x1xf32> to vector<16x16xf32>
    %423 = arith.subf %419, %422 : vector<16x16xf32>
    %424 = math.exp %423 : vector<16x16xf32>
    %cst_115 = arith.constant dense<0.000000e+00> : vector<16xf32>
    %425 = vector.multi_reduction <add>, %424, %cst_115 [1] : vector<16x16xf32> to vector<16xf32>
    %426 = vector.shape_cast %425 : vector<16xf32> to vector<16x1xf32>
    %427 = tpu.reciprocal %426 {approx = true} : vector<16x1xf32> -> vector<16x1xf32>
    %428 = vector.broadcast %427 : vector<16x1xf32> to vector<16x16xf32>
    %429 = arith.mulf %424, %428 : vector<16x16xf32>
    %430 = arith.truncf %429 : vector<16x16xf32> to vector<16x16xbf16>
    %431 = vector.extract_strided_slice %360 {offsets = [0, 16], sizes = [16, 8], strides = [1, 1]} : vector<16x32xf32> to vector<16x8xf32>
    %432 = arith.truncf %431 : vector<16x8xf32> to vector<16x8xbf16>
    %cst_116 = arith.constant dense<0.000000e+00> : vector<16x8xf32>
    %433 = tpu.matmul %430, %432, %cst_116 {dimension_numbers = #tpu.dot_dimension_numbers<[1], [0], [0], [1], [0, 0, 1, 1], [], []>} : vector<16x16xbf16>, vector<16x8xbf16>, vector<16x8xf32> -> vector<16x8xf32>
    %434 = arith.truncf %433 : vector<16x8xf32> to vector<16x8xbf16>
    %435 = vector.extract_strided_slice %350 {offsets = [16, 96], sizes = [8, 32], strides = [1, 1]} : vector<32x128xbf16> to vector<8x32xbf16>
    %cst_117 = arith.constant dense<0.000000e+00> : vector<16x32xf32>
    %436 = tpu.matmul %434, %435, %cst_117 {dimension_numbers = #tpu.dot_dimension_numbers<[1], [0], [0], [1], [0, 0, 1, 1], [], []>} : vector<16x8xbf16>, vector<8x32xbf16>, vector<16x32xf32> -> vector<16x32xf32>
    %437 = arith.addf %411, %436 : vector<16x32xf32>
    %438 = vector.extract_strided_slice %358 {offsets = [0, 24], sizes = [16, 8], strides = [1, 1]} : vector<16x32xf32> to vector<16x8xf32>
    %439 = arith.truncf %438 : vector<16x8xf32> to vector<16x8xbf16>
    %440 = vector.extract_strided_slice %359 {offsets = [0, 24], sizes = [16, 8], strides = [1, 1]} : vector<16x32xf32> to vector<16x8xf32>
    %441 = arith.truncf %440 : vector<16x8xf32> to vector<16x8xbf16>
    %cst_118 = arith.constant dense<0.000000e+00> : vector<16x16xf32>
    %442 = tpu.matmul %439, %441, %cst_118 {dimension_numbers = #tpu.dot_dimension_numbers<[1], [1], [0], [0], [0, 0, 1, 0], [], []>} : vector<16x8xbf16>, vector<16x8xbf16>, vector<16x16xf32> -> vector<16x16xf32>
    %cst_119 = arith.constant 0.353553385 : f32
    %443 = vector.broadcast %cst_119 : f32 to vector<16x16xf32>
    %444 = arith.mulf %442, %443 : vector<16x16xf32>
    %445 = arith.addf %444, %29 : vector<16x16xf32>
    %cst_120 = arith.constant dense<0xFF800000> : vector<16xf32>
    %446 = vector.multi_reduction <maximumf>, %445, %cst_120 [1] : vector<16x16xf32> to vector<16xf32>
    %447 = vector.shape_cast %446 : vector<16xf32> to vector<16x1xf32>
    %448 = vector.broadcast %447 : vector<16x1xf32> to vector<16x16xf32>
    %449 = arith.subf %445, %448 : vector<16x16xf32>
    %450 = math.exp %449 : vector<16x16xf32>
    %cst_121 = arith.constant dense<0.000000e+00> : vector<16xf32>
    %451 = vector.multi_reduction <add>, %450, %cst_121 [1] : vector<16x16xf32> to vector<16xf32>
    %452 = vector.shape_cast %451 : vector<16xf32> to vector<16x1xf32>
    %453 = tpu.reciprocal %452 {approx = true} : vector<16x1xf32> -> vector<16x1xf32>
    %454 = vector.broadcast %453 : vector<16x1xf32> to vector<16x16xf32>
    %455 = arith.mulf %450, %454 : vector<16x16xf32>
    %456 = arith.truncf %455 : vector<16x16xf32> to vector<16x16xbf16>
    %457 = vector.extract_strided_slice %360 {offsets = [0, 24], sizes = [16, 8], strides = [1, 1]} : vector<16x32xf32> to vector<16x8xf32>
    %458 = arith.truncf %457 : vector<16x8xf32> to vector<16x8xbf16>
    %cst_122 = arith.constant dense<0.000000e+00> : vector<16x8xf32>
    %459 = tpu.matmul %456, %458, %cst_122 {dimension_numbers = #tpu.dot_dimension_numbers<[1], [0], [0], [1], [0, 0, 1, 1], [], []>} : vector<16x16xbf16>, vector<16x8xbf16>, vector<16x8xf32> -> vector<16x8xf32>
    %460 = arith.truncf %459 : vector<16x8xf32> to vector<16x8xbf16>
    %461 = vector.extract_strided_slice %350 {offsets = [24, 96], sizes = [8, 32], strides = [1, 1]} : vector<32x128xbf16> to vector<8x32xbf16>
    %cst_123 = arith.constant dense<0.000000e+00> : vector<16x32xf32>
    %462 = tpu.matmul %460, %461, %cst_123 {dimension_numbers = #tpu.dot_dimension_numbers<[1], [0], [0], [1], [0, 0, 1, 1], [], []>} : vector<16x8xbf16>, vector<8x32xbf16>, vector<16x32xf32> -> vector<16x32xf32>
    %463 = arith.addf %437, %462 : vector<16x32xf32>
    %464 = vector.extract_strided_slice %351 {offsets = [0, 96], sizes = [1, 32], strides = [1, 1]} : vector<1x128xf32> to vector<1x32xf32>
    %465 = vector.broadcast %464 : vector<1x32xf32> to vector<16x32xf32>
    %466 = arith.addf %463, %465 : vector<16x32xf32>
    %467 = arith.addf %324, %466 : vector<16x32xf32>
    %468 = vector.extract_strided_slice %0 {offsets = [6, 0], sizes = [1, 32], strides = [1, 1]} : vector<58x128xf32> to vector<1x32xf32>
    %469 = vector.extract_strided_slice %0 {offsets = [15, 0], sizes = [1, 32], strides = [1, 1]} : vector<58x128xf32> to vector<1x32xf32>
    %cst_124 = arith.constant dense<0.000000e+00> : vector<16xf32>
    %470 = vector.multi_reduction <add>, %467, %cst_124 [1] : vector<16x32xf32> to vector<16xf32>
    %471 = vector.shape_cast %470 : vector<16xf32> to vector<16x1xf32>
    %cst_125 = arith.constant 3.200000e+01 : f32
    %472 = vector.broadcast %cst_125 : f32 to vector<16x1xf32>
    %473 = arith.divf %471, %472 : vector<16x1xf32>
    %474 = vector.broadcast %473 : vector<16x1xf32> to vector<16x32xf32>
    %475 = arith.subf %467, %474 : vector<16x32xf32>
    %476 = arith.mulf %475, %475 : vector<16x32xf32>
    %cst_126 = arith.constant dense<0.000000e+00> : vector<16xf32>
    %477 = vector.multi_reduction <add>, %476, %cst_126 [1] : vector<16x32xf32> to vector<16xf32>
    %478 = vector.shape_cast %477 : vector<16xf32> to vector<16x1xf32>
    %cst_127 = arith.constant 3.200000e+01 : f32
    %479 = vector.broadcast %cst_127 : f32 to vector<16x1xf32>
    %480 = arith.divf %478, %479 : vector<16x1xf32>
    %481 = vector.broadcast %473 : vector<16x1xf32> to vector<16x32xf32>
    %482 = arith.subf %467, %481 : vector<16x32xf32>
    %cst_128 = arith.constant 9.99999974E-6 : f32
    %483 = vector.broadcast %cst_128 : f32 to vector<16x1xf32>
    %484 = arith.addf %480, %483 : vector<16x1xf32>
    %485 = math.rsqrt %484 : vector<16x1xf32>
    %486 = vector.broadcast %485 : vector<16x1xf32> to vector<16x32xf32>
    %487 = arith.mulf %482, %486 : vector<16x32xf32>
    %488 = vector.broadcast %468 : vector<1x32xf32> to vector<16x32xf32>
    %489 = arith.mulf %487, %488 : vector<16x32xf32>
    %490 = vector.broadcast %469 : vector<1x32xf32> to vector<16x32xf32>
    %491 = arith.addf %489, %490 : vector<16x32xf32>
    %c2_129 = arith.constant 2 : index
    %c0_130 = arith.constant 0 : index
    %c0_131 = arith.constant 0 : index
    %492 = vector.load %arg5[%c2_129, %c0_130, %c0_131] : memref<3x32x128xbf16, #tpu.memory_space<vmem>>, vector<1x32x128xbf16>
    %493 = vector.shape_cast %492 : vector<1x32x128xbf16> to vector<32x128xbf16>
    %494 = vector.extract_strided_slice %0 {offsets = [20, 0], sizes = [1, 128], strides = [1, 1]} : vector<58x128xf32> to vector<1x128xf32>
    %495 = arith.truncf %491 : vector<16x32xf32> to vector<16x32xbf16>
    %496 = vector.extract_strided_slice %493 {offsets = [0, 0], sizes = [32, 32], strides = [1, 1]} : vector<32x128xbf16> to vector<32x32xbf16>
    %cst_132 = arith.constant dense<0.000000e+00> : vector<16x32xf32>
    %497 = tpu.matmul %495, %496, %cst_132 {dimension_numbers = #tpu.dot_dimension_numbers<[1], [0], [0], [1], [0, 0, 1, 1], [], []>} : vector<16x32xbf16>, vector<32x32xbf16>, vector<16x32xf32> -> vector<16x32xf32>
    %498 = vector.extract_strided_slice %494 {offsets = [0, 0], sizes = [1, 32], strides = [1, 1]} : vector<1x128xf32> to vector<1x32xf32>
    %499 = vector.broadcast %498 : vector<1x32xf32> to vector<16x32xf32>
    %500 = arith.addf %497, %499 : vector<16x32xf32>
    %501 = arith.truncf %290 : vector<16x32xf32> to vector<16x32xbf16>
    %502 = vector.extract_strided_slice %493 {offsets = [0, 32], sizes = [32, 64], strides = [1, 1]} : vector<32x128xbf16> to vector<32x64xbf16>
    %cst_133 = arith.constant dense<0.000000e+00> : vector<16x64xf32>
    %503 = tpu.matmul %501, %502, %cst_133 {dimension_numbers = #tpu.dot_dimension_numbers<[1], [0], [0], [1], [0, 0, 1, 1], [], []>} : vector<16x32xbf16>, vector<32x64xbf16>, vector<16x64xf32> -> vector<16x64xf32>
    %504 = vector.extract_strided_slice %494 {offsets = [0, 32], sizes = [1, 64], strides = [1, 1]} : vector<1x128xf32> to vector<1x64xf32>
    %505 = vector.broadcast %504 : vector<1x64xf32> to vector<16x64xf32>
    %506 = arith.addf %503, %505 : vector<16x64xf32>
    %507 = vector.extract_strided_slice %506 {offsets = [0, 0], sizes = [16, 32], strides = [1, 1]} : vector<16x64xf32> to vector<16x32xf32>
    %508 = vector.extract_strided_slice %506 {offsets = [0, 32], sizes = [16, 32], strides = [1, 1]} : vector<16x64xf32> to vector<16x32xf32>
    %509 = vector.extract_strided_slice %500 {offsets = [0, 0], sizes = [16, 8], strides = [1, 1]} : vector<16x32xf32> to vector<16x8xf32>
    %510 = arith.truncf %509 : vector<16x8xf32> to vector<16x8xbf16>
    %511 = vector.extract_strided_slice %507 {offsets = [0, 0], sizes = [16, 8], strides = [1, 1]} : vector<16x32xf32> to vector<16x8xf32>
    %512 = arith.truncf %511 : vector<16x8xf32> to vector<16x8xbf16>
    %cst_134 = arith.constant dense<0.000000e+00> : vector<16x16xf32>
    %513 = tpu.matmul %510, %512, %cst_134 {dimension_numbers = #tpu.dot_dimension_numbers<[1], [1], [0], [0], [0, 0, 1, 0], [], []>} : vector<16x8xbf16>, vector<16x8xbf16>, vector<16x16xf32> -> vector<16x16xf32>
    %cst_135 = arith.constant 0.353553385 : f32
    %514 = vector.broadcast %cst_135 : f32 to vector<16x16xf32>
    %515 = arith.mulf %513, %514 : vector<16x16xf32>
    %516 = arith.addf %515, %28 : vector<16x16xf32>
    %cst_136 = arith.constant dense<0xFF800000> : vector<16xf32>
    %517 = vector.multi_reduction <maximumf>, %516, %cst_136 [1] : vector<16x16xf32> to vector<16xf32>
    %518 = vector.shape_cast %517 : vector<16xf32> to vector<16x1xf32>
    %519 = vector.broadcast %518 : vector<16x1xf32> to vector<16x16xf32>
    %520 = arith.subf %516, %519 : vector<16x16xf32>
    %521 = math.exp %520 : vector<16x16xf32>
    %cst_137 = arith.constant dense<0.000000e+00> : vector<16xf32>
    %522 = vector.multi_reduction <add>, %521, %cst_137 [1] : vector<16x16xf32> to vector<16xf32>
    %523 = vector.shape_cast %522 : vector<16xf32> to vector<16x1xf32>
    %524 = tpu.reciprocal %523 {approx = true} : vector<16x1xf32> -> vector<16x1xf32>
    %525 = vector.broadcast %524 : vector<16x1xf32> to vector<16x16xf32>
    %526 = arith.mulf %521, %525 : vector<16x16xf32>
    %527 = arith.truncf %526 : vector<16x16xf32> to vector<16x16xbf16>
    %528 = vector.extract_strided_slice %508 {offsets = [0, 0], sizes = [16, 8], strides = [1, 1]} : vector<16x32xf32> to vector<16x8xf32>
    %529 = arith.truncf %528 : vector<16x8xf32> to vector<16x8xbf16>
    %cst_138 = arith.constant dense<0.000000e+00> : vector<16x8xf32>
    %530 = tpu.matmul %527, %529, %cst_138 {dimension_numbers = #tpu.dot_dimension_numbers<[1], [0], [0], [1], [0, 0, 1, 1], [], []>} : vector<16x16xbf16>, vector<16x8xbf16>, vector<16x8xf32> -> vector<16x8xf32>
    %531 = arith.truncf %530 : vector<16x8xf32> to vector<16x8xbf16>
    %532 = vector.extract_strided_slice %493 {offsets = [0, 96], sizes = [8, 32], strides = [1, 1]} : vector<32x128xbf16> to vector<8x32xbf16>
    %cst_139 = arith.constant dense<0.000000e+00> : vector<16x32xf32>
    %533 = tpu.matmul %531, %532, %cst_139 {dimension_numbers = #tpu.dot_dimension_numbers<[1], [0], [0], [1], [0, 0, 1, 1], [], []>} : vector<16x8xbf16>, vector<8x32xbf16>, vector<16x32xf32> -> vector<16x32xf32>
    %534 = vector.extract_strided_slice %500 {offsets = [0, 8], sizes = [16, 8], strides = [1, 1]} : vector<16x32xf32> to vector<16x8xf32>
    %535 = arith.truncf %534 : vector<16x8xf32> to vector<16x8xbf16>
    %536 = vector.extract_strided_slice %507 {offsets = [0, 8], sizes = [16, 8], strides = [1, 1]} : vector<16x32xf32> to vector<16x8xf32>
    %537 = arith.truncf %536 : vector<16x8xf32> to vector<16x8xbf16>
    %cst_140 = arith.constant dense<0.000000e+00> : vector<16x16xf32>
    %538 = tpu.matmul %535, %537, %cst_140 {dimension_numbers = #tpu.dot_dimension_numbers<[1], [1], [0], [0], [0, 0, 1, 0], [], []>} : vector<16x8xbf16>, vector<16x8xbf16>, vector<16x16xf32> -> vector<16x16xf32>
    %cst_141 = arith.constant 0.353553385 : f32
    %539 = vector.broadcast %cst_141 : f32 to vector<16x16xf32>
    %540 = arith.mulf %538, %539 : vector<16x16xf32>
    %541 = arith.addf %540, %28 : vector<16x16xf32>
    %cst_142 = arith.constant dense<0xFF800000> : vector<16xf32>
    %542 = vector.multi_reduction <maximumf>, %541, %cst_142 [1] : vector<16x16xf32> to vector<16xf32>
    %543 = vector.shape_cast %542 : vector<16xf32> to vector<16x1xf32>
    %544 = vector.broadcast %543 : vector<16x1xf32> to vector<16x16xf32>
    %545 = arith.subf %541, %544 : vector<16x16xf32>
    %546 = math.exp %545 : vector<16x16xf32>
    %cst_143 = arith.constant dense<0.000000e+00> : vector<16xf32>
    %547 = vector.multi_reduction <add>, %546, %cst_143 [1] : vector<16x16xf32> to vector<16xf32>
    %548 = vector.shape_cast %547 : vector<16xf32> to vector<16x1xf32>
    %549 = tpu.reciprocal %548 {approx = true} : vector<16x1xf32> -> vector<16x1xf32>
    %550 = vector.broadcast %549 : vector<16x1xf32> to vector<16x16xf32>
    %551 = arith.mulf %546, %550 : vector<16x16xf32>
    %552 = arith.truncf %551 : vector<16x16xf32> to vector<16x16xbf16>
    %553 = vector.extract_strided_slice %508 {offsets = [0, 8], sizes = [16, 8], strides = [1, 1]} : vector<16x32xf32> to vector<16x8xf32>
    %554 = arith.truncf %553 : vector<16x8xf32> to vector<16x8xbf16>
    %cst_144 = arith.constant dense<0.000000e+00> : vector<16x8xf32>
    %555 = tpu.matmul %552, %554, %cst_144 {dimension_numbers = #tpu.dot_dimension_numbers<[1], [0], [0], [1], [0, 0, 1, 1], [], []>} : vector<16x16xbf16>, vector<16x8xbf16>, vector<16x8xf32> -> vector<16x8xf32>
    %556 = arith.truncf %555 : vector<16x8xf32> to vector<16x8xbf16>
    %557 = vector.extract_strided_slice %493 {offsets = [8, 96], sizes = [8, 32], strides = [1, 1]} : vector<32x128xbf16> to vector<8x32xbf16>
    %cst_145 = arith.constant dense<0.000000e+00> : vector<16x32xf32>
    %558 = tpu.matmul %556, %557, %cst_145 {dimension_numbers = #tpu.dot_dimension_numbers<[1], [0], [0], [1], [0, 0, 1, 1], [], []>} : vector<16x8xbf16>, vector<8x32xbf16>, vector<16x32xf32> -> vector<16x32xf32>
    %559 = arith.addf %533, %558 : vector<16x32xf32>
    %560 = vector.extract_strided_slice %500 {offsets = [0, 16], sizes = [16, 8], strides = [1, 1]} : vector<16x32xf32> to vector<16x8xf32>
    %561 = arith.truncf %560 : vector<16x8xf32> to vector<16x8xbf16>
    %562 = vector.extract_strided_slice %507 {offsets = [0, 16], sizes = [16, 8], strides = [1, 1]} : vector<16x32xf32> to vector<16x8xf32>
    %563 = arith.truncf %562 : vector<16x8xf32> to vector<16x8xbf16>
    %cst_146 = arith.constant dense<0.000000e+00> : vector<16x16xf32>
    %564 = tpu.matmul %561, %563, %cst_146 {dimension_numbers = #tpu.dot_dimension_numbers<[1], [1], [0], [0], [0, 0, 1, 0], [], []>} : vector<16x8xbf16>, vector<16x8xbf16>, vector<16x16xf32> -> vector<16x16xf32>
    %cst_147 = arith.constant 0.353553385 : f32
    %565 = vector.broadcast %cst_147 : f32 to vector<16x16xf32>
    %566 = arith.mulf %564, %565 : vector<16x16xf32>
    %567 = arith.addf %566, %28 : vector<16x16xf32>
    %cst_148 = arith.constant dense<0xFF800000> : vector<16xf32>
    %568 = vector.multi_reduction <maximumf>, %567, %cst_148 [1] : vector<16x16xf32> to vector<16xf32>
    %569 = vector.shape_cast %568 : vector<16xf32> to vector<16x1xf32>
    %570 = vector.broadcast %569 : vector<16x1xf32> to vector<16x16xf32>
    %571 = arith.subf %567, %570 : vector<16x16xf32>
    %572 = math.exp %571 : vector<16x16xf32>
    %cst_149 = arith.constant dense<0.000000e+00> : vector<16xf32>
    %573 = vector.multi_reduction <add>, %572, %cst_149 [1] : vector<16x16xf32> to vector<16xf32>
    %574 = vector.shape_cast %573 : vector<16xf32> to vector<16x1xf32>
    %575 = tpu.reciprocal %574 {approx = true} : vector<16x1xf32> -> vector<16x1xf32>
    %576 = vector.broadcast %575 : vector<16x1xf32> to vector<16x16xf32>
    %577 = arith.mulf %572, %576 : vector<16x16xf32>
    %578 = arith.truncf %577 : vector<16x16xf32> to vector<16x16xbf16>
    %579 = vector.extract_strided_slice %508 {offsets = [0, 16], sizes = [16, 8], strides = [1, 1]} : vector<16x32xf32> to vector<16x8xf32>
    %580 = arith.truncf %579 : vector<16x8xf32> to vector<16x8xbf16>
    %cst_150 = arith.constant dense<0.000000e+00> : vector<16x8xf32>
    %581 = tpu.matmul %578, %580, %cst_150 {dimension_numbers = #tpu.dot_dimension_numbers<[1], [0], [0], [1], [0, 0, 1, 1], [], []>} : vector<16x16xbf16>, vector<16x8xbf16>, vector<16x8xf32> -> vector<16x8xf32>
    %582 = arith.truncf %581 : vector<16x8xf32> to vector<16x8xbf16>
    %583 = vector.extract_strided_slice %493 {offsets = [16, 96], sizes = [8, 32], strides = [1, 1]} : vector<32x128xbf16> to vector<8x32xbf16>
    %cst_151 = arith.constant dense<0.000000e+00> : vector<16x32xf32>
    %584 = tpu.matmul %582, %583, %cst_151 {dimension_numbers = #tpu.dot_dimension_numbers<[1], [0], [0], [1], [0, 0, 1, 1], [], []>} : vector<16x8xbf16>, vector<8x32xbf16>, vector<16x32xf32> -> vector<16x32xf32>
    %585 = arith.addf %559, %584 : vector<16x32xf32>
    %586 = vector.extract_strided_slice %500 {offsets = [0, 24], sizes = [16, 8], strides = [1, 1]} : vector<16x32xf32> to vector<16x8xf32>
    %587 = arith.truncf %586 : vector<16x8xf32> to vector<16x8xbf16>
    %588 = vector.extract_strided_slice %507 {offsets = [0, 24], sizes = [16, 8], strides = [1, 1]} : vector<16x32xf32> to vector<16x8xf32>
    %589 = arith.truncf %588 : vector<16x8xf32> to vector<16x8xbf16>
    %cst_152 = arith.constant dense<0.000000e+00> : vector<16x16xf32>
    %590 = tpu.matmul %587, %589, %cst_152 {dimension_numbers = #tpu.dot_dimension_numbers<[1], [1], [0], [0], [0, 0, 1, 0], [], []>} : vector<16x8xbf16>, vector<16x8xbf16>, vector<16x16xf32> -> vector<16x16xf32>
    %cst_153 = arith.constant 0.353553385 : f32
    %591 = vector.broadcast %cst_153 : f32 to vector<16x16xf32>
    %592 = arith.mulf %590, %591 : vector<16x16xf32>
    %593 = arith.addf %592, %28 : vector<16x16xf32>
    %cst_154 = arith.constant dense<0xFF800000> : vector<16xf32>
    %594 = vector.multi_reduction <maximumf>, %593, %cst_154 [1] : vector<16x16xf32> to vector<16xf32>
    %595 = vector.shape_cast %594 : vector<16xf32> to vector<16x1xf32>
    %596 = vector.broadcast %595 : vector<16x1xf32> to vector<16x16xf32>
    %597 = arith.subf %593, %596 : vector<16x16xf32>
    %598 = math.exp %597 : vector<16x16xf32>
    %cst_155 = arith.constant dense<0.000000e+00> : vector<16xf32>
    %599 = vector.multi_reduction <add>, %598, %cst_155 [1] : vector<16x16xf32> to vector<16xf32>
    %600 = vector.shape_cast %599 : vector<16xf32> to vector<16x1xf32>
    %601 = tpu.reciprocal %600 {approx = true} : vector<16x1xf32> -> vector<16x1xf32>
    %602 = vector.broadcast %601 : vector<16x1xf32> to vector<16x16xf32>
    %603 = arith.mulf %598, %602 : vector<16x16xf32>
    %604 = arith.truncf %603 : vector<16x16xf32> to vector<16x16xbf16>
    %605 = vector.extract_strided_slice %508 {offsets = [0, 24], sizes = [16, 8], strides = [1, 1]} : vector<16x32xf32> to vector<16x8xf32>
    %606 = arith.truncf %605 : vector<16x8xf32> to vector<16x8xbf16>
    %cst_156 = arith.constant dense<0.000000e+00> : vector<16x8xf32>
    %607 = tpu.matmul %604, %606, %cst_156 {dimension_numbers = #tpu.dot_dimension_numbers<[1], [0], [0], [1], [0, 0, 1, 1], [], []>} : vector<16x16xbf16>, vector<16x8xbf16>, vector<16x8xf32> -> vector<16x8xf32>
    %608 = arith.truncf %607 : vector<16x8xf32> to vector<16x8xbf16>
    %609 = vector.extract_strided_slice %493 {offsets = [24, 96], sizes = [8, 32], strides = [1, 1]} : vector<32x128xbf16> to vector<8x32xbf16>
    %cst_157 = arith.constant dense<0.000000e+00> : vector<16x32xf32>
    %610 = tpu.matmul %608, %609, %cst_157 {dimension_numbers = #tpu.dot_dimension_numbers<[1], [0], [0], [1], [0, 0, 1, 1], [], []>} : vector<16x8xbf16>, vector<8x32xbf16>, vector<16x32xf32> -> vector<16x32xf32>
    %611 = arith.addf %585, %610 : vector<16x32xf32>
    %612 = vector.extract_strided_slice %494 {offsets = [0, 96], sizes = [1, 32], strides = [1, 1]} : vector<1x128xf32> to vector<1x32xf32>
    %613 = vector.broadcast %612 : vector<1x32xf32> to vector<16x32xf32>
    %614 = arith.addf %611, %613 : vector<16x32xf32>
    %615 = arith.addf %467, %614 : vector<16x32xf32>
    %616 = vector.extract_strided_slice %0 {offsets = [7, 0], sizes = [1, 32], strides = [1, 1]} : vector<58x128xf32> to vector<1x32xf32>
    %617 = vector.extract_strided_slice %0 {offsets = [16, 0], sizes = [1, 32], strides = [1, 1]} : vector<58x128xf32> to vector<1x32xf32>
    %cst_158 = arith.constant dense<0.000000e+00> : vector<16xf32>
    %618 = vector.multi_reduction <add>, %615, %cst_158 [1] : vector<16x32xf32> to vector<16xf32>
    %619 = vector.shape_cast %618 : vector<16xf32> to vector<16x1xf32>
    %cst_159 = arith.constant 3.200000e+01 : f32
    %620 = vector.broadcast %cst_159 : f32 to vector<16x1xf32>
    %621 = arith.divf %619, %620 : vector<16x1xf32>
    %622 = vector.broadcast %621 : vector<16x1xf32> to vector<16x32xf32>
    %623 = arith.subf %615, %622 : vector<16x32xf32>
    %624 = arith.mulf %623, %623 : vector<16x32xf32>
    %cst_160 = arith.constant dense<0.000000e+00> : vector<16xf32>
    %625 = vector.multi_reduction <add>, %624, %cst_160 [1] : vector<16x32xf32> to vector<16xf32>
    %626 = vector.shape_cast %625 : vector<16xf32> to vector<16x1xf32>
    %cst_161 = arith.constant 3.200000e+01 : f32
    %627 = vector.broadcast %cst_161 : f32 to vector<16x1xf32>
    %628 = arith.divf %626, %627 : vector<16x1xf32>
    %629 = vector.broadcast %621 : vector<16x1xf32> to vector<16x32xf32>
    %630 = arith.subf %615, %629 : vector<16x32xf32>
    %cst_162 = arith.constant 9.99999974E-6 : f32
    %631 = vector.broadcast %cst_162 : f32 to vector<16x1xf32>
    %632 = arith.addf %628, %631 : vector<16x1xf32>
    %633 = math.rsqrt %632 : vector<16x1xf32>
    %634 = vector.broadcast %633 : vector<16x1xf32> to vector<16x32xf32>
    %635 = arith.mulf %630, %634 : vector<16x32xf32>
    %636 = vector.broadcast %616 : vector<1x32xf32> to vector<16x32xf32>
    %637 = arith.mulf %635, %636 : vector<16x32xf32>
    %638 = vector.broadcast %617 : vector<1x32xf32> to vector<16x32xf32>
    %639 = arith.addf %637, %638 : vector<16x32xf32>
    %c1_163 = arith.constant 1 : index
    %c0_164 = arith.constant 0 : index
    %c0_165 = arith.constant 0 : index
    %640 = vector.load %arg6[%c1_163, %c0_164, %c0_165] : memref<2x96x64xbf16, #tpu.memory_space<vmem>>, vector<1x96x64xbf16>
    %641 = vector.shape_cast %640 : vector<1x96x64xbf16> to vector<96x64xbf16>
    %642 = vector.extract_strided_slice %0 {offsets = [22, 0], sizes = [1, 64], strides = [1, 1]} : vector<58x128xf32> to vector<1x64xf32>
    %643 = vector.extract_strided_slice %0 {offsets = [24, 0], sizes = [1, 32], strides = [1, 1]} : vector<58x128xf32> to vector<1x32xf32>
    %644 = arith.truncf %639 : vector<16x32xf32> to vector<16x32xbf16>
    %645 = vector.extract_strided_slice %641 {offsets = [0, 0], sizes = [32, 64], strides = [1, 1]} : vector<96x64xbf16> to vector<32x64xbf16>
    %cst_166 = arith.constant dense<0.000000e+00> : vector<16x64xf32>
    %646 = tpu.matmul %644, %645, %cst_166 {dimension_numbers = #tpu.dot_dimension_numbers<[1], [0], [0], [1], [0, 0, 1, 1], [], []>} : vector<16x32xbf16>, vector<32x64xbf16>, vector<16x64xf32> -> vector<16x64xf32>
    %647 = vector.broadcast %642 : vector<1x64xf32> to vector<16x64xf32>
    %648 = arith.addf %646, %647 : vector<16x64xf32>
    %cst_167 = arith.constant 5.000000e-01 : f32
    %649 = vector.broadcast %cst_167 : f32 to vector<16x64xf32>
    %650 = arith.mulf %649, %648 : vector<16x64xf32>
    %cst_168 = arith.constant 4.471500e-02 : f32
    %651 = vector.broadcast %cst_168 : f32 to vector<16x64xf32>
    %652 = arith.mulf %651, %648 : vector<16x64xf32>
    %653 = arith.mulf %652, %648 : vector<16x64xf32>
    %654 = arith.mulf %653, %648 : vector<16x64xf32>
    %655 = arith.addf %648, %654 : vector<16x64xf32>
    %cst_169 = arith.constant 0.797884583 : f32
    %656 = vector.broadcast %cst_169 : f32 to vector<16x64xf32>
    %657 = arith.mulf %656, %655 : vector<16x64xf32>
    %658 = math.tanh %657 : vector<16x64xf32>
    %cst_170 = arith.constant 1.000000e+00 : f32
    %659 = vector.broadcast %cst_170 : f32 to vector<16x64xf32>
    %660 = arith.addf %659, %658 : vector<16x64xf32>
    %661 = arith.mulf %650, %660 : vector<16x64xf32>
    %662 = arith.truncf %661 : vector<16x64xf32> to vector<16x64xbf16>
    %663 = vector.extract_strided_slice %641 {offsets = [32, 0], sizes = [64, 32], strides = [1, 1]} : vector<96x64xbf16> to vector<64x32xbf16>
    %cst_171 = arith.constant dense<0.000000e+00> : vector<16x32xf32>
    %664 = tpu.matmul %662, %663, %cst_171 {dimension_numbers = #tpu.dot_dimension_numbers<[1], [0], [0], [1], [0, 0, 1, 1], [], []>} : vector<16x64xbf16>, vector<64x32xbf16>, vector<16x32xf32> -> vector<16x32xf32>
    %665 = vector.broadcast %643 : vector<1x32xf32> to vector<16x32xf32>
    %666 = arith.addf %664, %665 : vector<16x32xf32>
    %667 = arith.addf %615, %666 : vector<16x32xf32>
    %668 = vector.extract_strided_slice %0 {offsets = [8, 0], sizes = [1, 32], strides = [1, 1]} : vector<58x128xf32> to vector<1x32xf32>
    %669 = vector.extract_strided_slice %0 {offsets = [17, 0], sizes = [1, 32], strides = [1, 1]} : vector<58x128xf32> to vector<1x32xf32>
    %cst_172 = arith.constant dense<0.000000e+00> : vector<16xf32>
    %670 = vector.multi_reduction <add>, %667, %cst_172 [1] : vector<16x32xf32> to vector<16xf32>
    %671 = vector.shape_cast %670 : vector<16xf32> to vector<16x1xf32>
    %cst_173 = arith.constant 3.200000e+01 : f32
    %672 = vector.broadcast %cst_173 : f32 to vector<16x1xf32>
    %673 = arith.divf %671, %672 : vector<16x1xf32>
    %674 = vector.broadcast %673 : vector<16x1xf32> to vector<16x32xf32>
    %675 = arith.subf %667, %674 : vector<16x32xf32>
    %676 = arith.mulf %675, %675 : vector<16x32xf32>
    %cst_174 = arith.constant dense<0.000000e+00> : vector<16xf32>
    %677 = vector.multi_reduction <add>, %676, %cst_174 [1] : vector<16x32xf32> to vector<16xf32>
    %678 = vector.shape_cast %677 : vector<16xf32> to vector<16x1xf32>
    %cst_175 = arith.constant 3.200000e+01 : f32
    %679 = vector.broadcast %cst_175 : f32 to vector<16x1xf32>
    %680 = arith.divf %678, %679 : vector<16x1xf32>
    %681 = vector.broadcast %673 : vector<16x1xf32> to vector<16x32xf32>
    %682 = arith.subf %667, %681 : vector<16x32xf32>
    %cst_176 = arith.constant 9.99999974E-6 : f32
    %683 = vector.broadcast %cst_176 : f32 to vector<16x1xf32>
    %684 = arith.addf %680, %683 : vector<16x1xf32>
    %685 = math.rsqrt %684 : vector<16x1xf32>
    %686 = vector.broadcast %685 : vector<16x1xf32> to vector<16x32xf32>
    %687 = arith.mulf %682, %686 : vector<16x32xf32>
    %688 = vector.broadcast %668 : vector<1x32xf32> to vector<16x32xf32>
    %689 = arith.mulf %687, %688 : vector<16x32xf32>
    %690 = vector.broadcast %669 : vector<1x32xf32> to vector<16x32xf32>
    %691 = arith.addf %689, %690 : vector<16x32xf32>
    %692 = arith.truncf %691 : vector<16x32xf32> to vector<16x32xbf16>
    %cst_177 = arith.constant dense<0.000000e+00> : vector<16x128xf32>
    %693 = tpu.matmul %692, %2, %cst_177 {dimension_numbers = #tpu.dot_dimension_numbers<[1], [0], [0], [1], [0, 0, 1, 1], [], []>} : vector<16x32xbf16>, vector<32x128xbf16>, vector<16x128xf32> -> vector<16x128xf32>
    %694 = vector.extract_strided_slice %0 {offsets = [25, 0], sizes = [1, 128], strides = [1, 1]} : vector<58x128xf32> to vector<1x128xf32>
    %695 = vector.broadcast %694 : vector<1x128xf32> to vector<16x128xf32>
    %696 = arith.addf %693, %695 : vector<16x128xf32>
    %c0_178 = arith.constant 0 : index
    %c0_179 = arith.constant 0 : index
    %697 = vector.load %arg7[%c0_178, %c0_179] : memref<16x128xf32, #tpu.memory_space<vmem>>, vector<16x128xf32>
    tpu.vector_store %arg7[%c0_178, %c0_179], %696 {strides = array<i32>} : memref<16x128xf32, #tpu.memory_space<vmem>>, vector<16x128xf32>,
    %cst_180 = arith.constant dense<0xFF800000> : vector<16xf32>
    %698 = vector.multi_reduction <maximumf>, %696, %cst_180 [1] : vector<16x128xf32> to vector<16xf32>
    %699 = vector.shape_cast %698 : vector<16xf32> to vector<16x1xf32>
    %700 = vector.broadcast %699 : vector<16x1xf32> to vector<16x128xf32>
    %701 = arith.subf %696, %700 : vector<16x128xf32>
    %702 = math.exp %701 : vector<16x128xf32>
    %cst_181 = arith.constant dense<0.000000e+00> : vector<16xf32>
    %703 = vector.multi_reduction <add>, %702, %cst_181 [1] : vector<16x128xf32> to vector<16xf32>
    %704 = vector.shape_cast %703 : vector<16xf32> to vector<16x1xf32>
    %705 = math.log %704 : vector<16x1xf32>
    %706 = arith.addf %705, %699 : vector<16x1xf32>
    %707 = vector.broadcast %37 : vector<16x1xi32> to vector<16x128xi32>
    %708 = arith.cmpi eq, %3, %707 : vector<16x128xi32>
    %cst_182 = arith.constant 0.000000e+00 : f32
    %709 = vector.broadcast %cst_182 : f32 to vector<16x128xf32>
    %710 = arith.select %708, %696, %709 : vector<16x128xi1>, vector<16x128xf32>
    %cst_183 = arith.constant dense<0.000000e+00> : vector<16xf32>
    %711 = vector.multi_reduction <add>, %710, %cst_183 [1] : vector<16x128xf32> to vector<16xf32>
    %712 = vector.shape_cast %711 : vector<16xf32> to vector<16x1xf32>
    %713 = arith.subf %706, %712 : vector<16x1xf32>
    %714 = vector.shape_cast %713 : vector<16x1xf32> to vector<1x16x1xf32>
    %cst_184 = arith.constant dense<0.000000e+00> : vector<1xf32>
    %715 = vector.multi_reduction <add>, %714, %cst_184 [1, 2] : vector<1x16x1xf32> to vector<1xf32>
    %716 = vector.shape_cast %715 : vector<1xf32> to vector<1x1x1xf32>
    %717 = vector.extract %716[0, 0, 0] : f32 from vector<1x1x1xf32>
    %cst_185 = arith.constant 1.600000e+01 : f32
    %718 = arith.divf %717, %cst_185 : f32
    %c0_186 = arith.constant 0 : index
    %c0_187 = arith.constant 0 : index
    %719 = memref.load %arg8[%c0_186, %c0_187] : memref<1x1xf32, #tpu.memory_space<smem>>
    memref.store %718, %arg8[%c0_186, %c0_187] : memref<1x1xf32, #tpu.memory_space<smem>>
    return
  }
}

</mosaic_0001>

<bundles_post_ra>
// kernel: forward.1
= control target key start
LH: loop header
LB: loop body
LE: loop exit
PB: predicated region body
PF: predicated region fallthrough
CT: control target
= control target key end

     0   :  { %14 = vsyncpa [#allocation3], 0  ;;  %v2772_v2 = vmov 0   ;;  %s3591_s0 = inlined_call_operand.vmem [shape: s32[3,16,1], index: 0, kind: input, shape index: {}]   ;;  %s3592_s1 = inlined_call_operand.vmem [shape: f32[1,16], index: 1, kind: input, shape index: {}]   ;;  %s3593_s2 = inlined_call_operand.vmem [shape: bf16[128,32], index: 2, kind: input, shape index: {}]   ;;  %s3594_s3 = inlined_call_operand.vmem [shape: bf16[32,128], index: 3, kind: input, shape index: {}]   ;;  %s3595_s4 = inlined_call_operand.vmem [shape: f32[58,128], index: 4, kind: input, shape index: {}]   ;;  %s3596_s5 = inlined_call_operand.vmem [shape: bf16[3,32,128], index: 5, kind: input, shape index: {}]   ;;  %s3597_s6 = inlined_call_operand.vmem [shape: bf16[2,96,64], index: 6, kind: input, shape index: {}]   ;;  %s3598_s7 = inlined_call_operand.hbm [shape: f32[16,128], index: 7, kind: output, shape index: {0}]   ;;  %s3599_s8 = inlined_call_operand.hbm [shape: f32[1,1], index: 8, kind: output, shape index: {1}]  }
   0x1   :  { %v88_v0 = vld [vmem:[%s3591_s0] sm:$0xff]  ;;  %v2845_v1 = vld [vmem:[%s3593_s2 + $0x38] sm:$0xff]  ;;  %2570 = vset.pattern.permute.xlu0 %v2772_v2  ;;  %2571 = vset.pattern.permute.xlu1 %v2772_v2  ;;  %v2851_v3 = vld [vmem:[%s3593_s2 + $0x30] sm:$0xff] }
   0x2   :  { %97 = vperm.xlu0 %2570, %v88_v0   ;;  %155 = vmatpush.bf16.msra.mxu0 %v2845_v1 }
   0x3   :  { %15 = vsyncpa [#allocation4], 0  ;;  %2572 = vset.pattern.permute.xlu2 %v2772_v2  ;;  %v2857_v4 = vld [vmem:[%s3593_s2 + $0x28] sm:$0xff]  ;;  %v2866_v6 = vld [vmem:[%s3593_s2 + $0x20] sm:$0xff]  ;;  %v59_v12 = vlaneseq  ;;  %v2773_v15 = vmov 1.0|1.0  }
   0x4   :  { %v89_v5 = vld [vmem:[%s3591_s0 + $0x8] sm:$0xff]  ;;  %v2872_v7 = vld [vmem:[%s3593_s2 + $0x18] sm:$0xff]  ;;  %v2878_v8 = vld [vmem:[%s3593_s2 + $0x10] sm:$0xff]  ;;  %vm174_vm3 = vcmask 1045504   ;;  %vm184_vm4 = vcmask 261120   ;;  %v2774_v32 = vmov 32.0  }
   0x5   :  { %v2884_v9 = vld [vmem:[%s3593_s2 + $0x8] sm:$0xff]  ;;  %v2890_v10 = vld [vmem:[%s3593_s2] sm:$0xff]  ;;  %v2894_v13 = vand.u32 127, %v59_v12  ;;  %v34_v16 = vld [vmem:[%s3595_s4 + $0x18] sm:$0xff]  ;;  %2573 = vrcp.f32 %v2774_v32  ;;  %s2775_s18 = smov 88   ;;  %s2776_s19 = smov 96  }
   0x6   :  { %156 = vmatpush.bf16.msra.mxu0 %v2851_v3  ;;  %v35_v17 = vld [vmem:[%s3595_s4 + $0x20] sm:$0xff]  ;;  %v175_v18 = vrot.slane %v34_v16, 2  ;;  %v2909_v23 = vld [vmem:[%s3595_s4 + $0x28] sm:$0xff]  ;;  %s2777_s20 = smov 120   ;;  %s2778_s21 = smov 72  }
   0x7   :  { %v176_v19 = vrot.slane %v35_v17, 2  ;;  %v178_v25 = vrot.slane %v2909_v23, 2  ;;  %v2928_v60 = vld [vmem:[%s3595_s4] sm:$0xff]  ;;  %v2933_v0 = vld [vmem:[%s3595_s4 + $0x8] sm:$0xff]  ;;  %s2781_s24 = smov 32   ;;  %s2782_s25 = smov 104  }
   0x8   :  { %v236_v2 = vperm.slane %v2928_v60, 0  ;;  %v239_v16 = vperm.slane %v2933_v0, 1  ;;  %s2783_s26 = smov 56   ;;  %s2784_s2 = smov 112  }
   0x9   :  { %v177_v21 = vsel %vm174_vm3, %v175_v18, %v176_v19  ;;  %v179_v28 = vsel %vm174_vm3, %v176_v19, %v178_v25  ;;  %s2785_s27 = smov 40   ;;  %s2786_s30 = smov 80  }
   0xa   :  { %100 = vperm.xlu0 %2570, %v89_v5   ;;  %157 = vmatpush.bf16.msra.mxu0 %v2857_v4  ;;  %s2787_s11 = smov 48   ;;  %s2793_s15 = smov [#allocation5]  }
   0xb   :  { %v2574_v33 = vpop.eup %2573 }
   0xc   :  { %v192_v34 = vmul.f32 32.0, %v2574_v33  ;;  %vm196_vm5 = vweird.f32 %v2574_v33 }
   0xe   :  { %158 = vmatpush.bf16.msra.mxu0 %v2866_v6  ;;  %v193_v35 = vsub.f32 1.0, %v192_v34 }
  0x10   :  { %v194_v36 = vmul.f32 %v2574_v33, %v193_v35 }
  0x12   :  { %159 = vmatpush.bf16.msra.mxu0 %v2872_v7  ;;  %v195_v37 = vadd.f32 %v2574_v33, %v194_v36 }
  0x14   :  { %v2917_v38 = vsel %vm196_vm5, %v2574_v33, %v195_v37 }
  0x16   :  { %160 = vmatpush.bf16.msra.mxu0 %v2878_v8 }
  0x1a   :  { %161 = vmatpush.bf16.msra.mxu0 %v2884_v9 }
  0x1e   :  { %162 = vmatpush.bf16.msra.mxu0 %v2890_v10 }
  0x74   :  { %v98_v11 = vpop.permute.xlu0 %97 }
  0x75   :  { %vm102_vm0 = vcmp.eq.s32.totalorder %v2894_v13, %v98_v11 }
  0x7c   :  { %v101_v14 = vpop.permute.xlu0 %100 }
  0x7d   :  { %vm103_vm1 = vcmp.eq.s32.totalorder %v2894_v13, %v101_v14 }
  0x7e   :  { %vm2368_vm2 = vmpackc.low %vm103_vm1, %vm102_vm0 }
  0x7f   :  { %2369 = vmatmul.msk.bf16.vlgmr.msra.gmra.mxu0 %vm2368_vm2, %v2773_v15  ;;  %vm331_vm2 = vcmask 64512  }
  0xfc   :  { %v164_v20 = vpop.f32.mrf.mxu0 }
  0xfd   :  { %v169_v22 = vmul.f32 5.656854, %v164_v20 }
  0xff   :  { %v182_v24 = vadd.f32 %v177_v21, %v169_v22 }
 0x101   :  { %v185_v26 = vsel %vm184_vm4, %v182_v24, 0.0 }
 0x102   :  { %186 = vadd.xlane.f32.xlu1 %v185_v26 }
 0x104   :  { %v166_v27 = vpop.f32.mrf.mxu0 }
 0x105   :  { %v170_v29 = vmul.f32 5.656854, %v166_v27 }
 0x107   :  { %v183_v30 = vadd.f32 %v179_v28, %v170_v29 }
 0x109   :  { %v188_v31 = vsel %vm184_vm4, %v183_v30, 0.0 }
 0x10a   :  { %189 = vadd.xlane.f32.xlu1 %v188_v31 }
 0x175   :  { %v187_v39 = vpop.xlane.xlu1 %186 }
 0x176   :  { %v198_v40 = vmul.f32 %v2917_v38, %v187_v39 }
 0x178   :  { %v200_v41 = vsub.f32 %v182_v24, %v198_v40 }
 0x17a   :  { %v202_v42 = vmul.f32 %v200_v41, %v200_v41 }
 0x17c   :  { %v204_v43 = vsel %vm184_vm4, %v202_v42, 0.0 }
 0x17d   :  { %205 = vadd.xlane.f32.xlu2 %v204_v43  ;;  %v190_v44 = vpop.xlane.xlu1 %189  ;;  %v2960_v43 = vld [vmem:[%s3596_s5] sm:$0xff]  }
 0x17e   :  { %v199_v45 = vmul.f32 %v2917_v38, %v190_v44 }
 0x180   :  { %v201_v46 = vsub.f32 %v183_v30, %v199_v45 }
 0x182   :  { %v203_v47 = vmul.f32 %v201_v46, %v201_v46 }
 0x184   :  { %v207_v48 = vsel %vm184_vm4, %v203_v47, 0.0 }
 0x185   :  { %208 = vadd.xlane.f32.xlu2 %v207_v48 }
 0x1f0   :  { %v206_v49 = vpop.xlane.xlu2 %205 }
 0x1f1   :  { %v210_v50 = vmul.f32 %v206_v49, %v2917_v38 }
 0x1f3   :  { %v212_v51 = vadd.f32 1e-05, %v210_v50 }
 0x1f5   :  { %2575 = vrsqrt.f32 %v212_v51  ;;  %vm220_vm7 = vweird.f32 %v212_v51 }
 0x1f8   :  { %v209_v52 = vpop.xlane.xlu2 %208 }
 0x1f9   :  { %v211_v53 = vmul.f32 %v209_v52, %v2917_v38 }
 0x1fb   :  { %v2576_v54 = vpop.eup %2575  ;;  %v213_v55 = vadd.f32 1e-05, %v211_v53 }
 0x1fc   :  { %v215_v56 = vmul.f32 %v2576_v54, %v212_v51  ;;  %vm221_vm6 = vweird.f32 %v2576_v54 }
 0x1fd   :  { %2577 = vrsqrt.f32 %v213_v55  ;;  %vm222_vm8 = vmor %vm220_vm7, %vm221_vm6  ;;  %vm230_vm10 = vweird.f32 %v213_v55  ;;  %vm356_vm7 = vcmask 130048  }
 0x1fe   :  { %v216_v57 = vmul.f32 %v2576_v54, %v215_v56 }
 0x200   :  { %v217_v58 = vmul.f32 0.5, %v216_v57 }
 0x202   :  { %v218_v59 = vsub.f32 1.5, %v217_v58 }
 0x203   :  { %v2578_v61 = vpop.eup %2577 }
 0x204   :  { %v219_v62 = vmul.f32 %v2576_v54, %v218_v59  ;;  %v225_v63 = vmul.f32 %v2578_v61, %v213_v55  ;;  %vm231_vm9 = vweird.f32 %v2578_v61 }
 0x205   :  { %vm232_vm11 = vmor %vm230_vm10, %vm231_vm9 }
 0x206   :  { %v223_v5 = vsel %vm222_vm8, %v2576_v54, %v219_v62  ;;  %v226_v11 = vmul.f32 %v2578_v61, %v225_v63  ;;  %v286_v63 = vperm.slane %v2928_v60, 1  ;;  %vm479_vm8 = vcmask 1043456  }
 0x207   :  { %v234_v14 = vmul.f32 %v223_v5, %v200_v41  ;;  %v2954_v41 = vld [vmem:[%s3596_s5 + $0x8] sm:$0xff]  }
 0x208   :  { %v227_v17 = vmul.f32 0.5, %v226_v11  ;;  %319 = vmatpush.bf16.msra.mxu1 %v2954_v41 }
 0x209   :  { %v237_v18 = vmul.f32 %v236_v2, %v234_v14 }
 0x20a   :  { %v228_v19 = vsub.f32 1.5, %v227_v17 }
 0x20b   :  { %v2937_v20 = vadd.f32 %v239_v16, %v237_v18 }
 0x20c   :  { %v229_v21 = vmul.f32 %v2578_v61, %v228_v19  ;;  %320 = vmatpush.bf16.msra.mxu1 %v2960_v43 }
 0x20d   :  { %v242_v22 = vsel %vm184_vm4, %v2937_v20, 0.0 }
 0x20e   :  { %v233_v24 = vsel %vm232_vm11, %v2578_v61, %v229_v21  ;;  %243 = vadd.xlane.f32.xlu0 %v242_v22 }
 0x20f   :  { %v235_v26 = vmul.f32 %v233_v24, %v201_v46  ;;  %v2971_v24 = vld [vmem:[%s3595_s4 + $0x10] sm:$0xff] }
 0x211   :  { %v238_v27 = vmul.f32 %v236_v2, %v235_v26  ;;  %v2974_v26 = vperm.slane %v2971_v24, 2 }
 0x213   :  { %v2941_v28 = vadd.f32 %v239_v16, %v238_v27  ;;  %v289_v16 = vperm.slane %v2933_v0, 2 }
 0x215   :  { %v245_v29 = vsel %vm184_vm4, %v2941_v28, 0.0 }
 0x216   :  { %246 = vadd.xlane.f32.xlu1 %v245_v29 }
 0x281   :  { %v244_v30 = vpop.xlane.xlu0 %243 }
 0x282   :  { %v248_v31 = vmul.f32 %v244_v30, %v2917_v38 }
 0x284   :  { %v250_v32 = vsub.f32 %v2937_v20, %v248_v31 }
 0x286   :  { %v252_v33 = vmul.f32 %v250_v32, %v250_v32 }
 0x288   :  { %v254_v34 = vsel %vm184_vm4, %v252_v33, 0.0 }
 0x289   :  { %v247_v35 = vpop.xlane.xlu1 %246  ;;  %255 = vadd.xlane.f32.xlu2 %v254_v34  ;;  %v78_v34 = vld [vmem:[%s3592_s1] sm:$0x1]  ;;  %s2780_s1 = smov 64  }
 0x28a   :  { %v249_v36 = vmul.f32 %v247_v35, %v2917_v38  ;;  %v2995_v35 = vshrl.u32 %v59_v12, 7 }
 0x28c   :  { %v251_v37 = vsub.f32 %v2941_v28, %v249_v36  ;;  %v79_v36 = vsub.f32 1.0, %v78_v34 }
 0x28e   :  { %v253_v39 = vmul.f32 %v251_v37, %v251_v37 }
 0x290   :  { %v257_v40 = vsel %vm184_vm4, %v253_v39, 0.0  ;;  %v66_v39 = vshrl.u32 %v2894_v13, 3 }
 0x291   :  { %258 = vadd.xlane.f32.xlu1 %v257_v40  ;;  %v80_v40 = vmul.f32 -1e+09, %v79_v36 }
 0x2fc   :  { %v256_v42 = vpop.xlane.xlu2 %255 }
 0x2fd   :  { %v260_v44 = vmul.f32 %v256_v42, %v2917_v38  ;;  %v3000_v42 = vadd.s32 8, %v2995_v35 }
 0x2ff   :  { %v262_v45 = vadd.f32 1e-05, %v260_v44  ;;  %v82_v44 = vperm.slane %v80_v40, 0 }
 0x301   :  { %2579 = vrsqrt.f32 %v262_v45  ;;  %vm270_vm13 = vweird.f32 %v262_v45 }
 0x304   :  { %v259_v46 = vpop.xlane.xlu1 %258 }
 0x305   :  { %v261_v47 = vmul.f32 %v259_v46, %v2917_v38 }
 0x307   :  { %v2580_v48 = vpop.eup %2579  ;;  %v263_v49 = vadd.f32 1e-05, %v261_v47  ;;  %v65_v47 = vshrl.u32 %v3000_v42, 3 }
 0x308   :  { %v265_v50 = vmul.f32 %v2580_v48, %v262_v45  ;;  %vm271_vm12 = vweird.f32 %v2580_v48  ;;  %v2779_v45 = vmov -1e+09  }
 0x309   :  { %2581 = vrsqrt.f32 %v263_v49  ;;  %vm272_vm14 = vmor %vm270_vm13, %vm271_vm12  ;;  %vm280_vm0 = vweird.f32 %v263_v49  ;;  %vm68_vm6 = vcmp.eq.s32.totalorder %v65_v47, %v66_v39 }
 0x30a   :  { %v266_v51 = vmul.f32 %v2580_v48, %v265_v50 }
 0x30c   :  { %v267_v52 = vmul.f32 0.5, %v266_v51  ;;  %v3009_v51 = vsel %vm68_vm6, 0.0, %v2779_v45 }
 0x30e   :  { %v268_v53 = vsub.f32 1.5, %v267_v52 }
 0x30f   :  { %v2582_v54 = vpop.eup %2581 }
 0x310   :  { %v269_v55 = vmul.f32 %v2580_v48, %v268_v53  ;;  %v275_v56 = vmul.f32 %v2582_v54, %v263_v49  ;;  %vm281_vm15 = vweird.f32 %v2582_v54  ;;  %v3013_v53 = vadd.f32 %v82_v44, %v3009_v51 }
 0x311   :  { %vm282_vm1 = vmor %vm280_vm0, %vm281_vm15 }
 0x312   :  { %v276_v57 = vmul.f32 %v2582_v54, %v275_v56  ;;  %v273_v58 = vsel %vm272_vm14, %v2580_v48, %v269_v55 }
 0x313   :  { %v284_v62 = vmul.f32 %v273_v58, %v250_v32 }
 0x314   :  { %v277_v59 = vmul.f32 0.5, %v276_v57 }
 0x315   :  { %v287_v14 = vmul.f32 %v286_v63, %v284_v62 }
 0x316   :  { %v278_v61 = vsub.f32 1.5, %v277_v59 }
 0x317   :  { %v290_v18 = vadd.f32 %v289_v16, %v287_v14 }
 0x318   :  { %v279_v2 = vmul.f32 %v2582_v54, %v278_v61 }
 0x31a   :  { %v283_v5 = vsel %vm282_vm1, %v2582_v54, %v279_v2 }
 0x31b   :  { %v285_v11 = vmul.f32 %v283_v5, %v251_v37  ;;  %v64_v37 = vshrl.u32 %v2995_v35, 3 }
 0x31d   :  { %v288_v17 = vmul.f32 %v286_v63, %v285_v11  ;;  %vm67_vm5 = vcmp.eq.s32.totalorder %v64_v37, %v66_v39 }
 0x31e   :  { %v3002_v46 = vsel %vm67_vm5, 0.0, %v2779_v45 }
 0x31f   :  { %v291_v19 = vadd.f32 %v289_v16, %v288_v17  ;;  %v3006_v48 = vadd.f32 %v82_v44, %v3002_v46  ;;  %v2517_v17 = vunpack.c.l.b16 %v2960_v43 }
 0x321   :  { %v296_v21 = vpack.c.bf16 %v291_v19, %v290_v18  ;;  %v497_v18 = vpack.c.b16 %v2517_v17, %v2517_v17 }
 0x323   :  { %2370 = vmatmul.msk.bf16.vlgmr.msra.gmra.mxu1 %vm184_vm4, %v296_v21 }
 0x3a0   :  { %v322_v22 = vpop.f32.mrf.mxu1 }
 0x3a1   :  { %v323_v29 = vadd.f32 %v322_v22, %v2974_v26 }
 0x3a8   :  { %v324_v27 = vpop.f32.mrf.mxu1 }
 0x3a9   :  { %v325_v30 = vadd.f32 %v324_v27, %v2974_v26 }
 0x3ab   :  { %v2978_v31 = vpack.c.bf16 %v325_v30, %v323_v29 }
 0x3ad   :  { %403 = vrot.lane.b32.xlu0 %v2978_v31, %s2775_s18  ;;  %329 = vrot.lane.b32.xlu2 %v2978_v31, %s2776_s19 }
 0x3b5   :  { %401 = vrot.lane.b32.xlu0 %v2978_v31, %s2777_s20 }
 0x3bd   :  { %619 = vrot.lane.b32.xlu0 %v2978_v31, %s2778_s21 }
 0x407   :  { %v330_v32 = vpop.permute.xlu2 %329 }
 0x408   :  { %v336_v33 = vsel %vm331_vm2, %v330_v32, 0 }
 0x409   :  { %345 = vmatpush.bf16.xpose.msra.mxu2 %v336_v33 }
 0x410   :  { %2371 = vmatmul.msk.bf16.vlgmr.msra.gmra.mxu2 %vm331_vm2, %v2978_v31 }
 0x41f   :  { %v404_v29 = vpop.permute.xlu0 %403 }
 0x420   :  { %v409_v34 = vsel %vm331_vm2, %v404_v29, 0 }
 0x427   :  { %v402_v37 = vpop.permute.xlu0 %401 }
 0x42f   :  { %v620_v44 = vpop.permute.xlu0 %619 }
 0x430   :  { %v625_v45 = vsel %vm331_vm2, %v620_v44, 0 }
 0x493   :  { %v347_v12 = vpop.f32.mrf.mxu2 }
 0x494   :  { %v352_v49 = vmul.f32 0.35355338, %v347_v12 }
 0x496   :  { %v354_v50 = vadd.f32 %v352_v49, %v3006_v48 }
 0x498   :  { %v357_v52 = vsel %vm356_vm7, %v354_v50, -inf }
 0x499   :  { %358 = vmax.xlane.f32.xlu1 %v357_v52 }
 0x49b   :  { %v349_v54 = vpop.f32.mrf.mxu2 }
 0x49c   :  { %v353_v55 = vmul.f32 0.35355338, %v349_v54 }
 0x49e   :  { %v355_v56 = vadd.f32 %v353_v55, %v3013_v53 }
 0x4a0   :  { %v360_v57 = vsel %vm356_vm7, %v355_v56, -inf }
 0x4a1   :  { %361 = vmax.xlane.f32.xlu1 %v360_v57 }
 0x50c   :  { %v359_v58 = vpop.xlane.xlu1 %358 }
 0x50d   :  { %v363_v59 = vsub.f32 %v354_v50, %v359_v58 }
 0x50f   :  { %v365_v61 = vmul.f32 1.442695, %v363_v59 }
 0x511   :  { %2583 = vpow2.f32 %v365_v61 }
 0x514   :  { %v362_v62 = vpop.xlane.xlu1 %361 }
 0x515   :  { %v364_v63 = vsub.f32 %v355_v56, %v362_v62  ;;  %v2333_v62 = vld [vmem:[%s3591_s0 + $0x18] sm:$0xff] }
 0x517   :  { %v2584_v2 = vpop.eup %2583  ;;  %v367_v5 = vmul.f32 1.442695, %v364_v63 }
 0x518   :  { %v369_v11 = vsel %vm356_vm7, %v2584_v2, 0.0 }
 0x519   :  { %2585 = vpow2.f32 %v367_v5  ;;  %370 = vadd.xlane.f32.xlu1 %v369_v11 }
 0x51f   :  { %v2586_v14 = vpop.eup %2585 }
 0x520   :  { %v372_v16 = vsel %vm356_vm7, %v2586_v14, 0.0 }
 0x521   :  { %373 = vadd.xlane.f32.xlu2 %v372_v16 }
 0x532   :  { %380 = vrot.lane.b32.xlu1 %v2978_v31, %s2780_s1 }
 0x53a   :  { %498 = vrot.lane.b32.xlu1 %v497_v18, %s2781_s24 }
 0x542   :  { %617 = vrot.lane.b32.xlu1 %v2978_v31, %s2782_s25 }
 0x58c   :  { %v371_v21 = vpop.xlane.xlu1 %370 }
 0x594   :  { %v374_v19 = vpop.xlane.xlu2 %373 }
 0x595   :  { %2587 = vrcp.f32 %v374_v19 }
 0x596   :  { %2589 = vrcp.f32 %v371_v21 }
 0x59b   :  { %v2588_v22 = vpop.eup %2587 }
 0x59c   :  { %v2590_v27 = vpop.eup %2589  ;;  %v378_v30 = vmul.f32 %v2588_v22, %v2586_v14 }
 0x59d   :  { %v377_v33 = vmul.f32 %v2590_v27, %v2584_v2 }
 0x59f   :  { %v379_v36 = vpack.c.bf16 %v378_v30, %v377_v33 }
 0x5a4   :  { %v381_v32 = vpop.permute.xlu1 %380 }
 0x5a5   :  { %393 = vmatpush.bf16.msra.mxu3 %v381_v32 }
 0x5a8   :  { %2372 = vmatmul.msk.bf16.vlgmr.msra.gmra.mxu3 %vm356_vm7, %v379_v36 }
 0x5a9   :  { %418 = vmatpush.bf16.xpose.msrb.mxu3 %v409_v34 }
 0x5ac   :  { %v499_v39 = vpop.permute.xlu1 %498 }
 0x5ad   :  { %v504_v40 = vsel %vm479_vm8, %v499_v39, 0 }
 0x5b1   :  { %513 = vmatpush.bf16.msra.mxu3 %v504_v40 }
 0x5b4   :  { %v618_v58 = vpop.permute.xlu1 %617 }
 0x5b8   :  { %2373 = vmatmul.msk.bf16.vlgmr.msrb.gmra.mxu3 %vm331_vm2, %v402_v37 }
 0x5b9   :  { %634 = vmatpush.bf16.xpose.msrb.mxu3 %v625_v45 }
 0x62b   :  { %v395_v47 = vpop.f32.mrf.mxu3 }
 0x633   :  { %v397_v12 = vpop.f32.mrf.mxu3 }
 0x634   :  { %v400_v49 = vpack.c.bf16 %v397_v12, %v395_v47 }
 0x636   :  { %2376 = vmatmul.msk.bf16.vlgmr.msra.gmra.mxu3 %vm331_vm2, %v400_v49 }
 0x63b   :  { %v420_v50 = vpop.f32.mrf.mxu3 }
 0x63c   :  { %v425_v52 = vmul.f32 0.35355338, %v420_v50 }
 0x63e   :  { %v427_v54 = vadd.f32 %v425_v52, %v3006_v48 }
 0x640   :  { %v429_v55 = vsel %vm356_vm7, %v427_v54, -inf }
 0x641   :  { %430 = vmax.xlane.f32.xlu2 %v429_v55 }
 0x643   :  { %v422_v56 = vpop.f32.mrf.mxu3 }
 0x644   :  { %v426_v57 = vmul.f32 0.35355338, %v422_v56 }
 0x646   :  { %2380 = vmatmul.msk.bf16.vlgmr.msrb.gmra.mxu3 %vm331_vm2, %v618_v58  ;;  %v428_v59 = vadd.f32 %v426_v57, %v3013_v53 }
 0x648   :  { %v432_v61 = vsel %vm356_vm7, %v428_v59, -inf }
 0x649   :  { %433 = vmax.xlane.f32.xlu0 %v432_v61 }
 0x659   :  { %452 = vrot.lane.b32.xlu2 %v2978_v31, %s2783_s26 }
 0x65d   :  { %520 = vrot.lane.b32.xlu0 %v2978_v31, %s2784_s2 }
 0x665   :  { %668 = vrot.lane.b32.xlu0 %v2978_v31, %s2785_s27 }
 0x66d   :  { %933 = vperm.xlu0 %2570, %v2333_v62  }
 0x6b4   :  { %v431_v63 = vpop.xlane.xlu2 %430 }
 0x6b5   :  { %v435_v2 = vsub.f32 %v427_v54, %v431_v63 }
 0x6b7   :  { %v437_v5 = vmul.f32 1.442695, %v435_v2 }
 0x6b9   :  { %2591 = vpow2.f32 %v437_v5  ;;  %v3045_v11 = vpop.f32.mrf.mxu3 }
 0x6bc   :  { %v453_v14 = vpop.permute.xlu2 %452  ;;  %v434_v16 = vpop.xlane.xlu0 %433 }
 0x6bd   :  { %v436_v17 = vsub.f32 %v428_v59, %v434_v16  ;;  %465 = vmatpush.bf16.msrb.mxu1 %v453_v14 }
 0x6bf   :  { %v2592_v18 = vpop.eup %2591  ;;  %v439_v19 = vmul.f32 1.442695, %v436_v17 }
 0x6c0   :  { %v441_v21 = vsel %vm356_vm7, %v2592_v18, 0.0 }
 0x6c1   :  { %2593 = vpow2.f32 %v439_v19  ;;  %442 = vadd.xlane.f32.xlu1 %v441_v21  ;;  %v3048_v22 = vpop.f32.mrf.mxu3 }
 0x6c7   :  { %v2594_v27 = vpop.eup %2593 }
 0x6c8   :  { %v444_v29 = vsel %vm356_vm7, %v2594_v27, 0.0 }
 0x6c9   :  { %445 = vadd.xlane.f32.xlu2 %v444_v29  ;;  %v636_v30 = vpop.f32.mrf.mxu3  ;;  %v2518_v29 = vunpack.c.h.b16 %v2960_v43 }
 0x6ca   :  { %v641_v37 = vmul.f32 0.35355338, %v636_v30 }
 0x6cb   :  { %v473_v30 = vpack.c.b16 %v2518_v29, %v2518_v29 }
 0x6cc   :  { %v643_v39 = vadd.f32 %v641_v37, %v3006_v48 }
 0x6ce   :  { %v645_v40 = vsel %vm356_vm7, %v643_v39, -inf }
 0x6cf   :  { %v521_v47 = vpop.permute.xlu0 %520 }
 0x6d1   :  { %v638_v32 = vpop.f32.mrf.mxu3 }
 0x6d2   :  { %v642_v33 = vmul.f32 0.35355338, %v638_v32 }
 0x6d4   :  { %v644_v34 = vadd.f32 %v642_v33, %v3013_v53 }
 0x6d6   :  { %v648_v36 = vsel %vm356_vm7, %v644_v34, -inf }
 0x6d7   :  { %649 = vmax.xlane.f32.xlu1 %v648_v36  ;;  %v669_v57 = vpop.permute.xlu0 %668 }
 0x6e1   :  { %522 = vrot.lane.b32.xlu2 %v2978_v31, %s2786_s30 }
 0x70a   :  { %646 = vmax.xlane.f32.xlu2 %v645_v40 }
 0x734   :  { %v443_v44 = vpop.xlane.xlu1 %442 }
 0x735   :  { %2595 = vrcp.f32 %v443_v44  ;;  %v934_v44 = vpop.permute.xlu0 %933 }
 0x736   :  { %vm936_vm9 = vcmp.eq.s32.totalorder %v2894_v13, %v934_v44 }
 0x73b   :  { %v2596_v12 = vpop.eup %2595 }
 0x73c   :  { %v446_v45 = vpop.xlane.xlu2 %445  ;;  %v449_v50 = vmul.f32 %v2596_v12, %v2592_v18 }
 0x73d   :  { %2597 = vrcp.f32 %v446_v45 }
 0x743   :  { %v2598_v49 = vpop.eup %2597 }
 0x744   :  { %v450_v52 = vmul.f32 %v2598_v49, %v2594_v27  ;;  %v523_v54 = vpop.permute.xlu2 %522 }
 0x745   :  { %v528_v55 = vsel %vm331_vm2, %v523_v54, 0 }
 0x746   :  { %537 = vmatpush.bf16.xpose.msra.mxu1 %v528_v55  ;;  %v451_v56 = vpack.c.bf16 %v450_v52, %v449_v50 }
 0x748   :  { %2374 = vmatmul.msk.bf16.vlgmr.msrb.gmra.mxu1 %vm356_vm7, %v451_v56 }
 0x74a   :  { %v650_v58 = vpop.xlane.xlu1 %649 }
 0x74b   :  { %v652_v62 = vsub.f32 %v644_v34, %v650_v58 }
 0x74e   :  { %681 = vmatpush.bf16.msrb.mxu1 %v669_v57 }
 0x758   :  { %2377 = vmatmul.msk.bf16.vlgmr.msra.gmra.mxu1 %vm331_vm2, %v521_v47 }
 0x759   :  { %940 = vmatpush.bf16.msra.mxu1 %v2845_v1  ;;  %v655_v1 = vmul.f32 1.442695, %v652_v62 }
 0x75d   :  { %941 = vmatpush.bf16.msra.mxu1 %v2851_v3 }
 0x761   :  { %942 = vmatpush.bf16.msra.mxu1 %v2857_v4 }
 0x765   :  { %943 = vmatpush.bf16.msra.mxu1 %v2866_v6 }
 0x769   :  { %944 = vmatpush.bf16.msra.mxu1 %v2872_v7 }
 0x76d   :  { %945 = vmatpush.bf16.msra.mxu1 %v2878_v8  ;;  %v2332_v8 = vld [vmem:[%s3591_s0 + $0x10] sm:$0xff] }
 0x771   :  { %946 = vmatpush.bf16.msra.mxu1 %v2884_v9 }
 0x775   :  { %947 = vmatpush.bf16.msra.mxu1 %v2890_v10 }
 0x77d   :  { %v647_v59 = vpop.xlane.xlu2 %646 }
 0x77e   :  { %v651_v61 = vsub.f32 %v643_v39, %v647_v59  ;;  %v2522_v59 = vunpack.c.h.b16 %v2954_v41 }
 0x780   :  { %v653_v63 = vmul.f32 1.442695, %v651_v61  ;;  %v689_v61 = vpack.c.b16 %v2522_v59, %v2522_v59 }
 0x782   :  { %2599 = vpow2.f32 %v653_v63 }
 0x783   :  { %2601 = vpow2.f32 %v655_v1 }
 0x788   :  { %v2600_v3 = vpop.eup %2599 }
 0x789   :  { %v657_v4 = vsel %vm356_vm7, %v2600_v3, 0.0  ;;  %v2602_v6 = vpop.eup %2601 }
 0x78a   :  { %658 = vadd.xlane.f32.xlu1 %v657_v4  ;;  %v660_v7 = vsel %vm356_vm7, %v2602_v6, 0.0 }
 0x792   :  { %661 = vadd.xlane.f32.xlu1 %v660_v7 }
 0x7ab   :  { %930 = vperm.xlu1 %2571, %v2332_v8  }
 0x7c5   :  { %v467_v9 = vpop.f32.mrf.mxu1 }
 0x7cd   :  { %v469_v10 = vpop.f32.mrf.mxu1 }
 0x7ce   :  { %v472_v2 = vpack.c.bf16 %v469_v10, %v467_v9  ;;  %v38_v9 = vld [vmem:[%s3595_s4 + $0x38] sm:$0x3] }
 0x7d5   :  { %v539_v5 = vpop.f32.mrf.mxu1 }
 0x7d6   :  { %v544_v14 = vmul.f32 0.35355338, %v539_v5 }
 0x7d8   :  { %v546_v16 = vadd.f32 %v544_v14, %v3006_v48 }
 0x7da   :  { %v548_v17 = vsel %vm356_vm7, %v546_v16, -inf }
 0x7db   :  { %549 = vmax.xlane.f32.xlu0 %v548_v17 }
 0x7dd   :  { %v541_v18 = vpop.f32.mrf.mxu1 }
 0x7de   :  { %v545_v19 = vmul.f32 0.35355338, %v541_v18 }
 0x7e0   :  { %v547_v21 = vadd.f32 %v545_v19, %v3013_v53 }
 0x7e2   :  { %v551_v27 = vsel %vm356_vm7, %v547_v21, -inf }
 0x7e3   :  { %552 = vmax.xlane.f32.xlu2 %v551_v27 }
 0x7ef   :  { %571 = vrot.lane.b32.xlu0 %v2978_v31, %s2787_s11 }
 0x7fb   :  { %474 = vrot.lane.b32.xlu2 %v473_v30, %s2781_s24 }
 0x7fd   :  { %v659_v32 = vpop.xlane.xlu1 %658 }
 0x7fe   :  { %2603 = vrcp.f32 %v659_v32 }
 0x804   :  { %v2604_v34 = vpop.eup %2603 }
 0x805   :  { %v662_v33 = vpop.xlane.xlu1 %661  ;;  %v665_v37 = vmul.f32 %v2604_v34, %v2600_v3  ;;  %v37_v3 = vld [vmem:[%s3595_s4 + $0x30] sm:$0xff] }
 0x806   :  { %2605 = vrcp.f32 %v662_v33  ;;  %v958_v4 = vrot.slane %v37_v3, 2 }
 0x808   :  { %v959_v7 = vsel %vm174_vm3, %v178_v25, %v958_v4 }
 0x80c   :  { %v2606_v36 = vpop.eup %2605 }
 0x80d   :  { %v666_v39 = vmul.f32 %v2606_v36, %v2602_v6 }
 0x80f   :  { %v667_v40 = vpack.c.bf16 %v666_v39, %v665_v37 }
 0x811   :  { %2381 = vmatmul.msk.bf16.vlgmr.msrb.gmra.mxu1 %vm356_vm7, %v667_v40 }
 0x81d   :  { %v931_v45 = vpop.permute.xlu1 %930 }
 0x81e   :  { %vm935_vm10 = vcmp.eq.s32.totalorder %v2894_v13, %v931_v45 }
 0x81f   :  { %vm2409_vm11 = vmpackc.low %vm936_vm9, %vm935_vm10 }
 0x821   :  { %2410 = vmatmul.msk.bf16.vlgmr.msra.gmra.mxu1 %vm2409_vm11, %v2773_v15 }
 0x84e   :  { %v550_v43 = vpop.xlane.xlu0 %549 }
 0x84f   :  { %v554_v31 = vsub.f32 %v546_v16, %v550_v43 }
 0x851   :  { %v556_v47 = vmul.f32 1.442695, %v554_v31 }
 0x853   :  { %2607 = vpow2.f32 %v556_v47 }
 0x856   :  { %v553_v12 = vpop.xlane.xlu2 %552 }
 0x857   :  { %v555_v49 = vsub.f32 %v547_v21, %v553_v12 }
 0x859   :  { %v2608_v50 = vpop.eup %2607  ;;  %v558_v52 = vmul.f32 1.442695, %v555_v49  ;;  %v2521_v49 = vunpack.c.l.b16 %v2954_v41 }
 0x85a   :  { %v560_v54 = vsel %vm356_vm7, %v2608_v50, 0.0 }
 0x85b   :  { %2609 = vpow2.f32 %v558_v52  ;;  %561 = vadd.xlane.f32.xlu1 %v560_v54 }
 0x85e   :  { %v475_v55 = vpop.permute.xlu2 %474 }
 0x85f   :  { %v481_v56 = vsel %vm479_vm8, %v475_v55, 0 }
 0x860   :  { %490 = vmatpush.bf16.msrb.mxu2 %v481_v56 }
 0x861   :  { %v2610_v57 = vpop.eup %2609  ;;  %v572_v58 = vpop.permute.xlu0 %571 }
 0x862   :  { %v563_v15 = vsel %vm356_vm7, %v2610_v57, 0.0 }
 0x863   :  { %564 = vadd.xlane.f32.xlu2 %v563_v15  ;;  %2375 = vmatmul.msk.bf16.vlgmr.msrb.gmra.mxu2 %vm331_vm2, %v472_v2  ;;  %v960_v2 = vrot.slane %v38_v9, 2 }
 0x864   :  { %584 = vmatpush.bf16.msra.mxu2 %v572_v58 }
 0x865   :  { %v961_v16 = vsel %vm174_vm3, %v958_v4, %v960_v2 }
 0x87b   :  { %690 = vrot.lane.b32.xlu2 %v689_v61, %s2781_s24 }
 0x88e   :  { %v683_v62 = vpop.f32.mrf.mxu1 }
 0x896   :  { %v685_v63 = vpop.f32.mrf.mxu1 }
 0x897   :  { %v688_v1 = vpack.c.bf16 %v685_v63, %v683_v62 }
 0x89e   :  { %v949_v6 = vpop.f32.mrf.mxu1 }
 0x89f   :  { %v954_v8 = vmul.f32 5.656854, %v949_v6 }
 0x8a1   :  { %v964_v10 = vadd.f32 %v959_v7, %v954_v8  ;;  %v1010_v7 = vperm.slane %v2928_v60, 4 }
 0x8a3   :  { %v966_v5 = vsel %vm184_vm4, %v964_v10, 0.0 }
 0x8a4   :  { %967 = vadd.xlane.f32.xlu1 %v966_v5  ;;  %v1013_v5 = vperm.slane %v2933_v0, 5 }
 0x8a6   :  { %v951_v14 = vpop.f32.mrf.mxu1 }
 0x8a7   :  { %v955_v17 = vmul.f32 5.656854, %v951_v14 }
 0x8a9   :  { %v965_v18 = vadd.f32 %v961_v16, %v955_v17 }
 0x8ab   :  { %v969_v19 = vsel %vm184_vm4, %v965_v18, 0.0 }
 0x8ac   :  { %970 = vadd.xlane.f32.xlu0 %v969_v19 }
 0x8ce   :  { %v562_v23 = vpop.xlane.xlu1 %561 }
 0x8cf   :  { %2611 = vrcp.f32 %v562_v23 }
 0x8d5   :  { %v2612_v21 = vpop.eup %2611 }
 0x8d6   :  { %v565_v25 = vpop.xlane.xlu2 %564  ;;  %v568_v29 = vmul.f32 %v2612_v21, %v2608_v50  ;;  %v592_v50 = vpack.c.b16 %v2521_v49, %v2521_v49 }
 0x8d7   :  { %2613 = vrcp.f32 %v565_v25 }
 0x8dd   :  { %v2614_v27 = vpop.eup %2613 }
 0x8de   :  { %v569_v30 = vmul.f32 %v2614_v27, %v2610_v57  ;;  %v691_v32 = vpop.permute.xlu2 %690 }
 0x8df   :  { %v696_v33 = vsel %vm479_vm8, %v691_v32, 0 }
 0x8e0   :  { %v570_v34 = vpack.c.bf16 %v569_v30, %v568_v29  ;;  %705 = vmatpush.bf16.msrb.mxu2 %v696_v33 }
 0x8e2   :  { %2378 = vmatmul.msk.bf16.vlgmr.msra.gmra.mxu2 %vm356_vm7, %v570_v34 }
 0x8e6   :  { %v3113_v56 = vpop.f32.mrf.mxu2 }
 0x8ee   :  { %v3116_v62 = vpop.f32.mrf.mxu2 }
 0x8f2   :  { %2382 = vmatmul.msk.bf16.vlgmr.msrb.gmra.mxu2 %vm331_vm2, %v688_v1 }
 0x917   :  { %v968_v36 = vpop.xlane.xlu1 %967 }
 0x918   :  { %v972_v37 = vmul.f32 %v968_v36, %v2917_v38 }
 0x91a   :  { %v974_v39 = vsub.f32 %v964_v10, %v972_v37 }
 0x91c   :  { %v976_v40 = vmul.f32 %v974_v39, %v974_v39 }
 0x91e   :  { %v978_v44 = vsel %vm184_vm4, %v976_v40, 0.0 }
 0x91f   :  { %v971_v45 = vpop.xlane.xlu0 %970  ;;  %979 = vadd.xlane.f32.xlu1 %v978_v44 }
 0x920   :  { %v973_v43 = vmul.f32 %v971_v45, %v2917_v38 }
 0x922   :  { %v975_v31 = vsub.f32 %v965_v18, %v973_v43 }
 0x924   :  { %v977_v47 = vmul.f32 %v975_v31, %v975_v31 }
 0x926   :  { %v981_v12 = vsel %vm184_vm4, %v977_v47, 0.0 }
 0x927   :  { %982 = vadd.xlane.f32.xlu1 %v981_v12 }
 0x940   :  { %593 = vrot.lane.b32.xlu1 %v592_v50, %s2781_s24 }
 0x965   :  { %v586_v8 = vpop.f32.mrf.mxu2 }
 0x96d   :  { %v588_v27 = vpop.f32.mrf.mxu2 }
 0x96e   :  { %v591_v33 = vpack.c.bf16 %v588_v27, %v586_v8 }
 0x992   :  { %v980_v52 = vpop.xlane.xlu1 %979 }
 0x993   :  { %v984_v54 = vmul.f32 %v980_v52, %v2917_v38  ;;  %v3141_v52 = vld [vmem:[%s3596_s5 + $0x18] sm:$0xff]  }
 0x994   :  { %1094 = vmatpush.bf16.msra.mxu2 %v3141_v52 }
 0x995   :  { %v986_v55 = vadd.f32 1e-05, %v984_v54 }
 0x997   :  { %2615 = vrsqrt.f32 %v986_v55  ;;  %vm994_vm12 = vweird.f32 %v986_v55 }
 0x99a   :  { %v983_v57 = vpop.xlane.xlu1 %982 }
 0x99b   :  { %v985_v58 = vmul.f32 %v983_v57, %v2917_v38  ;;  %v3148_v57 = vld [vmem:[%s3596_s5 + $0x10] sm:$0xff]  }
 0x99c   :  { %1095 = vmatpush.bf16.msra.mxu2 %v3148_v57 }
 0x99d   :  { %v2616_v15 = vpop.eup %2615  ;;  %v987_v59 = vadd.f32 1e-05, %v985_v58 }
 0x99e   :  { %v989_v61 = vmul.f32 %v2616_v15, %v986_v55  ;;  %vm995_vm3 = vweird.f32 %v2616_v15 }
 0x99f   :  { %2617 = vrsqrt.f32 %v987_v59  ;;  %vm996_vm13 = vmor %vm994_vm12, %vm995_vm3  ;;  %vm1004_vm15 = vweird.f32 %v987_v59 }
 0x9a0   :  { %v990_v41 = vmul.f32 %v2616_v15, %v989_v61 }
 0x9a2   :  { %v991_v63 = vmul.f32 0.5, %v990_v41 }
 0x9a4   :  { %v992_v1 = vsub.f32 1.5, %v991_v63 }
 0x9a5   :  { %v2618_v3 = vpop.eup %2617 }
 0x9a6   :  { %v993_v4 = vmul.f32 %v2616_v15, %v992_v1  ;;  %v999_v6 = vmul.f32 %v2618_v3, %v987_v59  ;;  %vm1005_vm14 = vweird.f32 %v2618_v3  ;;  %v707_v1 = vpop.f32.mrf.mxu2 }
 0x9a7   :  { %vm1006_vm0 = vmor %vm1004_vm15, %vm1005_vm14 }
 0x9a8   :  { %v997_v9 = vsel %vm996_vm13, %v2616_v15, %v993_v4  ;;  %v1000_v10 = vmul.f32 %v2618_v3, %v999_v6 }
 0x9a9   :  { %v1008_v2 = vmul.f32 %v997_v9, %v974_v39  ;;  %v518_v9 = vadd.f32 %v3048_v22, %v3116_v62 }
 0x9aa   :  { %v1001_v14 = vmul.f32 0.5, %v1000_v10 }
 0x9ab   :  { %v1011_v16 = vmul.f32 %v1010_v7, %v1008_v2 }
 0x9ac   :  { %v1002_v17 = vsub.f32 1.5, %v1001_v14 }
 0x9ad   :  { %v3120_v18 = vadd.f32 %v1013_v5, %v1011_v16 }
 0x9ae   :  { %v1003_v19 = vmul.f32 %v2618_v3, %v1002_v17 }
 0x9af   :  { %v1016_v23 = vsel %vm184_vm4, %v3120_v18, 0.0 }
 0x9b0   :  { %v1007_v25 = vsel %vm1006_vm0, %v2618_v3, %v1003_v19  ;;  %1017 = vadd.xlane.f32.xlu2 %v1016_v23  ;;  %v709_v23 = vpop.f32.mrf.mxu2 }
 0x9b1   :  { %v1009_v21 = vmul.f32 %v1007_v25, %v975_v31 }
 0x9b2   :  { %v594_v29 = vpop.permute.xlu1 %593 }
 0x9b3   :  { %v599_v30 = vsel %vm479_vm8, %v594_v29, 0  ;;  %v1012_v32 = vmul.f32 %v1010_v7, %v1009_v21  ;;  %v516_v7 = vadd.f32 %v3045_v11, %v3113_v56  ;;  %v1060_v11 = vperm.slane %v2928_v60, 5 }
 0x9b4   :  { %608 = vmatpush.bf16.msrb.mxu0 %v599_v30 }
 0x9b5   :  { %v3125_v34 = vadd.f32 %v1013_v5, %v1012_v32 }
 0x9b7   :  { %2379 = vmatmul.msk.bf16.vlgmr.msrb.gmra.mxu0 %vm331_vm2, %v591_v33  ;;  %v1019_v36 = vsel %vm184_vm4, %v3125_v34, 0.0 }
 0x9b8   :  { %1020 = vadd.xlane.f32.xlu0 %v1019_v36 }
 0xa23   :  { %v1018_v37 = vpop.xlane.xlu2 %1017 }
 0xa24   :  { %v1022_v39 = vmul.f32 %v1018_v37, %v2917_v38  ;;  %v1063_v37 = vperm.slane %v2933_v0, 6 }
 0xa26   :  { %v1024_v40 = vsub.f32 %v3120_v18, %v1022_v39 }
 0xa28   :  { %v1026_v44 = vmul.f32 %v1024_v40, %v1024_v40 }
 0xa2a   :  { %v1028_v45 = vsel %vm184_vm4, %v1026_v44, 0.0 }
 0xa2b   :  { %1029 = vadd.xlane.f32.xlu1 %v1028_v45  ;;  %v1021_v43 = vpop.xlane.xlu0 %1020 }
 0xa2c   :  { %v1023_v31 = vmul.f32 %v1021_v43, %v2917_v38 }
 0xa2e   :  { %v1025_v47 = vsub.f32 %v3125_v34, %v1023_v31 }
 0xa30   :  { %v1027_v12 = vmul.f32 %v1025_v47, %v1025_v47 }
 0xa32   :  { %v1031_v49 = vsel %vm184_vm4, %v1027_v12, 0.0 }
 0xa33   :  { %1032 = vadd.xlane.f32.xlu0 %v1031_v49 }
 0xa34   :  { %v610_v58 = vpop.f32.mrf.mxu0 }
 0xa35   :  { %v615_v5 = vadd.f32 %v610_v58, %v516_v7  ;;  %v2504_v7 = vld [vmem:[%s3597_s6 + $0x8] sm:$0xff] }
 0xa36   :  { %807 = vmatpush.bf16.msra.mxu0 %v2504_v7  ;;  %v73_v7 = vand.u32 7, %v2894_v13 }
 0xa37   :  { %v712_v25 = vadd.f32 %v707_v1, %v615_v5 }
 0xa3c   :  { %v612_v8 = vpop.f32.mrf.mxu0 }
 0xa3d   :  { %v616_v14 = vadd.f32 %v612_v8, %v518_v9  ;;  %v2507_v8 = vld [vmem:[%s3597_s6 + $0x20] sm:$0xff] }
 0xa3e   :  { %v2503_v9 = vld [vmem:[%s3597_s6] sm:$0xff] }
 0xa3f   :  { %v713_v21 = vadd.f32 %v709_v23, %v616_v14  ;;  %808 = vmatpush.bf16.msra.mxu0 %v2503_v9  ;;  %v2505_v14 = vld [vmem:[%s3597_s6 + $0x10] sm:$0xff] }
 0xa47   :  { %715 = vrot.lane.b32.xlu0 %v2974_v26, %s2781_s24 }
 0xa9e   :  { %v1030_v50 = vpop.xlane.xlu1 %1029 }
 0xa9f   :  { %v1034_v54 = vmul.f32 %v1030_v50, %v2917_v38 }
 0xaa1   :  { %v1036_v55 = vadd.f32 1e-05, %v1034_v54 }
 0xaa3   :  { %2619 = vrsqrt.f32 %v1036_v55  ;;  %vm1044_vm5 = vweird.f32 %v1036_v55 }
 0xaa6   :  { %v1033_v26 = vpop.xlane.xlu0 %1032 }
 0xaa7   :  { %v1035_v15 = vmul.f32 %v1033_v26, %v2917_v38 }
 0xaa9   :  { %v2620_v59 = vpop.eup %2619  ;;  %v1037_v61 = vadd.f32 1e-05, %v1035_v15 }
 0xaaa   :  { %v1039_v41 = vmul.f32 %v2620_v59, %v1036_v55  ;;  %vm1045_vm1 = vweird.f32 %v2620_v59 }
 0xaab   :  { %2621 = vrsqrt.f32 %v1037_v61  ;;  %vm1046_vm6 = vmor %vm1044_vm5, %vm1045_vm1  ;;  %vm1054_vm10 = vweird.f32 %v1037_v61 }
 0xaac   :  { %v1040_v63 = vmul.f32 %v2620_v59, %v1039_v41 }
 0xaae   :  { %v1041_v3 = vmul.f32 0.5, %v1040_v63 }
 0xab0   :  { %v1042_v4 = vsub.f32 1.5, %v1041_v3  ;;  %v2525_v3 = vunpack.c.l.b16 %v3148_v57 }
 0xab1   :  { %v2622_v6 = vpop.eup %2621 }
 0xab2   :  { %v1043_v10 = vmul.f32 %v2620_v59, %v1042_v4  ;;  %v1049_v2 = vmul.f32 %v2622_v6, %v1037_v61  ;;  %vm1055_vm9 = vweird.f32 %v2622_v6  ;;  %v1269_v4 = vpack.c.b16 %v2525_v3, %v2525_v3 }
 0xab3   :  { %vm1056_vm11 = vmor %vm1054_vm10, %vm1055_vm9 }
 0xab4   :  { %v1050_v16 = vmul.f32 %v2622_v6, %v1049_v2  ;;  %v1047_v17 = vsel %vm1046_vm6, %v2620_v59, %v1043_v10  ;;  %v3184_v59 = vperm.slane %v2971_v24, 3  ;;  %v2506_v10 = vld [vmem:[%s3597_s6 + $0x18] sm:$0xff]  ;;  %vm859_vm6 = vcmask 523264  }
 0xab5   :  { %v1058_v56 = vmul.f32 %v1047_v17, %v1024_v40 }
 0xab6   :  { %v1051_v19 = vmul.f32 0.5, %v1050_v16 }
 0xab7   :  { %v1061_v39 = vmul.f32 %v1060_v11, %v1058_v56 }
 0xab8   :  { %v1052_v27 = vsub.f32 1.5, %v1051_v19 }
 0xab9   :  { %v716_v29 = vpop.permute.xlu0 %715  ;;  %v1064_v43 = vadd.f32 %v1063_v37, %v1061_v39  ;;  %v3223_v39 = vld [vmem:[%s3595_s4] sm:$0xff] }
 0xaba   :  { %v1053_v22 = vmul.f32 %v2622_v6, %v1052_v27  ;;  %v718_v62 = vadd.f32 %v716_v29, %v712_v25  ;;  %v719_v30 = vadd.f32 %v716_v29, %v713_v21 }
 0xabc   :  { %v1057_v32 = vsel %vm1056_vm11, %v2622_v6, %v1053_v22  ;;  %v3158_v33 = vadd.f32 %v718_v62, %v2937_v20  ;;  %v3161_v36 = vadd.f32 %v719_v30, %v2941_v28  ;;  %v2508_v6 = vld [vmem:[%s3597_s6 + $0x28] sm:$0xff] }
 0xabd   :  { %v1059_v44 = vmul.f32 %v1057_v32, %v1025_v47  ;;  %867 = vmatpush.bf16.msra.mxu3 %v2508_v6  ;;  %v71_v6 = vand.u32 7, %v2995_v35 }
 0xabe   :  { %v722_v60 = vsel %vm184_vm4, %v3158_v33, 0.0  ;;  %v725_v40 = vsel %vm184_vm4, %v3161_v36, 0.0 }
 0xabf   :  { %v1062_v45 = vmul.f32 %v1060_v11, %v1059_v44  ;;  %723 = vadd.xlane.f32.xlu0 %v722_v60  ;;  %726 = vadd.xlane.f32.xlu2 %v725_v40  ;;  %v766_v44 = vperm.slane %v3223_v39, 2  ;;  %vm74_vm1 = vcmp.gt.s32.totalorder %v73_v7, %v71_v6 }
 0xac1   :  { %v1065_v31 = vadd.f32 %v1063_v37, %v1062_v45  ;;  %868 = vmatpush.bf16.msra.mxu3 %v2507_v8  ;;  %v3229_v45 = vld [vmem:[%s3595_s4 + $0x8] sm:$0xff] }
 0xac3   :  { %v1071_v20 = vpack.c.bf16 %v1065_v31, %v1064_v43  ;;  %v769_v43 = vperm.slane %v3229_v45, 3 }
 0xac5   :  { %2415 = vmatmul.msk.bf16.vlgmr.msra.gmra.mxu2 %vm184_vm4, %v1071_v20  ;;  %869 = vmatpush.bf16.msra.mxu3 %v2506_v10 }
 0xac9   :  { %870 = vmatpush.bf16.msra.mxu3 %v2505_v14  ;;  %v2788_v14 = vmov 0.0  }
 0xb32   :  { %v724_v28 = vpop.xlane.xlu0 %723  ;;  %v727_v12 = vpop.xlane.xlu2 %726 }
 0xb33   :  { %v728_v0 = vmul.f32 %v724_v28, %v2917_v38  ;;  %v729_v47 = vmul.f32 %v727_v12, %v2917_v38 }
 0xb35   :  { %v3172_v49 = vsub.f32 %v3158_v33, %v728_v0  ;;  %v3175_v50 = vsub.f32 %v3161_v36, %v729_v47 }
 0xb37   :  { %v732_v54 = vmul.f32 %v3172_v49, %v3172_v49  ;;  %v733_v55 = vmul.f32 %v3175_v50, %v3175_v50 }
 0xb39   :  { %v734_v26 = vsel %vm184_vm4, %v732_v54, 0.0  ;;  %v737_v58 = vsel %vm184_vm4, %v733_v55, 0.0 }
 0xb3a   :  { %735 = vadd.xlane.f32.xlu1 %v734_v26  ;;  %738 = vadd.xlane.f32.xlu2 %v737_v58 }
 0xb48   :  { %v1097_v15 = vpop.f32.mrf.mxu2 }
 0xb49   :  { %v1098_v41 = vadd.f32 %v1097_v15, %v3184_v59 }
 0xb50   :  { %v1099_v61 = vpop.f32.mrf.mxu2 }
 0xb51   :  { %v1100_v63 = vadd.f32 %v1099_v61, %v3184_v59 }
 0xb53   :  { %v3188_v1 = vpack.c.bf16 %v1100_v63, %v1098_v41 }
 0xb55   :  { %1104 = vrot.lane.b32.xlu1 %v3188_v1, %s2776_s19 }
 0xb5d   :  { %1153 = vrot.lane.b32.xlu1 %v3188_v1, %s2780_s1 }
 0xb65   :  { %1270 = vrot.lane.b32.xlu1 %v1269_v4, %s2781_s24 }
 0xb6d   :  { %1294 = vrot.lane.b32.xlu1 %v3188_v1, %s2786_s30 }
 0xb75   :  { %1292 = vrot.lane.b32.xlu1 %v3188_v1, %s2784_s2 }
 0xbad   :  { %v739_v2 = vpop.xlane.xlu2 %738  ;;  %v736_v5 = vpop.xlane.xlu1 %735 }
 0xbae   :  { %v741_v16 = vmul.f32 %v739_v2, %v2917_v38  ;;  %v740_v17 = vmul.f32 %v736_v5, %v2917_v38 }
 0xbb0   :  { %v743_v19 = vadd.f32 1e-05, %v741_v16  ;;  %v742_v23 = vadd.f32 1e-05, %v740_v17  ;;  %v76_v16 = vsel %vm74_vm1, -1e+09, %v2788_v14 }
 0xbb2   :  { %2623 = vrsqrt.f32 %v743_v19  ;;  %vm760_vm13 = vweird.f32 %v743_v19  ;;  %vm750_vm15 = vweird.f32 %v742_v23 }
 0xbb3   :  { %2625 = vrsqrt.f32 %v742_v23 }
 0xbb8   :  { %v2624_v25 = vpop.eup %2623 }
 0xbb9   :  { %v2626_v21 = vpop.eup %2625  ;;  %v755_v27 = vmul.f32 %v2624_v25, %v743_v19  ;;  %vm761_vm3 = vweird.f32 %v2624_v25 }
 0xbba   :  { %v745_v11 = vmul.f32 %v2626_v21, %v742_v23  ;;  %vm751_vm12 = vweird.f32 %v2626_v21  ;;  %vm762_vm14 = vmor %vm760_vm13, %vm761_vm3 }
 0xbbb   :  { %v756_v56 = vmul.f32 %v2624_v25, %v755_v27  ;;  %vm752_vm0 = vmor %vm750_vm15, %vm751_vm12 }
 0xbbc   :  { %v746_v29 = vmul.f32 %v2626_v21, %v745_v11 }
 0xbbd   :  { %v757_v22 = vmul.f32 0.5, %v756_v56 }
 0xbbe   :  { %v747_v62 = vmul.f32 0.5, %v746_v29 }
 0xbbf   :  { %v758_v30 = vsub.f32 1.5, %v757_v22 }
 0xbc0   :  { %v748_v32 = vsub.f32 1.5, %v747_v62 }
 0xbc1   :  { %v759_v37 = vmul.f32 %v2624_v25, %v758_v30 }
 0xbc2   :  { %v749_v60 = vmul.f32 %v2626_v21, %v748_v32 }
 0xbc3   :  { %v763_v40 = vsel %vm762_vm14, %v2624_v25, %v759_v37  ;;  %v3244_v25 = vadd.f32 %v76_v16, %v3002_v46 }
 0xbc4   :  { %v765_v31 = vmul.f32 %v763_v40, %v3175_v50  ;;  %v753_v20 = vsel %vm752_vm0, %v2626_v21, %v749_v60 }
 0xbc5   :  { %v764_v28 = vmul.f32 %v753_v20, %v3172_v49  ;;  %v785_v49 = vperm.slane %v2971_v24, 5  ;;  %v72_v24 = vand.u32 7, %v3000_v42 }
 0xbc6   :  { %v768_v12 = vmul.f32 %v766_v44, %v765_v31 }
 0xbc7   :  { %v767_v0 = vmul.f32 %v766_v44, %v764_v28  ;;  %v1105_v47 = vpop.permute.xlu1 %1104  ;;  %vm75_vm5 = vcmp.gt.s32.totalorder %v73_v7, %v72_v24 }
 0xbc8   :  { %v771_v54 = vadd.f32 %v769_v43, %v768_v12  ;;  %v1110_v55 = vsel %vm331_vm2, %v1105_v47, 0  ;;  %v77_v29 = vsel %vm75_vm5, -1e+09, %v2788_v14 }
 0xbc9   :  { %v770_v26 = vadd.f32 %v769_v43, %v767_v0  ;;  %1119 = vmatpush.bf16.xpose.msrb.mxu0 %v1110_v55  ;;  %v3249_v42 = vadd.f32 %v77_v29, %v3009_v51 }
 0xbcb   :  { %v784_v58 = vpack.c.bf16 %v771_v54, %v770_v26 }
 0xbcd   :  { %2391 = vmatmul.msk.bf16.vlgmr.msra.gmra.mxu0 %vm184_vm4, %v784_v58 }
 0xbcf   :  { %v1154_v15 = vpop.permute.xlu1 %1153 }
 0xbd0   :  { %1166 = vmatpush.bf16.msrb.mxu3 %v1154_v15 }
 0xbd7   :  { %v1271_v61 = vpop.permute.xlu1 %1270 }
 0xbd8   :  { %v1276_v41 = vsel %vm479_vm8, %v1271_v61, 0 }
 0xbd9   :  { %1285 = vmatpush.bf16.msrb.mxu1 %v1276_v41 }
 0xbdd   :  { %2416 = vmatmul.msk.bf16.vlgmr.msrb.gmra.mxu0 %vm331_vm2, %v3188_v1 }
 0xc4a   :  { %v810_v50 = vpop.f32.mrf.mxu0 }
 0xc4b   :  { %v811_v63 = vadd.f32 %v810_v50, %v785_v49  ;;  %v1295_v50 = vpop.permute.xlu1 %1294 }
 0xc4c   :  { %v1300_v6 = vsel %vm331_vm2, %v1295_v50, 0 }
 0xc4d   :  { %v817_v3 = vmul.f32 0.044715, %v811_v63  ;;  %v815_v60 = vmul.f32 0.5, %v811_v63 }
 0xc4f   :  { %v819_v4 = vmul.f32 %v817_v3, %v811_v63 }
 0xc51   :  { %v821_v8 = vmul.f32 %v819_v4, %v811_v63 }
 0xc52   :  { %v812_v9 = vpop.f32.mrf.mxu0 }
 0xc53   :  { %v823_v10 = vadd.f32 %v821_v8, %v811_v63  ;;  %v813_v2 = vadd.f32 %v812_v9, %v785_v49 }
 0xc55   :  { %v818_v5 = vmul.f32 0.044715, %v813_v2  ;;  %v825_v17 = vmul.f32 0.7978846, %v823_v10  ;;  %v816_v40 = vmul.f32 0.5, %v813_v2 }
 0xc57   :  { %v820_v19 = vmul.f32 %v818_v5, %v813_v2  ;;  %2627 = vtanh.f32 %v825_v17  ;;  %v1293_v17 = vpop.permute.xlu1 %1292 }
 0xc59   :  { %v822_v23 = vmul.f32 %v820_v19, %v813_v2 }
 0xc5a   :  { %v1121_v21 = vpop.f32.mrf.mxu0 }
 0xc5b   :  { %v824_v35 = vadd.f32 %v822_v23, %v813_v2  ;;  %v1126_v27 = vmul.f32 0.35355338, %v1121_v21 }
 0xc5d   :  { %v826_v11 = vmul.f32 0.7978846, %v824_v35  ;;  %v1128_v56 = vadd.f32 %v1126_v27, %v3244_v25  ;;  %v2628_v62 = vpop.eup %2627 }
 0xc5e   :  { %v829_v32 = vadd.f32 1.0, %v2628_v62 }
 0xc5f   :  { %2629 = vtanh.f32 %v826_v11  ;;  %v1130_v22 = vsel %vm356_vm7, %v1128_v56, -inf }
 0xc60   :  { %1131 = vmax.xlane.f32.xlu2 %v1130_v22  ;;  %v831_v20 = vmul.f32 %v829_v32, %v815_v60 }
 0xc62   :  { %v1123_v30 = vpop.f32.mrf.mxu0 }
 0xc63   :  { %v1127_v46 = vmul.f32 0.35355338, %v1123_v30 }
 0xc65   :  { %v2630_v37 = vpop.eup %2629  ;;  %v1129_v44 = vadd.f32 %v1127_v46, %v3249_v42 }
 0xc66   :  { %v830_v43 = vadd.f32 1.0, %v2630_v37 }
 0xc67   :  { %v1133_v31 = vsel %vm356_vm7, %v1129_v44, -inf }
 0xc68   :  { %1134 = vmax.xlane.f32.xlu2 %v1133_v31  ;;  %v832_v28 = vmul.f32 %v830_v43, %v816_v40 }
 0xc6a   :  { %v833_v12 = vpack.c.bf16 %v832_v28, %v831_v20 }
 0xc6c   :  { %2408 = vmatmul.msk.bf16.vlgmr.msra.gmra.mxu3 %vm859_vm6, %v833_v12 }
 0xcd3   :  { %v1132_v51 = vpop.xlane.xlu2 %1131 }
 0xcd4   :  { %v1136_v0 = vsub.f32 %v1128_v56, %v1132_v51 }
 0xcd6   :  { %v1138_v47 = vmul.f32 1.442695, %v1136_v0 }
 0xcd8   :  { %2631 = vpow2.f32 %v1138_v47 }
 0xcdb   :  { %v1135_v54 = vpop.xlane.xlu2 %1134 }
 0xcdc   :  { %v1137_v55 = vsub.f32 %v1129_v44, %v1135_v54 }
 0xcde   :  { %v2632_v26 = vpop.eup %2631  ;;  %v1140_v58 = vmul.f32 1.442695, %v1137_v55 }
 0xcdf   :  { %v1142_v15 = vsel %vm356_vm7, %v2632_v26, 0.0 }
 0xce0   :  { %2633 = vpow2.f32 %v1140_v58  ;;  %1143 = vadd.xlane.f32.xlu2 %v1142_v15 }
 0xce6   :  { %v2634_v61 = vpop.eup %2633 }
 0xce7   :  { %v1145_v41 = vsel %vm356_vm7, %v2634_v61, 0.0 }
 0xce8   :  { %1146 = vadd.xlane.f32.xlu0 %v1145_v41 }
 0xcef   :  { %v3270_v19 = vpop.f32.mrf.mxu3 }
 0xcf7   :  { %v3272_v24 = vpop.f32.mrf.mxu3 }
 0xcf8   :  { %1176 = vrot.lane.b32.xlu2 %v3188_v1, %s2775_s18 }
 0xcfc   :  { %1174 = vrot.lane.b32.xlu0 %v3188_v1, %s2777_s20 }
 0xd00   :  { %1391 = vrot.lane.b32.xlu2 %v3188_v1, %s2778_s21 }
 0xd04   :  { %1389 = vrot.lane.b32.xlu0 %v3188_v1, %s2782_s25 }
 0xd53   :  { %v1144_v49 = vpop.xlane.xlu2 %1143 }
 0xd54   :  { %2635 = vrcp.f32 %v1144_v49 }
 0xd5a   :  { %v2636_v7 = vpop.eup %2635 }
 0xd5b   :  { %v1147_v63 = vpop.xlane.xlu0 %1146  ;;  %v1177_v3 = vpop.permute.xlu2 %1176  ;;  %v1150_v9 = vmul.f32 %v2636_v7, %v2632_v26 }
 0xd5c   :  { %2637 = vrcp.f32 %v1147_v63  ;;  %v1182_v4 = vsel %vm331_vm2, %v1177_v3, 0 }
 0xd5d   :  { %1191 = vmatpush.bf16.xpose.msrb.mxu2 %v1182_v4 }
 0xd62   :  { %v2638_v8 = vpop.eup %2637 }
 0xd63   :  { %v1151_v10 = vmul.f32 %v2638_v8, %v2634_v61  ;;  %v1392_v2 = vpop.permute.xlu2 %1391 }
 0xd64   :  { %v1397_v5 = vsel %vm331_vm2, %v1392_v2, 0 }
 0xd65   :  { %1309 = vmatpush.bf16.xpose.msra.mxu2 %v1300_v6  ;;  %v1152_v14 = vpack.c.bf16 %v1151_v10, %v1150_v9  ;;  %1406 = vmatpush.bf16.xpose.msra.mxu1 %v1397_v5 }
 0xd67   :  { %2417 = vmatmul.msk.bf16.vlgmr.msrb.gmra.mxu3 %vm356_vm7, %v1152_v14 }
 0xd6e   :  { %v1175_v16 = vpop.permute.xlu0 %1174 }
 0xd6f   :  { %2418 = vmatmul.msk.bf16.vlgmr.msrb.gmra.mxu2 %vm331_vm2, %v1175_v16 }
 0xd76   :  { %v1390_v44 = vpop.permute.xlu0 %1389 }
 0xd7f   :  { %2422 = vmatmul.msk.bf16.vlgmr.msra.gmra.mxu2 %vm331_vm2, %v1293_v17 }
 0xdea   :  { %v1168_v23 = vpop.f32.mrf.mxu3 }
 0xdf2   :  { %v1170_v21 = vpop.f32.mrf.mxu3  ;;  %v1193_v35 = vpop.f32.mrf.mxu2 }
 0xdf3   :  { %v1173_v27 = vpack.c.bf16 %v1170_v21, %v1168_v23  ;;  %v1198_v11 = vmul.f32 0.35355338, %v1193_v35 }
 0xdf5   :  { %2421 = vmatmul.msk.bf16.vlgmr.msrb.gmra.mxu1 %vm331_vm2, %v1173_v27  ;;  %v1200_v56 = vadd.f32 %v1198_v11, %v3244_v25 }
 0xdf7   :  { %v1202_v29 = vsel %vm356_vm7, %v1200_v56, -inf }
 0xdf8   :  { %1203 = vmax.xlane.f32.xlu1 %v1202_v29 }
 0xdfa   :  { %v1195_v22 = vpop.f32.mrf.mxu2 }
 0xdfb   :  { %v1199_v62 = vmul.f32 0.35355338, %v1195_v22 }
 0xdfd   :  { %v1201_v30 = vadd.f32 %v1199_v62, %v3249_v42 }
 0xdff   :  { %v1205_v46 = vsel %vm356_vm7, %v1201_v30, -inf }
 0xe00   :  { %1206 = vmax.xlane.f32.xlu2 %v1205_v46 }
 0xe02   :  { %v1311_v32 = vpop.f32.mrf.mxu2 }
 0xe03   :  { %v1316_v37 = vmul.f32 0.35355338, %v1311_v32 }
 0xe05   :  { %2425 = vmatmul.msk.bf16.vlgmr.msra.gmra.mxu1 %vm331_vm2, %v1390_v44  ;;  %v1318_v60 = vadd.f32 %v1316_v37, %v3244_v25  ;;  %v2529_v37 = vunpack.c.l.b16 %v3141_v52 }
 0xe07   :  { %v1320_v40 = vsel %vm356_vm7, %v1318_v60, -inf  ;;  %v1364_v44 = vpack.c.b16 %v2529_v37, %v2529_v37 }
 0xe08   :  { %1321 = vmax.xlane.f32.xlu0 %v1320_v40 }
 0xe0a   :  { %v1313_v43 = vpop.f32.mrf.mxu2 }
 0xe0b   :  { %v1317_v31 = vmul.f32 0.35355338, %v1313_v43 }
 0xe0d   :  { %v1319_v20 = vadd.f32 %v1317_v31, %v3249_v42 }
 0xe0f   :  { %v1323_v28 = vsel %vm356_vm7, %v1319_v20, -inf }
 0xe10   :  { %1324 = vmax.xlane.f32.xlu1 %v1323_v28 }
 0xe6b   :  { %v1204_v12 = vpop.xlane.xlu1 %1203 }
 0xe6c   :  { %v1208_v51 = vsub.f32 %v1200_v56, %v1204_v12 }
 0xe6e   :  { %v1210_v0 = vmul.f32 1.442695, %v1208_v51 }
 0xe70   :  { %2639 = vpow2.f32 %v1210_v0 }
 0xe72   :  { %v3284_v47 = vpop.f32.mrf.mxu1 }
 0xe73   :  { %v1207_v58 = vpop.xlane.xlu2 %1206 }
 0xe74   :  { %v1209_v41 = vsub.f32 %v1201_v30, %v1207_v58 }
 0xe76   :  { %v2640_v54 = vpop.eup %2639  ;;  %v1212_v50 = vmul.f32 1.442695, %v1209_v41 }
 0xe77   :  { %v1214_v55 = vsel %vm356_vm7, %v2640_v54, 0.0 }
 0xe78   :  { %1215 = vadd.xlane.f32.xlu1 %v1214_v55 }
 0xe7a   :  { %v3287_v26 = vpop.f32.mrf.mxu1 }
 0xe7b   :  { %v1322_v15 = vpop.xlane.xlu0 %1321 }
 0xe7c   :  { %v1326_v61 = vsub.f32 %v1318_v60, %v1322_v15  ;;  %v2526_v15 = vunpack.c.h.b16 %v3148_v57 }
 0xe7e   :  { %v1328_v49 = vmul.f32 1.442695, %v1326_v61 }
 0xe80   :  { %2641 = vpow2.f32 %v1328_v49 }
 0xe81   :  { %2643 = vpow2.f32 %v1212_v50 }
 0xe82   :  { %v1408_v63 = vpop.f32.mrf.mxu1 }
 0xe83   :  { %v1413_v3 = vmul.f32 0.35355338, %v1408_v63  ;;  %v1325_v4 = vpop.xlane.xlu1 %1324 }
 0xe84   :  { %v1327_v8 = vsub.f32 %v1319_v20, %v1325_v4 }
 0xe85   :  { %v1415_v6 = vadd.f32 %v1413_v3, %v3244_v25  ;;  %v3320_v3 = vld [vmem:[%s3595_s4 + $0x10] sm:$0xff] }
 0xe86   :  { %v3290_v7 = vpop.eup %2641  ;;  %v1330_v2 = vmul.f32 1.442695, %v1327_v8  ;;  %v834_v57 = vperm.slane %v3320_v3, 7 }
 0xe87   :  { %v1417_v9 = vsel %vm356_vm7, %v1415_v6, -inf  ;;  %v1332_v10 = vsel %vm356_vm7, %v3290_v7, 0.0  ;;  %v2644_v16 = vpop.eup %2643 }
 0xe88   :  { %1418 = vmax.xlane.f32.xlu2 %v1417_v9  ;;  %1333 = vadd.xlane.f32.xlu1 %v1332_v10  ;;  %2645 = vpow2.f32 %v1330_v2  ;;  %v1217_v25 = vsel %vm356_vm7, %v2644_v16, 0.0  ;;  %v873_v4 = vadd.f32 %v3270_v19, %v834_v57 }
 0xe8a   :  { %v1410_v5 = vpop.f32.mrf.mxu1 }
 0xe8b   :  { %v1414_v14 = vmul.f32 0.35355338, %v1410_v5  ;;  %v2530_v5 = vunpack.c.h.b16 %v3141_v52 }
 0xe8d   :  { %v1416_v17 = vadd.f32 %v1414_v14, %v3249_v42 }
 0xe8e   :  { %v2646_v21 = vpop.eup %2645 }
 0xe8f   :  { %v1420_v23 = vsel %vm356_vm7, %v1416_v17, -inf  ;;  %v1335_v35 = vsel %vm356_vm7, %v2646_v21, 0.0 }
 0xe90   :  { %1218 = vadd.xlane.f32.xlu2 %v1217_v25  ;;  %1421 = vmax.xlane.f32.xlu0 %v1420_v23 }
 0xe98   :  { %1336 = vadd.xlane.f32.xlu2 %v1335_v35 }
 0xea4   :  { %1225 = vrot.lane.b32.xlu0 %v3188_v1, %s2783_s26 }
 0xeac   :  { %1343 = vrot.lane.b32.xlu0 %v3188_v1, %s2787_s11 }
 0xeb4   :  { %1365 = vrot.lane.b32.xlu0 %v1364_v44, %s2781_s24 }
 0xeeb   :  { %v1216_v32 = vpop.xlane.xlu1 %1215 }
 0xefb   :  { %v1419_v27 = vpop.xlane.xlu2 %1418  ;;  %v1334_v55 = vpop.xlane.xlu1 %1333 }
 0xefc   :  { %v1423_v11 = vsub.f32 %v1415_v6, %v1419_v27  ;;  %v875_v6 = vadd.f32 %v3272_v24, %v834_v57 }
 0xefe   :  { %v1425_v42 = vmul.f32 1.442695, %v1423_v11  ;;  %v878_v8 = vadd.f32 %v875_v6, %v3161_v36 }
 0xf00   :  { %2647 = vpow2.f32 %v1425_v42  ;;  %v882_v9 = vsel %vm184_vm4, %v878_v8, 0.0 }
 0xf03   :  { %v1422_v56 = vpop.xlane.xlu0 %1421  ;;  %v1219_v46 = vpop.xlane.xlu2 %1218 }
 0xf04   :  { %v1424_v29 = vsub.f32 %v1416_v17, %v1422_v56 }
 0xf06   :  { %v3303_v22 = vpop.eup %2647  ;;  %v1427_v62 = vmul.f32 1.442695, %v1424_v29 }
 0xf07   :  { %v1429_v30 = vsel %vm356_vm7, %v3303_v22, 0.0 }
 0xf08   :  { %2649 = vpow2.f32 %v1427_v62  ;;  %1430 = vadd.xlane.f32.xlu1 %v1429_v30 }
 0xf09   :  { %2651 = vrcp.f32 %v1219_v46 }
 0xf0a   :  { %2653 = vrcp.f32 %v1216_v32 }
 0xf0b   :  { %v1337_v0 = vpop.xlane.xlu2 %1336 }
 0xf0c   :  { %2655 = vrcp.f32 %v1337_v0 }
 0xf0d   :  { %2657 = vrcp.f32 %v1334_v55 }
 0xf0e   :  { %v2650_v60 = vpop.eup %2649 }
 0xf0f   :  { %v1432_v40 = vsel %vm356_vm7, %v2650_v60, 0.0  ;;  %v2652_v43 = vpop.eup %2651 }
 0xf10   :  { %1433 = vadd.xlane.f32.xlu2 %v1432_v40  ;;  %v2654_v31 = vpop.eup %2653  ;;  %v1223_v20 = vmul.f32 %v2652_v43, %v2644_v16  ;;  %v1461_v16 = vpack.c.b16 %v2530_v5, %v2530_v5 }
 0xf11   :  { %v1222_v28 = vmul.f32 %v2654_v31, %v2640_v54  ;;  %v1246_v54 = vpack.c.b16 %v2526_v15, %v2526_v15 }
 0xf12   :  { %v2656_v61 = vpop.eup %2655  ;;  %1462 = vrot.lane.b32.xlu0 %v1461_v16, %s2781_s24 }
 0xf13   :  { %v1224_v51 = vpack.c.bf16 %v1223_v20, %v1222_v28  ;;  %v2658_v41 = vpop.eup %2657  ;;  %v1341_v49 = vmul.f32 %v2656_v61, %v2646_v21 }
 0xf14   :  { %v1340_v50 = vmul.f32 %v2658_v41, %v3290_v7 }
 0xf16   :  { %v1226_v12 = vpop.permute.xlu0 %1225  ;;  %v1342_v63 = vpack.c.bf16 %v1341_v49, %v1340_v50 }
 0xf17   :  { %1238 = vmatpush.bf16.msra.mxu0 %v1226_v12 }
 0xf1a   :  { %2419 = vmatmul.msk.bf16.vlgmr.msra.gmra.mxu0 %vm356_vm7, %v1224_v51  ;;  %1487 = vrot.lane.b32.xlu0 %v3184_v59, %s2781_s24 }
 0xf1e   :  { %v1344_v58 = vpop.permute.xlu0 %1343 }
 0xf1f   :  { %1356 = vmatpush.bf16.msrb.mxu0 %v1344_v58 }
 0xf21   :  { %1440 = vrot.lane.b32.xlu1 %v3188_v1, %s2785_s27  ;;  %v877_v1 = vadd.f32 %v873_v4, %v3158_v33 }
 0xf23   :  { %v879_v7 = vsel %vm184_vm4, %v877_v1, 0.0 }
 0xf26   :  { %v1366_v14 = vpop.permute.xlu0 %1365 }
 0xf27   :  { %v1371_v33 = vsel %vm479_vm8, %v1366_v14, 0 }
 0xf28   :  { %1247 = vrot.lane.b32.xlu2 %v1246_v54, %s2781_s24 }
 0xf2a   :  { %2423 = vmatmul.msk.bf16.vlgmr.msrb.gmra.mxu0 %vm356_vm7, %v1342_v63 }
 0xf4b   :  { %880 = vadd.xlane.f32.xlu1 %v879_v7 }
 0xf51   :  { %883 = vadd.xlane.f32.xlu2 %v882_v9 }
 0xf7b   :  { %v1431_v2 = vpop.xlane.xlu1 %1430 }
 0xf83   :  { %v1434_v10 = vpop.xlane.xlu2 %1433 }
 0xf84   :  { %2659 = vrcp.f32 %v1434_v10  ;;  %v1463_v32 = vpop.permute.xlu0 %1462 }
 0xf85   :  { %2661 = vrcp.f32 %v1431_v2  ;;  %v1468_v37 = vsel %vm479_vm8, %v1463_v32, 0  ;;  %v3380_v2 = vld [vmem:[%s3596_s5 + $0x20] sm:$0xff]  }
 0xf86   :  { %1477 = vmatpush.bf16.msra.mxu0 %v1468_v37 }
 0xf8a   :  { %v2660_v36 = vpop.eup %2659 }
 0xf8b   :  { %v1248_v19 = vpop.permute.xlu2 %1247  ;;  %v2662_v17 = vpop.eup %2661  ;;  %v1438_v25 = vmul.f32 %v2660_v36, %v2650_v60 }
 0xf8c   :  { %v1253_v24 = vsel %vm479_vm8, %v1248_v19, 0  ;;  %v1437_v23 = vmul.f32 %v2662_v17, %v3303_v22  ;;  %v1488_v55 = vpop.permute.xlu0 %1487 }
 0xf8d   :  { %1262 = vmatpush.bf16.msra.mxu3 %v1253_v24 }
 0xf8e   :  { %v1439_v52 = vpack.c.bf16 %v1438_v25, %v1437_v23 }
 0xf91   :  { %1380 = vmatpush.bf16.msrb.mxu3 %v1371_v33 }
 0xf93   :  { %v1441_v21 = vpop.permute.xlu1 %1440 }
 0xf94   :  { %1453 = vmatpush.bf16.msrb.mxu2 %v1441_v21 }
 0xf97   :  { %v1240_v35 = vpop.f32.mrf.mxu0  ;;  %2426 = vmatmul.msk.bf16.vlgmr.msrb.gmra.mxu2 %vm356_vm7, %v1439_v52 }
 0xf9f   :  { %v1242_v27 = vpop.f32.mrf.mxu0 }
 0xfa0   :  { %v1245_v11 = vpack.c.bf16 %v1242_v27, %v1240_v35 }
 0xfa2   :  { %2420 = vmatmul.msk.bf16.vlgmr.msra.gmra.mxu3 %vm331_vm2, %v1245_v11 }
 0xfa7   :  { %v1358_v42 = vpop.f32.mrf.mxu0 }
 0xfaf   :  { %v1360_v56 = vpop.f32.mrf.mxu0 }
 0xfb0   :  { %v1363_v29 = vpack.c.bf16 %v1360_v56, %v1358_v42 }
 0xfb2   :  { %2424 = vmatmul.msk.bf16.vlgmr.msrb.gmra.mxu3 %vm331_vm2, %v1363_v29 }
 0xfbe   :  { %v881_v62 = vpop.xlane.xlu1 %880 }
 0xfbf   :  { %v885_v22 = vmul.f32 %v881_v62, %v2917_v38 }
 0xfc1   :  { %v3340_v30 = vsub.f32 %v877_v1, %v885_v22 }
 0xfc3   :  { %v889_v59 = vmul.f32 %v3340_v30, %v3340_v30 }
 0xfc4   :  { %v884_v12 = vpop.xlane.xlu2 %883 }
 0xfc5   :  { %v891_v46 = vsel %vm184_vm4, %v889_v59, 0.0  ;;  %v886_v15 = vmul.f32 %v884_v12, %v2917_v38 }
 0xfc6   :  { %892 = vadd.xlane.f32.xlu1 %v891_v46 }
 0xfc7   :  { %v3353_v50 = vsub.f32 %v878_v8, %v886_v15  ;;  %v3368_v8 = vld [vmem:[%s3596_s5 + $0x28] sm:$0xff]   ;;  %v926_v15 = vperm.slane %v3229_v45, 4 }
 0xfc8   :  { %1572 = vmatpush.bf16.msra.mxu3 %v3368_v8 }
 0xfc9   :  { %v890_v6 = vmul.f32 %v3353_v50, %v3353_v50 }
 0xfcc   :  { %1573 = vmatpush.bf16.msra.mxu3 %v3380_v2 }
0x101a   :  { %v1455_v44 = vpop.f32.mrf.mxu2 }
0x1022   :  { %v1457_v60 = vpop.f32.mrf.mxu2 }
0x1023   :  { %v1460_v40 = vpack.c.bf16 %v1457_v60, %v1455_v44  ;;  %v3398_v44 = vperm.slane %v3320_v3, 4 }
0x1025   :  { %2427 = vmatmul.msk.bf16.vlgmr.msra.gmra.mxu0 %vm331_vm2, %v1460_v40  ;;  %v1264_v43 = vpop.f32.mrf.mxu3 }
0x1026   :  { %v1288_v28 = vadd.f32 %v3284_v47, %v1264_v43 }
0x102d   :  { %v1266_v31 = vpop.f32.mrf.mxu3 }
0x102e   :  { %v1290_v49 = vadd.f32 %v3287_v26, %v1266_v31  ;;  %v894_v26 = vsel %vm184_vm4, %v890_v6, 0.0 }
0x1035   :  { %v1382_v20 = vpop.f32.mrf.mxu3 }
0x1036   :  { %v1387_v51 = vadd.f32 %v1382_v20, %v1288_v28  ;;  %v923_v28 = vperm.slane %v3223_v39, 3 }
0x1039   :  { %v893_v25 = vpop.xlane.xlu1 %892 }
0x103a   :  { %v897_v21 = vmul.f32 %v893_v25, %v2917_v38 }
0x103c   :  { %v899_v35 = vadd.f32 1e-05, %v897_v21  ;;  %v1541_v21 = vperm.slane %v3229_v45, 7 }
0x103d   :  { %v1384_v41 = vpop.f32.mrf.mxu3 }
0x103e   :  { %v1388_v63 = vadd.f32 %v1384_v41, %v1290_v49  ;;  %vm907_vm12 = vweird.f32 %v899_v35 }
0x10a2   :  { %v1479_v0 = vpop.f32.mrf.mxu0 }
0x10a3   :  { %v1484_v58 = vadd.f32 %v1479_v0, %v1387_v51 }
0x10a5   :  { %v1490_v61 = vadd.f32 %v1488_v55, %v1484_v58 }
0x10a7   :  { %v3351_v54 = vadd.f32 %v1490_v61, %v3120_v18 }
0x10a9   :  { %v1494_v47 = vsel %vm184_vm4, %v3351_v54, 0.0 }
0x10aa   :  { %1495 = vadd.xlane.f32.xlu0 %v1494_v47  ;;  %v1481_v57 = vpop.f32.mrf.mxu0 }
0x10ab   :  { %v1485_v4 = vadd.f32 %v1481_v57, %v1388_v63 }
0x10ad   :  { %v1491_v1 = vadd.f32 %v1488_v55, %v1485_v4 }
0x10af   :  { %v3360_v7 = vadd.f32 %v1491_v1, %v3125_v34 }
0x10b1   :  { %v1497_v18 = vsel %vm184_vm4, %v3360_v7, 0.0 }
0x10b2   :  { %895 = vadd.xlane.f32.xlu0 %v894_v26  ;;  %1498 = vadd.xlane.f32.xlu2 %v1497_v18 }
0x10c6   :  { %1583 = vrot.lane.b32.xlu0 %v3368_v8, %s2776_s19 }
0x111d   :  { %v1496_v9 = vpop.xlane.xlu0 %1495 }
0x111e   :  { %v1500_v34 = vmul.f32 %v1496_v9, %v2917_v38 }
0x1120   :  { %v3375_v10 = vsub.f32 %v3351_v54, %v1500_v34 }
0x1122   :  { %v1504_v5 = vmul.f32 %v3375_v10, %v3375_v10 }
0x1124   :  { %v1506_v14 = vsel %vm184_vm4, %v1504_v5, 0.0 }
0x1125   :  { %1507 = vadd.xlane.f32.xlu2 %v1506_v14  ;;  %v1499_v16 = vpop.xlane.xlu2 %1498  ;;  %v896_v17 = vpop.xlane.xlu0 %895 }
0x1126   :  { %v1501_v19 = vmul.f32 %v1499_v16, %v2917_v38  ;;  %v898_v23 = vmul.f32 %v896_v17, %v2917_v38 }
0x1128   :  { %v3388_v33 = vsub.f32 %v3360_v7, %v1501_v19  ;;  %v900_v52 = vadd.f32 1e-05, %v898_v23 }
0x112a   :  { %v1505_v24 = vmul.f32 %v3388_v33, %v3388_v33  ;;  %2663 = vrsqrt.f32 %v900_v52  ;;  %vm917_vm11 = vweird.f32 %v900_v52 }
0x112b   :  { %2665 = vrsqrt.f32 %v899_v35 }
0x112c   :  { %v1509_v36 = vsel %vm184_vm4, %v1505_v24, 0.0 }
0x112d   :  { %1510 = vadd.xlane.f32.xlu1 %v1509_v36  ;;  %v1538_v36 = vperm.slane %v3223_v39, 6 }
0x1130   :  { %v2664_v27 = vpop.eup %2663 }
0x1131   :  { %v2666_v42 = vpop.eup %2665  ;;  %v912_v56 = vmul.f32 %v2664_v27, %v900_v52  ;;  %vm918_vm9 = vweird.f32 %v2664_v27 }
0x1132   :  { %v902_v29 = vmul.f32 %v2666_v42, %v899_v35  ;;  %vm908_vm10 = vweird.f32 %v2666_v42  ;;  %vm919_vm3 = vmor %vm917_vm11, %vm918_vm9 }
0x1133   :  { %v913_v62 = vmul.f32 %v2664_v27, %v912_v56  ;;  %vm909_vm13 = vmor %vm907_vm12, %vm908_vm10 }
0x1134   :  { %v903_v22 = vmul.f32 %v2666_v42, %v902_v29 }
0x1135   :  { %v914_v59 = vmul.f32 0.5, %v913_v62 }
0x1136   :  { %v904_v46 = vmul.f32 0.5, %v903_v22 }
0x1137   :  { %v915_v32 = vsub.f32 1.5, %v914_v59 }
0x1138   :  { %v1584_v11 = vpop.permute.xlu0 %1583  ;;  %v905_v37 = vsub.f32 1.5, %v904_v46 }
0x1139   :  { %1600 = vmatpush.bf16.msrb.mxu1 %v1584_v11  ;;  %v916_v60 = vmul.f32 %v2664_v27, %v915_v32 }
0x113a   :  { %v906_v40 = vmul.f32 %v2666_v42, %v905_v37 }
0x113b   :  { %v920_v43 = vsel %vm919_vm3, %v2664_v27, %v916_v60 }
0x113c   :  { %v910_v31 = vsel %vm909_vm13, %v2666_v42, %v906_v40  ;;  %v922_v20 = vmul.f32 %v920_v43, %v3353_v50 }
0x113d   :  { %1581 = vrot.lane.b32.xlu2 %v3380_v2, %s2776_s19  ;;  %v921_v12 = vmul.f32 %v910_v31, %v3340_v30 }
0x113e   :  { %v925_v55 = vmul.f32 %v923_v28, %v922_v20 }
0x113f   :  { %v924_v61 = vmul.f32 %v923_v28, %v921_v12 }
0x1140   :  { %v928_v41 = vadd.f32 %v926_v15, %v925_v55  ;;  %v2533_v55 = vunpack.c.l.b16 %v3380_v2 }
0x1141   :  { %v927_v49 = vadd.f32 %v926_v15, %v924_v61 }
0x1143   :  { %v1580_v50 = vpack.c.bf16 %v928_v41, %v927_v49 }
0x1146   :  { %1588 = vrot.lane.b32.xlu1 %v3398_v44, %s2776_s19 }
0x1198   :  { %v1508_v51 = vpop.xlane.xlu2 %1507 }
0x1199   :  { %v1512_v0 = vmul.f32 %v1508_v51, %v2917_v38 }
0x119b   :  { %v1514_v58 = vadd.f32 1e-05, %v1512_v0 }
0x119d   :  { %2667 = vrsqrt.f32 %v1514_v58  ;;  %vm1522_vm15 = vweird.f32 %v1514_v58 }
0x11a0   :  { %v1582_v63 = vpop.permute.xlu2 %1581  ;;  %v1511_v47 = vpop.xlane.xlu1 %1510 }
0x11a1   :  { %v1513_v57 = vmul.f32 %v1511_v47, %v2917_v38  ;;  %1601 = vmatpush.bf16.msrb.mxu1 %v1582_v63 }
0x11a3   :  { %v2668_v4 = vpop.eup %2667  ;;  %v1515_v1 = vadd.f32 1e-05, %v1513_v57 }
0x11a4   :  { %v1517_v30 = vmul.f32 %v2668_v4, %v1514_v58  ;;  %2433 = vmatmul.msk.bf16.vlgmr.msrb.gmra.mxu1 %vm184_vm4, %v1580_v50  ;;  %vm1523_vm14 = vweird.f32 %v2668_v4  ;;  %v1775_v58 = vpack.c.b16 %v2533_v55, %v2533_v55 }
0x11a5   :  { %2669 = vrsqrt.f32 %v1515_v1  ;;  %vm1524_vm0 = vmor %vm1522_vm15, %vm1523_vm14  ;;  %vm1532_vm5 = vweird.f32 %v1515_v1 }
0x11a6   :  { %v1518_v6 = vmul.f32 %v2668_v4, %v1517_v30 }
0x11a8   :  { %v1519_v26 = vmul.f32 0.5, %v1518_v6 }
0x11aa   :  { %v1520_v18 = vsub.f32 1.5, %v1519_v26 }
0x11ab   :  { %v2670_v9 = vpop.eup %2669 }
0x11ac   :  { %v1521_v34 = vmul.f32 %v2668_v4, %v1520_v18  ;;  %v1527_v5 = vmul.f32 %v2670_v9, %v1515_v1  ;;  %vm1533_vm1 = vweird.f32 %v2670_v9 }
0x11ad   :  { %vm1534_vm9 = vmor %vm1532_vm5, %vm1533_vm1  ;;  %vm2275_vm5 = vcmask 7168  }
0x11ae   :  { %v1528_v14 = vmul.f32 %v2670_v9, %v1527_v5  ;;  %v1525_v16 = vsel %vm1524_vm0, %v2668_v4, %v1521_v34 }
0x11af   :  { %v1536_v17 = vmul.f32 %v1525_v16, %v3375_v10 }
0x11b0   :  { %v1529_v19 = vmul.f32 0.5, %v1528_v14 }
0x11b1   :  { %v1539_v52 = vmul.f32 %v1538_v36, %v1536_v17 }
0x11b2   :  { %v1530_v24 = vsub.f32 1.5, %v1529_v19 }
0x11b3   :  { %v1542_v11 = vadd.f32 %v1541_v21, %v1539_v52 }
0x11b4   :  { %v1531_v25 = vmul.f32 %v2670_v9, %v1530_v24 }
0x11b6   :  { %v1535_v23 = vsel %vm1534_vm9, %v2670_v9, %v1531_v25 }
0x11b7   :  { %v1537_v35 = vmul.f32 %v1535_v23, %v3388_v33 }
0x11b8   :  { %v1589_v62 = vpop.permute.xlu1 %1588 }
0x11b9   :  { %v1540_v27 = vmul.f32 %v1538_v36, %v1537_v35 }
0x11bb   :  { %v1543_v42 = vadd.f32 %v1541_v21, %v1540_v27 }
0x11bd   :  { %v1549_v56 = vpack.c.bf16 %v1543_v42, %v1542_v11 }
0x11bf   :  { %2432 = vmatmul.msk.bf16.vlgmr.msra.gmra.mxu3 %vm184_vm4, %v1549_v56 }
0x1221   :  { %v1603_v29 = vpop.f32.mrf.mxu1 }
0x1222   :  { %v1604_v22 = vadd.f32 %v1603_v29, %v1589_v62 }
0x1229   :  { %v1605_v39 = vpop.f32.mrf.mxu1 }
0x122a   :  { %v1606_v10 = vadd.f32 %v1605_v39, %v1589_v62 }
0x122c   :  { %v3414_v59 = vpack.c.bf16 %v1606_v10, %v1604_v22 }
0x122e   :  { %v1614_v46 = vsel %vm331_vm2, %v3414_v59, 0 }
0x122f   :  { %1623 = vmatpush.bf16.xpose.msra.mxu2 %v1614_v46 }
0x1242   :  { %v1575_v45 = vpop.f32.mrf.mxu3 }
0x1243   :  { %v1576_v33 = vadd.f32 %v1575_v45, %v3398_v44 }
0x124a   :  { %v1577_v32 = vpop.f32.mrf.mxu3 }
0x124b   :  { %v1578_v37 = vadd.f32 %v1577_v32, %v3398_v44 }
0x124d   :  { %v1608_v60 = vpack.c.bf16 %v1578_v37, %v1576_v33 }
0x124f   :  { %2434 = vmatmul.msk.bf16.vlgmr.msra.gmra.mxu2 %vm331_vm2, %v1608_v60 }
0x12d2   :  { %v1625_v40 = vpop.f32.mrf.mxu2 }
0x12d3   :  { %v1630_v43 = vmul.f32 0.35355338, %v1625_v40 }
0x12d5   :  { %v1632_v31 = vadd.f32 %v1630_v43, %v3006_v48 }
0x12d7   :  { %v1634_v20 = vsel %vm356_vm7, %v1632_v31, -inf }
0x12d8   :  { %1635 = vmax.xlane.f32.xlu0 %v1634_v20 }
0x12da   :  { %v1627_v28 = vpop.f32.mrf.mxu2 }
0x12db   :  { %v1631_v12 = vmul.f32 0.35355338, %v1627_v28 }
0x12dd   :  { %v1633_v51 = vadd.f32 %v1631_v12, %v3013_v53 }
0x12df   :  { %v1637_v0 = vsel %vm356_vm7, %v1633_v51, -inf }
0x12e0   :  { %1638 = vmax.xlane.f32.xlu2 %v1637_v0 }
0x12f8   :  { %1658 = vrot.lane.b32.xlu2 %v3414_v59, %s2776_s19 }
0x1300   :  { %1776 = vrot.lane.b32.xlu2 %v1775_v58, %s2781_s24 }
0x1308   :  { %1897 = vrot.lane.b32.xlu2 %v3414_v59, %s2782_s25 }
0x134b   :  { %v1636_v15 = vpop.xlane.xlu0 %1635 }
0x134c   :  { %v1640_v61 = vsub.f32 %v1632_v31, %v1636_v15 }
0x134e   :  { %v1642_v41 = vmul.f32 1.442695, %v1640_v61 }
0x1350   :  { %2671 = vpow2.f32 %v1642_v41 }
0x1353   :  { %v1639_v49 = vpop.xlane.xlu2 %1638 }
0x1354   :  { %v1641_v63 = vsub.f32 %v1633_v51, %v1639_v49 }
0x1356   :  { %v2672_v47 = vpop.eup %2671  ;;  %v1644_v57 = vmul.f32 1.442695, %v1641_v63 }
0x1357   :  { %v1646_v50 = vsel %vm356_vm7, %v2672_v47, 0.0 }
0x1358   :  { %2673 = vpow2.f32 %v1644_v57  ;;  %1647 = vadd.xlane.f32.xlu1 %v1646_v50 }
0x135b   :  { %v1659_v4 = vpop.permute.xlu2 %1658 }
0x135c   :  { %1671 = vmatpush.bf16.msrb.mxu0 %v1659_v4 }
0x135e   :  { %v2674_v1 = vpop.eup %2673 }
0x135f   :  { %v1649_v30 = vsel %vm356_vm7, %v2674_v1, 0.0 }
0x1360   :  { %1650 = vadd.xlane.f32.xlu0 %v1649_v30 }
0x1363   :  { %v1777_v6 = vpop.permute.xlu2 %1776 }
0x1364   :  { %v1782_v26 = vsel %vm479_vm8, %v1777_v6, 0 }
0x1365   :  { %1791 = vmatpush.bf16.msra.mxu0 %v1782_v26 }
0x136b   :  { %v1898_v19 = vpop.permute.xlu2 %1897 }
0x136c   :  { %v1903_v36 = vsel %vm331_vm2, %v1898_v19, 0 }
0x1371   :  { %1682 = vrot.lane.b32.xlu1 %v3414_v59, %s2777_s20 }
0x1374   :  { %1680 = vrot.lane.b32.xlu0 %v1608_v60, %s2777_s20  ;;  %s2305_s20 = sshll.u32 %s3598_s7, 4  ;;  %s2306_s20 = int_to_ptr.hbm [resolvable:$true] %s2305_s20 }
0x1379   :  { %1798 = vrot.lane.b32.xlu1 %v1608_v60, %s2784_s2 }
0x137c   :  { %1800 = vrot.lane.b32.xlu0 %v3414_v59, %s2784_s2  ;;  %s2317_s2 = sshll.u32 %s3599_s8, 4  ;;  %s2318_s2 = int_to_ptr.hbm [resolvable:$true] %s2317_s2 }
0x1384   :  { %1895 = vrot.lane.b32.xlu0 %v1608_v60, %s2782_s25 }
0x13cb   :  { %v1648_v18 = vpop.xlane.xlu1 %1647 }
0x13cc   :  { %2675 = vrcp.f32 %v1648_v18 }
0x13d2   :  { %v2676_v34 = vpop.eup %2675 }
0x13d3   :  { %v1651_v9 = vpop.xlane.xlu0 %1650  ;;  %v1654_v14 = vmul.f32 %v2676_v34, %v2672_v47 }
0x13d4   :  { %2677 = vrcp.f32 %v1651_v9 }
0x13da   :  { %v2678_v5 = vpop.eup %2677 }
0x13db   :  { %v1655_v16 = vmul.f32 %v2678_v5, %v2674_v1 }
0x13dd   :  { %v1656_v24 = vpack.c.bf16 %v1655_v16, %v1654_v14 }
0x13df   :  { %2435 = vmatmul.msk.bf16.vlgmr.msrb.gmra.mxu0 %vm356_vm7, %v1656_v24 }
0x13e0   :  { %1912 = vmatpush.bf16.xpose.msrb.mxu0 %v1903_v36 }
0x13e3   :  { %v1683_v17 = vpop.permute.xlu1 %1682 }
0x13e4   :  { %v1688_v25 = vsel %vm331_vm2, %v1683_v17, 0 }
0x13e5   :  { %1697 = vmatpush.bf16.xpose.msrb.mxu3 %v1688_v25 }
0x13e6   :  { %v1681_v23 = vpop.permute.xlu0 %1680 }
0x13eb   :  { %v1799_v35 = vpop.permute.xlu1 %1798 }
0x13ec   :  { %2436 = vmatmul.msk.bf16.vlgmr.msrb.gmra.mxu3 %vm331_vm2, %v1681_v23 }
0x13ee   :  { %v1801_v21 = vpop.permute.xlu0 %1800 }
0x13ef   :  { %v1806_v52 = vsel %vm331_vm2, %v1801_v21, 0 }
0x13f0   :  { %1815 = vmatpush.bf16.xpose.msra.mxu3 %v1806_v52 }
0x13f6   :  { %v1896_v22 = vpop.permute.xlu0 %1895 }
0x13fc   :  { %2440 = vmatmul.msk.bf16.vlgmr.msra.gmra.mxu3 %vm331_vm2, %v1799_v35 }
0x145c   :  { %v1673_v27 = vpop.f32.mrf.mxu0 }
0x1464   :  { %v1675_v11 = vpop.f32.mrf.mxu0 }
0x1465   :  { %v1678_v42 = vpack.c.bf16 %v1675_v11, %v1673_v27 }
0x1467   :  { %2439 = vmatmul.msk.bf16.vlgmr.msra.gmra.mxu0 %vm331_vm2, %v1678_v42 }
0x146f   :  { %v1699_v56 = vpop.f32.mrf.mxu3 }
0x1470   :  { %v1704_v29 = vmul.f32 0.35355338, %v1699_v56 }
0x1472   :  { %v1706_v62 = vadd.f32 %v1704_v29, %v3006_v48 }
0x1474   :  { %v1708_v39 = vsel %vm356_vm7, %v1706_v62, -inf }
0x1475   :  { %1709 = vmax.xlane.f32.xlu1 %v1708_v39 }
0x1477   :  { %v1701_v10 = vpop.f32.mrf.mxu3  ;;  %2443 = vmatmul.msk.bf16.vlgmr.msrb.gmra.mxu0 %vm331_vm2, %v1896_v22 }
0x1478   :  { %v1705_v46 = vmul.f32 0.35355338, %v1701_v10 }
0x147a   :  { %v1707_v45 = vadd.f32 %v1705_v46, %v3013_v53 }
0x147c   :  { %v1711_v32 = vsel %vm356_vm7, %v1707_v45, -inf }
0x147d   :  { %1712 = vmax.xlane.f32.xlu2 %v1711_v32 }
0x147f   :  { %v1817_v33 = vpop.f32.mrf.mxu3 }
0x1480   :  { %v1822_v37 = vmul.f32 0.35355338, %v1817_v33 }
0x1482   :  { %v1824_v60 = vadd.f32 %v1822_v37, %v3006_v48 }
0x1484   :  { %v1826_v40 = vsel %vm356_vm7, %v1824_v60, -inf }
0x1485   :  { %1827 = vmax.xlane.f32.xlu0 %v1826_v40 }
0x1487   :  { %v1819_v43 = vpop.f32.mrf.mxu3 }
0x1488   :  { %v1823_v31 = vmul.f32 0.35355338, %v1819_v43 }
0x148a   :  { %v1825_v20 = vadd.f32 %v1823_v31, %v3013_v53  ;;  %v2537_v31 = vunpack.c.l.b16 %v3368_v8 }
0x148c   :  { %v1829_v28 = vsel %vm356_vm7, %v1825_v20, -inf }
0x148d   :  { %1830 = vmax.xlane.f32.xlu1 %v1829_v28 }
0x14e4   :  { %v3457_v12 = vpop.f32.mrf.mxu0 }
0x14e8   :  { %v1710_v51 = vpop.xlane.xlu1 %1709 }
0x14e9   :  { %v1714_v0 = vsub.f32 %v1706_v62, %v1710_v51 }
0x14eb   :  { %v1716_v55 = vmul.f32 1.442695, %v1714_v0  ;;  %v2538_v0 = vunpack.c.h.b16 %v3368_v8 }
0x14ec   :  { %v3459_v58 = vpop.f32.mrf.mxu0 }
0x14ed   :  { %2679 = vpow2.f32 %v1716_v55 }
0x14f0   :  { %v1713_v15 = vpop.xlane.xlu2 %1712 }
0x14f1   :  { %v1715_v61 = vsub.f32 %v1707_v45, %v1713_v15 }
0x14f3   :  { %v2680_v41 = vpop.eup %2679  ;;  %v1718_v49 = vmul.f32 1.442695, %v1715_v61 }
0x14f4   :  { %v1914_v63 = vpop.f32.mrf.mxu0  ;;  %v1720_v47 = vsel %vm356_vm7, %v2680_v41, 0.0 }
0x14f5   :  { %v1919_v57 = vmul.f32 0.35355338, %v1914_v63  ;;  %1721 = vadd.xlane.f32.xlu1 %v1720_v47  ;;  %2681 = vpow2.f32 %v1718_v49 }
0x14f7   :  { %v1921_v50 = vadd.f32 %v1919_v57, %v3006_v48 }
0x14f8   :  { %v1828_v4 = vpop.xlane.xlu0 %1827 }
0x14f9   :  { %v1832_v1 = vsub.f32 %v1824_v60, %v1828_v4  ;;  %v1923_v30 = vsel %vm356_vm7, %v1921_v50, -inf  ;;  %v2534_v60 = vunpack.c.h.b16 %v3380_v2  ;;  %v1967_v2 = vpack.c.b16 %v2538_v0, %v2538_v0 }
0x14fa   :  { %1924 = vmax.xlane.f32.xlu2 %v1923_v30 }
0x14fb   :  { %v1834_v6 = vmul.f32 1.442695, %v1832_v1  ;;  %v2682_v9 = vpop.eup %2681  ;;  %v1752_v40 = vpack.c.b16 %v2534_v60, %v2534_v60 }
0x14fc   :  { %v1916_v26 = vpop.f32.mrf.mxu0  ;;  %v1723_v19 = vsel %vm356_vm7, %v2682_v9, 0.0 }
0x14fd   :  { %2683 = vpow2.f32 %v1834_v6  ;;  %v1920_v18 = vmul.f32 0.35355338, %v1916_v26 }
0x14ff   :  { %v1922_v34 = vadd.f32 %v1920_v18, %v3013_v53 }
0x1500   :  { %v1831_v5 = vpop.xlane.xlu1 %1830 }
0x1501   :  { %v1833_v14 = vsub.f32 %v1825_v20, %v1831_v5  ;;  %v1926_v16 = vsel %vm356_vm7, %v1922_v34, -inf  ;;  %v1870_v20 = vpack.c.b16 %v2537_v31, %v2537_v31 }
0x1502   :  { %1927 = vmax.xlane.f32.xlu0 %v1926_v16  ;;  %1724 = vadd.xlane.f32.xlu2 %v1723_v19 }
0x1503   :  { %v3467_v48 = vpop.eup %2683  ;;  %v1836_v24 = vmul.f32 1.442695, %v1833_v14 }
0x1504   :  { %v1838_v36 = vsel %vm356_vm7, %v3467_v48, 0.0 }
0x1505   :  { %2685 = vpow2.f32 %v1836_v24  ;;  %1839 = vadd.xlane.f32.xlu1 %v1838_v36 }
0x150b   :  { %v3471_v17 = vpop.eup %2685 }
0x150c   :  { %v1841_v53 = vsel %vm356_vm7, %v3471_v17, 0.0 }
0x150d   :  { %1842 = vadd.xlane.f32.xlu2 %v1841_v53 }
0x1516   :  { %1731 = vrot.lane.b32.xlu0 %v3414_v59, %s2775_s18 }
0x151e   :  { %1946 = vrot.lane.b32.xlu0 %v3414_v59, %s2778_s21  ;;  %s2790_s21 = smov 128  }
0x1526   :  { %1871 = vrot.lane.b32.xlu0 %v1870_v20, %s2781_s24  ;;  %v2510_v20 = vld [vmem:[%s3597_s6 + $0x38] sm:$0xff] }
0x152e   :  { %1968 = vrot.lane.b32.xlu0 %v1967_v2, %s2781_s24 }
0x1536   :  { %1992 = vrot.lane.b32.xlu0 %v3398_v44, %s2781_s24 }
0x1568   :  { %v1722_v29 = vpop.xlane.xlu1 %1721 }
0x156d   :  { %v1925_v25 = vpop.xlane.xlu2 %1924 }
0x156e   :  { %v1929_v23 = vsub.f32 %v1921_v50, %v1925_v25 }
0x1570   :  { %v1931_v21 = vmul.f32 1.442695, %v1929_v23 }
0x1572   :  { %2687 = vpow2.f32 %v1931_v21 }
0x1575   :  { %v1928_v52 = vpop.xlane.xlu0 %1927  ;;  %v1725_v56 = vpop.xlane.xlu2 %1724 }
0x1576   :  { %v1930_v35 = vsub.f32 %v1922_v34, %v1928_v52 }
0x1578   :  { %v2688_v27 = vpop.eup %2687  ;;  %v1933_v11 = vmul.f32 1.442695, %v1930_v35  ;;  %v1840_v43 = vpop.xlane.xlu1 %1839 }
0x1579   :  { %v1935_v42 = vsel %vm356_vm7, %v2688_v27, 0.0 }
0x157a   :  { %2689 = vpow2.f32 %v1933_v11  ;;  %1936 = vadd.xlane.f32.xlu1 %v1935_v42 }
0x157b   :  { %2691 = vrcp.f32 %v1725_v56 }
0x157c   :  { %2693 = vrcp.f32 %v1722_v29 }
0x1580   :  { %v2690_v62 = vpop.eup %2689  ;;  %v1843_v28 = vpop.xlane.xlu2 %1842 }
0x1581   :  { %v1938_v39 = vsel %vm356_vm7, %v2690_v62, 0.0  ;;  %v2692_v22 = vpop.eup %2691 }
0x1582   :  { %1939 = vadd.xlane.f32.xlu2 %v1938_v39  ;;  %v2694_v10 = vpop.eup %2693  ;;  %v1729_v46 = vmul.f32 %v2692_v22, %v2682_v9 }
0x1583   :  { %v1728_v45 = vmul.f32 %v2694_v10, %v2680_v41 }
0x1585   :  { %v1730_v33 = vpack.c.bf16 %v1729_v46, %v1728_v45 }
0x1588   :  { %v1732_v32 = vpop.permute.xlu0 %1731 }
0x1589   :  { %1744 = vmatpush.bf16.msra.mxu1 %v1732_v32 }
0x158c   :  { %2437 = vmatmul.msk.bf16.vlgmr.msra.gmra.mxu1 %vm356_vm7, %v1730_v33 }
0x1590   :  { %v1947_v37 = vpop.permute.xlu0 %1946 }
0x1591   :  { %1959 = vmatpush.bf16.msrb.mxu3 %v1947_v37 }
0x1593   :  { %1849 = vrot.lane.b32.xlu1 %v3414_v59, %s2786_s30 }
0x1598   :  { %v1872_v9 = vpop.permute.xlu0 %1871 }
0x1599   :  { %v1877_v44 = vsel %vm479_vm8, %v1872_v9, 0 }
0x159a   :  { %1753 = vrot.lane.b32.xlu2 %v1752_v40, %s2781_s24  ;;  %s2791_s24 = smov 8  }
0x15a0   :  { %v1969_v34 = vpop.permute.xlu0 %1968 }
0x15a1   :  { %v1974_v5 = vsel %vm479_vm8, %v1969_v34, 0 }
0x15a8   :  { %v1993_v35 = vpop.permute.xlu0 %1992 }
0x15ed   :  { %v1937_v51 = vpop.xlane.xlu1 %1936 }
0x15ee   :  { %2695 = vrcp.f32 %v1937_v51 }
0x15f4   :  { %v2696_v59 = vpop.eup %2695 }
0x15f5   :  { %v1940_v55 = vpop.xlane.xlu2 %1939  ;;  %v1943_v61 = vmul.f32 %v2696_v59, %v2688_v27 }
0x15f6   :  { %2697 = vrcp.f32 %v1940_v55  ;;  %v2509_v55 = vld [vmem:[%s3597_s6 + $0x30] sm:$0xff] }
0x15f7   :  { %2699 = vrcp.f32 %v1843_v28 }
0x15f8   :  { %2701 = vrcp.f32 %v1840_v43 }
0x15fc   :  { %v2698_v15 = vpop.eup %2697 }
0x15fd   :  { %v1944_v41 = vmul.f32 %v2698_v15, %v2690_v62  ;;  %v1754_v49 = vpop.permute.xlu2 %1753  ;;  %v2700_v57 = vpop.eup %2699 }
0x15fe   :  { %v1759_v63 = vsel %vm479_vm8, %v1754_v49, 0  ;;  %v2702_v8 = vpop.eup %2701  ;;  %v1847_v50 = vmul.f32 %v2700_v57, %v3471_v17 }
0x15ff   :  { %v1945_v47 = vpack.c.bf16 %v1944_v41, %v1943_v61  ;;  %1768 = vmatpush.bf16.msrb.mxu2 %v1759_v63  ;;  %v1846_v4 = vmul.f32 %v2702_v8, %v3467_v48 }
0x1601   :  { %2444 = vmatmul.msk.bf16.vlgmr.msrb.gmra.mxu3 %vm356_vm7, %v1945_v47  ;;  %v1848_v30 = vpack.c.bf16 %v1847_v50, %v1846_v4 }
0x1603   :  { %1886 = vmatpush.bf16.msra.mxu2 %v1877_v44 }
0x1605   :  { %v1850_v1 = vpop.permute.xlu1 %1849 }
0x1606   :  { %1862 = vmatpush.bf16.msrb.mxu1 %v1850_v1 }
0x1609   :  { %v1746_v6 = vpop.f32.mrf.mxu1  ;;  %2441 = vmatmul.msk.bf16.vlgmr.msrb.gmra.mxu1 %vm356_vm7, %v1848_v30 }
0x160a   :  { %1983 = vmatpush.bf16.msra.mxu1 %v1974_v5  ;;  %v2046_v5 = vperm.slane %v3320_v3, 0 }
0x1611   :  { %v1748_v26 = vpop.f32.mrf.mxu1 }
0x1612   :  { %v1751_v18 = vpack.c.bf16 %v1748_v26, %v1746_v6  ;;  %v2728_v26 = vld [vmem:[%s3595_s4] sm:$0xff] }
0x1614   :  { %2438 = vmatmul.msk.bf16.vlgmr.msrb.gmra.mxu2 %vm331_vm2, %v1751_v18  ;;  %v2043_v18 = vperm.slane %v2728_v26, 7 }
0x1615   :  { %2085 = vmatpush.bf16.msrb.mxu2 %v2510_v20  ;;  %v3550_v20 = vld [vmem:[%s3595_s4 + $0x18] sm:$0xff] }
0x1619   :  { %2086 = vmatpush.bf16.msrb.mxu2 %v2509_v55 }
0x1684   :  { %v1961_v14 = vpop.f32.mrf.mxu3 }
0x1686   :  { %v1864_v16 = vpop.f32.mrf.mxu1 }
0x168c   :  { %v1963_v19 = vpop.f32.mrf.mxu3 }
0x168d   :  { %v1966_v48 = vpack.c.bf16 %v1963_v19, %v1961_v14 }
0x168e   :  { %v1866_v24 = vpop.f32.mrf.mxu1 }
0x168f   :  { %v1869_v36 = vpack.c.bf16 %v1866_v24, %v1864_v16  ;;  %2445 = vmatmul.msk.bf16.vlgmr.msra.gmra.mxu1 %vm331_vm2, %v1966_v48 }
0x1691   :  { %2442 = vmatmul.msk.bf16.vlgmr.msra.gmra.mxu2 %vm331_vm2, %v1869_v36 }
0x1697   :  { %v1770_v17 = vpop.f32.mrf.mxu2 }
0x1698   :  { %v1794_v25 = vadd.f32 %v3457_v12, %v1770_v17  ;;  %v2514_v17 = vld [vmem:[%s3597_s6 + $0x58] sm:$0xff] }
0x1699   :  { %2144 = vmatpush.bf16.msra.mxu0 %v2514_v17 }
0x169f   :  { %v1772_v53 = vpop.f32.mrf.mxu2 }
0x16a0   :  { %v1796_v42 = vadd.f32 %v3459_v58, %v1772_v53  ;;  %v2513_v53 = vld [vmem:[%s3597_s6 + $0x50] sm:$0xff] }
0x16a1   :  { %2145 = vmatpush.bf16.msra.mxu0 %v2513_v53 }
0x170c   :  { %v1985_v23 = vpop.f32.mrf.mxu1 }
0x1714   :  { %v1888_v21 = vpop.f32.mrf.mxu2  ;;  %v1987_v22 = vpop.f32.mrf.mxu1 }
0x1715   :  { %v1893_v52 = vadd.f32 %v1888_v21, %v1794_v25  ;;  %v2512_v25 = vld [vmem:[%s3597_s6 + $0x48] sm:$0xff]  ;;  %v2063_v21 = vperm.slane %v3320_v3, 6 }
0x1716   :  { %2146 = vmatpush.bf16.msra.mxu0 %v2512_v25 }
0x1717   :  { %v1990_v27 = vadd.f32 %v1985_v23, %v1893_v52  ;;  %v2511_v23 = vld [vmem:[%s3597_s6 + $0x40] sm:$0xff] }
0x1719   :  { %v1995_v11 = vadd.f32 %v1993_v35, %v1990_v27 }
0x171a   :  { %2147 = vmatpush.bf16.msra.mxu0 %v2511_v23 }
0x171b   :  { %v3505_v56 = vadd.f32 %v1995_v11, %v3351_v54 }
0x171c   :  { %v1890_v29 = vpop.f32.mrf.mxu2 }
0x171d   :  { %v1894_v62 = vadd.f32 %v1890_v29, %v1796_v42  ;;  %v1999_v39 = vsel %vm184_vm4, %v3505_v56, 0.0 }
0x171e   :  { %2000 = vadd.xlane.f32.xlu1 %v1999_v39 }
0x171f   :  { %v1991_v10 = vadd.f32 %v1987_v22, %v1894_v62 }
0x1721   :  { %v1996_v12 = vadd.f32 %v1993_v35, %v1991_v10 }
0x1723   :  { %v3510_v46 = vadd.f32 %v1996_v12, %v3360_v7 }
0x1725   :  { %v2002_v45 = vsel %vm184_vm4, %v3510_v46, 0.0 }
0x1726   :  { %2003 = vadd.xlane.f32.xlu2 %v2002_v45 }
0x1791   :  { %v2001_v58 = vpop.xlane.xlu1 %2000 }
0x1792   :  { %v2005_v54 = vmul.f32 %v2001_v58, %v2917_v38 }
0x1794   :  { %v2007_v32 = vsub.f32 %v3505_v56, %v2005_v54 }
0x1796   :  { %v2009_v33 = vmul.f32 %v2007_v32, %v2007_v32 }
0x1798   :  { %v2011_v37 = vsel %vm184_vm4, %v2009_v33, 0.0 }
0x1799   :  { %2012 = vadd.xlane.f32.xlu0 %v2011_v37  ;;  %v2004_v60 = vpop.xlane.xlu2 %2003 }
0x179a   :  { %v2006_v40 = vmul.f32 %v2004_v60, %v2917_v38 }
0x179c   :  { %v2008_v43 = vsub.f32 %v3510_v46, %v2006_v40 }
0x179e   :  { %v2010_v7 = vmul.f32 %v2008_v43, %v2008_v43 }
0x17a0   :  { %v2014_v31 = vsel %vm184_vm4, %v2010_v7, 0.0 }
0x17a1   :  { %2015 = vadd.xlane.f32.xlu1 %v2014_v31 }
0x180c   :  { %v2013_v28 = vpop.xlane.xlu0 %2012 }
0x180d   :  { %v2017_v51 = vmul.f32 %v2013_v28, %v2917_v38  ;;  %v2112_v28 = vperm.slane %v3550_v20, 0 }
0x180f   :  { %v2019_v0 = vadd.f32 1e-05, %v2017_v51 }
0x1811   :  { %2703 = vrsqrt.f32 %v2019_v0  ;;  %vm2027_vm7 = vweird.f32 %v2019_v0 }
0x1814   :  { %v2016_v2 = vpop.xlane.xlu1 %2015 }
0x1815   :  { %v2018_v59 = vmul.f32 %v2016_v2, %v2917_v38 }
0x1817   :  { %v2704_v15 = vpop.eup %2703  ;;  %v2020_v61 = vadd.f32 1e-05, %v2018_v59 }
0x1818   :  { %v2022_v41 = vmul.f32 %v2704_v15, %v2019_v0  ;;  %vm2028_vm2 = vweird.f32 %v2704_v15 }
0x1819   :  { %2705 = vrsqrt.f32 %v2020_v61  ;;  %vm2029_vm8 = vmor %vm2027_vm7, %vm2028_vm2  ;;  %vm2037_vm11 = vweird.f32 %v2020_v61 }
0x181a   :  { %v2023_v49 = vmul.f32 %v2704_v15, %v2022_v41 }
0x181c   :  { %v2024_v63 = vmul.f32 0.5, %v2023_v49 }
0x181e   :  { %v2025_v47 = vsub.f32 1.5, %v2024_v63 }
0x181f   :  { %v2706_v57 = vpop.eup %2705 }
0x1820   :  { %v2026_v8 = vmul.f32 %v2704_v15, %v2025_v47  ;;  %v2032_v50 = vmul.f32 %v2706_v57, %v2020_v61  ;;  %vm2038_vm10 = vweird.f32 %v2706_v57 }
0x1821   :  { %vm2039_vm3 = vmor %vm2037_vm11, %vm2038_vm10 }
0x1822   :  { %v2033_v4 = vmul.f32 %v2706_v57, %v2032_v50  ;;  %v2030_v1 = vsel %vm2029_vm8, %v2704_v15, %v2026_v8 }
0x1823   :  { %v2041_v9 = vmul.f32 %v2030_v1, %v2007_v32 }
0x1824   :  { %v2034_v30 = vmul.f32 0.5, %v2033_v4 }
0x1825   :  { %v2044_v14 = vmul.f32 %v2043_v18, %v2041_v9  ;;  %v2501_v9 = vld [vmem:[%s3594_s3] sm:$0xff] }
0x1826   :  { %v2035_v6 = vsub.f32 1.5, %v2034_v30 }
0x1827   :  { %v2047_v48 = vadd.f32 %v2046_v5, %v2044_v14 }
0x1828   :  { %v2036_v44 = vmul.f32 %v2706_v57, %v2035_v6 }
0x182a   :  { %v2040_v34 = vsel %vm2039_vm3, %v2706_v57, %v2036_v44  ;;  %v2334_v44 = vld [vmem:[%s3591_s0 + $0x20] sm:$0xff] }
0x182b   :  { %v2042_v16 = vmul.f32 %v2040_v34, %v2008_v43 }
0x182d   :  { %v2045_v19 = vmul.f32 %v2043_v18, %v2042_v16 }
0x182f   :  { %v2048_v24 = vadd.f32 %v2046_v5, %v2045_v19 }
0x1831   :  { %v2062_v36 = vpack.c.bf16 %v2048_v24, %v2047_v48 }
0x1833   :  { %2466 = vmatmul.msk.bf16.vlgmr.msrb.gmra.mxu2 %vm184_vm4, %v2062_v36 }
0x18b6   :  { %v2088_v52 = vpop.f32.mrf.mxu2 }
0x18b7   :  { %v2089_v35 = vadd.f32 %v2088_v52, %v2063_v21 }
0x18b9   :  { %v2095_v27 = vmul.f32 0.044715, %v2089_v35  ;;  %v2093_v37 = vmul.f32 0.5, %v2089_v35 }
0x18bb   :  { %v2097_v11 = vmul.f32 %v2095_v27, %v2089_v35 }
0x18bd   :  { %v2099_v42 = vmul.f32 %v2097_v11, %v2089_v35 }
0x18be   :  { %v2090_v29 = vpop.f32.mrf.mxu2 }
0x18bf   :  { %v2101_v62 = vadd.f32 %v2099_v42, %v2089_v35  ;;  %v2091_v39 = vadd.f32 %v2090_v29, %v2063_v21 }
0x18c1   :  { %v2096_v22 = vmul.f32 0.044715, %v2091_v39  ;;  %v2103_v10 = vmul.f32 0.7978846, %v2101_v62  ;;  %v2094_v60 = vmul.f32 0.5, %v2091_v39  ;;  %v2731_v62 = vld [vmem:[%s3595_s4 + $0x10] sm:$0xff] }
0x18c3   :  { %v2098_v12 = vmul.f32 %v2096_v22, %v2091_v39  ;;  %2707 = vtanh.f32 %v2103_v10 }
0x18c5   :  { %v2100_v45 = vmul.f32 %v2098_v12, %v2091_v39 }
0x18c7   :  { %v2102_v58 = vadd.f32 %v2100_v45, %v2091_v39  ;;  %v2203_v39 = vperm.slane %v2731_v62, 1 }
0x18c9   :  { %v2104_v54 = vmul.f32 0.7978846, %v2102_v58  ;;  %v2708_v32 = vpop.eup %2707 }
0x18ca   :  { %v2107_v33 = vadd.f32 1.0, %v2708_v32  ;;  %v2207_v32 = vperm.slane %v3550_v20, 1 }
0x18cb   :  { %2709 = vtanh.f32 %v2104_v54 }
0x18cc   :  { %v2109_v43 = vmul.f32 %v2107_v33, %v2093_v37 }
0x18d1   :  { %v2710_v3 = vpop.eup %2709 }
0x18d2   :  { %v2108_v40 = vadd.f32 1.0, %v2710_v3 }
0x18d4   :  { %v2110_v7 = vmul.f32 %v2108_v40, %v2094_v60  ;;  %v2335_v40 = vld [vmem:[%s3591_s0 + $0x28] sm:$0xff]  ;;  %s2789_s0 = smov [#allocation2]  }
0x18d5   :  { %s2303_s5 = sshll.u32 %s2789_s0, 4  ;;  %s2304_s5 = int_to_ptr.vmem [resolvable:$true] %s2303_s5 }
0x18d6   :  { %v2111_v31 = vpack.c.bf16 %v2110_v7, %v2109_v43 }
0x18d8   :  { %2483 = vmatmul.msk.bf16.vlgmr.msra.gmra.mxu0 %vm859_vm6, %v2111_v31 }
0x1955   :  { %v2149_v51 = vpop.f32.mrf.mxu0 }
0x1956   :  { %v2150_v0 = vadd.f32 %v2149_v51, %v2112_v28 }
0x1958   :  { %v2154_v55 = vadd.f32 %v2150_v0, %v3505_v56 }
0x195a   :  { %v2156_v2 = vsel %vm184_vm4, %v2154_v55, 0.0 }
0x195b   :  { %2157 = vadd.xlane.f32.xlu2 %v2156_v2 }
0x195d   :  { %v2151_v59 = vpop.f32.mrf.mxu0 }
0x195e   :  { %v2152_v15 = vadd.f32 %v2151_v59, %v2112_v28 }
0x1960   :  { %v2155_v61 = vadd.f32 %v2152_v15, %v3510_v46  ;;  %v2502_v46 = vld [vmem:[%s3594_s3 + $0x8] sm:$0xff] }
0x1961   :  { %2229 = vmatpush.bf16.msra.mxu3 %v2502_v46 }
0x1962   :  { %v2159_v41 = vsel %vm184_vm4, %v2155_v61, 0.0 }
0x1963   :  { %2160 = vadd.xlane.f32.xlu0 %v2159_v41 }
0x1965   :  { %2230 = vmatpush.bf16.msra.mxu3 %v2501_v9 }
0x19ce   :  { %v2158_v49 = vpop.xlane.xlu2 %2157 }
0x19cf   :  { %v2162_v63 = vmul.f32 %v2158_v49, %v2917_v38 }
0x19d1   :  { %v2164_v47 = vsub.f32 %v2154_v55, %v2162_v63 }
0x19d3   :  { %v2166_v57 = vmul.f32 %v2164_v47, %v2164_v47 }
0x19d5   :  { %v2168_v8 = vsel %vm184_vm4, %v2166_v57, 0.0 }
0x19d6   :  { %v2161_v50 = vpop.xlane.xlu0 %2160  ;;  %2169 = vadd.xlane.f32.xlu1 %v2168_v8 }
0x19d7   :  { %v2163_v56 = vmul.f32 %v2161_v50, %v2917_v38 }
0x19d9   :  { %v2165_v4 = vsub.f32 %v2155_v61, %v2163_v56 }
0x19db   :  { %v2167_v1 = vmul.f32 %v2165_v4, %v2165_v4 }
0x19dd   :  { %v2171_v30 = vsel %vm184_vm4, %v2167_v1, 0.0 }
0x19de   :  { %2172 = vadd.xlane.f32.xlu2 %v2171_v30 }
0x19f6   :  { %2260 = vperm.xlu2 %2572, %v2334_v44  }
0x1a49   :  { %v2170_v6 = vpop.xlane.xlu1 %2169 }
0x1a4a   :  { %v2174_v26 = vmul.f32 %v2170_v6, %v2917_v38 }
0x1a4c   :  { %v2176_v18 = vadd.f32 1e-05, %v2174_v26 }
0x1a4e   :  { %2711 = vrsqrt.f32 %v2176_v18  ;;  %vm2184_vm12 = vweird.f32 %v2176_v18 }
0x1a51   :  { %v2173_v34 = vpop.xlane.xlu2 %2172 }
0x1a52   :  { %v2175_v5 = vmul.f32 %v2173_v34, %v2917_v38  ;;  %v2730_v38 = vld [vmem:[%s3595_s4 + $0x8] sm:$0xff] }
0x1a53   :  { %v2200_v27 = vperm.slane %v2730_v38, 0 }
0x1a54   :  { %v2712_v14 = vpop.eup %2711  ;;  %v2177_v16 = vadd.f32 1e-05, %v2175_v5 }
0x1a55   :  { %v2179_v19 = vmul.f32 %v2712_v14, %v2176_v18  ;;  %vm2185_vm6 = vweird.f32 %v2712_v14  ;;  %v2792_v18 = vmov 16.0  }
0x1a56   :  { %2713 = vrsqrt.f32 %v2177_v16  ;;  %vm2186_vm13 = vmor %vm2184_vm12, %vm2185_vm6  ;;  %vm2194_vm15 = vweird.f32 %v2177_v16 }
0x1a57   :  { %v2180_v48 = vmul.f32 %v2712_v14, %v2179_v19 }
0x1a59   :  { %v2181_v24 = vmul.f32 0.5, %v2180_v48  ;;  %v2261_v59 = vpop.permute.xlu2 %2260 }
0x1a5a   :  { %vm2265_vm1 = vcmp.eq.s32.totalorder %v2894_v13, %v2261_v59 }
0x1a5b   :  { %v2182_v36 = vsub.f32 1.5, %v2181_v24 }
0x1a5c   :  { %v2714_v17 = vpop.eup %2713 }
0x1a5d   :  { %v2183_v53 = vmul.f32 %v2712_v14, %v2182_v36  ;;  %v2189_v25 = vmul.f32 %v2714_v17, %v2177_v16  ;;  %vm2195_vm14 = vweird.f32 %v2714_v17 }
0x1a5e   :  { %vm2196_vm0 = vmor %vm2194_vm15, %vm2195_vm14 }
0x1a5f   :  { %v2190_v23 = vmul.f32 %v2714_v17, %v2189_v25  ;;  %v2187_v21 = vsel %vm2186_vm13, %v2712_v14, %v2183_v53 }
0x1a60   :  { %v2198_v11 = vmul.f32 %v2187_v21, %v2164_v47 }
0x1a61   :  { %v2191_v52 = vmul.f32 0.5, %v2190_v23 }
0x1a62   :  { %v2201_v22 = vmul.f32 %v2200_v27, %v2198_v11 }
0x1a63   :  { %v2192_v35 = vsub.f32 1.5, %v2191_v52 }
0x1a64   :  { %v2204_v45 = vadd.f32 %v2203_v39, %v2201_v22 }
0x1a65   :  { %v2193_v42 = vmul.f32 %v2714_v17, %v2192_v35 }
0x1a67   :  { %v2197_v29 = vsel %vm2196_vm0, %v2714_v17, %v2193_v42 }
0x1a68   :  { %v2199_v10 = vmul.f32 %v2197_v29, %v2165_v4 }
0x1a6a   :  { %v2202_v12 = vmul.f32 %v2200_v27, %v2199_v10 }
0x1a6c   :  { %v2205_v58 = vadd.f32 %v2203_v39, %v2202_v12 }
0x1a6e   :  { %v2206_v54 = vpack.c.bf16 %v2205_v58, %v2204_v45 }
0x1a70   :  { %2492 = vmatmul.msk.bf16.vlgmr.msra.gmra.mxu3 %vm184_vm4, %v2206_v54 }
0x1af3   :  { %v2232_v33 = vpop.f32.mrf.mxu3 }
0x1af4   :  { %v2233_v3 = vadd.f32 %v2232_v33, %v2207_v32 }
0x1af6   :  { %2237 = vst [vmem:[#allocation2] sm:$0xff] %v2233_v3  ;;  %2239 = vmax.xlane.f32.xlu0 %v2233_v3  ;;  %v2267_v61 = vsel %vm2265_vm1, %v2233_v3, 0.0 }
0x1afb   :  { %v2234_v37 = vpop.f32.mrf.mxu3 }
0x1afc   :  { %v2235_v60 = vadd.f32 %v2234_v37, %v2207_v32 }
0x1afe   :  { %2238 = vst [vmem:[#allocation2 + $0x8] sm:$0xff] %v2235_v60  ;;  %2241 = vmax.xlane.f32.xlu1 %v2235_v60 }
0x1aff   :  { %2311 = dma.vmem_to_hbm [thread:$0]  %s2304_s5, 256, %s2306_s20, [#allocation3], %s2790_s21, %s2790_s21, %s2791_s24  }
0x1b0a   :  { %2263 = vperm.xlu0 %2570, %v2335_v40  }
0x1b69   :  { %v2240_v43 = vpop.xlane.xlu0 %2239 }
0x1b6a   :  { %v2243_v7 = vsub.f32 %v2233_v3, %v2240_v43 }
0x1b6c   :  { %v2245_v31 = vmul.f32 1.442695, %v2243_v7 }
0x1b6e   :  { %2715 = vpow2.f32 %v2245_v31 }
0x1b71   :  { %v2242_v28 = vpop.xlane.xlu1 %2241 }
0x1b72   :  { %v2244_v51 = vsub.f32 %v2235_v60, %v2242_v28 }
0x1b74   :  { %v2716_v20 = vpop.eup %2715  ;;  %v2247_v0 = vmul.f32 1.442695, %v2244_v51 }
0x1b75   :  { %2249 = vadd.xlane.f32.xlu1 %v2716_v20 }
0x1b76   :  { %2717 = vpow2.f32 %v2247_v0 }
0x1b7c   :  { %v2718_v55 = vpop.eup %2717  ;;  %v2264_v2 = vpop.permute.xlu0 %2263 }
0x1b7d   :  { %vm2266_vm4 = vcmp.eq.s32.totalorder %v2894_v13, %v2264_v2  ;;  %2251 = vadd.xlane.f32.xlu1 %v2718_v55 }
0x1b7e   :  { %v2268_v15 = vsel %vm2266_vm4, %v2235_v60, 0.0 }
0x1b7f   :  { %2271 = vadd.xlane.f32.xlu2 %v2268_v15 }
0x1b85   :  { %2269 = vadd.xlane.f32.xlu1 %v2267_v61 }
0x1be8   :  { %v2250_v41 = vpop.xlane.xlu1 %2249 }
0x1be9   :  { %2719 = vlog2.f32 %v2250_v41 }
0x1bef   :  { %v2720_v63 = vpop.eup %2719 }
0x1bf0   :  { %v2252_v49 = vpop.xlane.xlu1 %2251  ;;  %v2254_v47 = vmul.f32 0.6931472, %v2720_v63 }
0x1bf1   :  { %2721 = vlog2.f32 %v2252_v49 }
0x1bf2   :  { %v2257_v50 = vadd.f32 %v2254_v47, %v2240_v43  ;;  %v2272_v30 = vpop.xlane.xlu2 %2271  ;;  %2723 = vrcp.f32 %v2792_v18 }
0x1bf7   :  { %v2722_v57 = vpop.eup %2721 }
0x1bf8   :  { %v2256_v8 = vmul.f32 0.6931472, %v2722_v57  ;;  %v2270_v56 = vpop.xlane.xlu1 %2269  ;;  %v2724_v9 = vpop.eup %2723 }
0x1bf9   :  { %v2273_v1 = vsub.f32 %v2257_v50, %v2270_v56  ;;  %v2289_v44 = vmul.f32 16.0, %v2724_v9  ;;  %vm2293_vm9 = vweird.f32 %v2724_v9 }
0x1bfa   :  { %v2258_v4 = vadd.f32 %v2256_v8, %v2242_v28 }
0x1bfb   :  { %v2276_v6 = vsel %vm2275_vm5, %v2273_v1, 0.0  ;;  %v2290_v34 = vsub.f32 1.0, %v2289_v44 }
0x1bfc   :  { %v2274_v46 = vsub.f32 %v2258_v4, %v2272_v30 }
0x1bfd   :  { %v2291_v19 = vmul.f32 %v2724_v9, %v2290_v34 }
0x1bfe   :  { %v2277_v26 = vsel %vm2275_vm5, %v2274_v46, 0.0 }
0x1bff   :  { %v2278_v13 = vadd.f32 %v2277_v26, %v2276_v6  ;;  %v2292_v36 = vadd.f32 %v2724_v9, %v2291_v19 }
0x1c01   :  { %2279 = vadd.xlane.f32.xlu0 %v2278_v13  ;;  %v2294_v25 = vsel %vm2293_vm9, %v2724_v9, %v2292_v36 }
0x1c74   :  { %v2280_v5 = vpop.xlane.xlu0 %2279 }
0x1c75   :  { %v2281_v14 = vrot.slane %v2280_v5, 4 }
0x1c77   :  { %v2282_v16 = vadd.f32 %v2281_v14, %v2280_v5 }
0x1c79   :  { %v2283_v48 = vrot.slane %v2282_v16, 2 }
0x1c7b   :  { %v2284_v24 = vadd.f32 %v2283_v48, %v2282_v16 }
0x1c7d   :  { %v2285_v17 = vrot.slane %v2284_v24, 1 }
0x1c7f   :  { %v2286_v53 = vadd.f32 %v2285_v17, %v2284_v24 }
0x1c81   :  { %2544 = vpush %v2286_v53 }
0x1c82   :  { %2546 = vpush %v2294_v25 }
0x1cb2   :  { %s2545_s30 = spop %2544 }
0x1cb3   :  { %s2547_s13 = spop %2546 }
0x1cb4   :  { %s2296_s14 = smul.f32 %s2547_s13, %s2545_s30 }
0x1cb6   :  { %2298 = sst [smem:[#allocation5]] %s2296_s14 }
0x1cb7   :  { %2320 = dma.smem_to_hbm %s2793_s15, 16, %s2318_s2, [#allocation4]  }
0x1cb8   :  { %2768 = dma.done.wait [#allocation3], 256  }
0x1cb9   :  { %2769 = vsyncadd [#allocation3], 4294967040 }
0x1cba   :  { %2770 = dma.done.wait [#allocation4], 16  }
0x1cbb   :  { %2771 = vsyncadd [#allocation4], 4294967280 }
0x1cbc   :  { %2329 = sfence }
0x1cbd   :  { %2330 = vsyncpa [#allocation3], 1 }
0x1cbe   :  { %2331 = vsyncpa [#allocation4], 1 }

</bundles_post_ra>
